<compile_context>
chip_gen: v7x
topology: tpu7x:2x2x1
jax: 0.10.0
libtpu: 0.0.40
codegen_flags: <defaults>
</compile_context>

<pallas_src>
import functools

import jax
import jax.numpy as jnp
from jax.experimental import pallas as pl
from jax.experimental.pallas import tpu as pltpu

_LANES = 128


def _round_up(x, m):
    return (x + m - 1) // m * m


def _pick_tile_h(H, W, max_rows=256):
    """Largest divisor of H such that tile_h * W <= max_rows (accumulator <= 32 vregs)."""
    best = 1
    for t in range(1, H + 1):
        if H % t == 0 and t * W <= max_rows:
            best = t
    return best


def _conv3d_bn_relu_kernel(xm_ref, xz_ref, xp_ref, w_ref, scale_ref, shift_ref, o_ref,
                           *, tile_h):
    # xm/xz/xp: (1, 1, H+2, W+2, Cin_p)  padded input planes at padded depth d, d+1, d+2
    # w_ref:    (27, Cin_p, Cout_p)      per-tap 2-D MXU weight matrices (bf16)
    # scale/shift: (1, Cout_p)           folded BN scale / (BN shift + conv bias), f32
    # o_ref:    (1, 1, H, W, Cout_p)     one output depth-plane (f32)
    _, _, H, W, Cout_p = o_ref.shape
    Cin_p = xm_ref.shape[-1]
    planes = (xm_ref, xz_ref, xp_ref)

    scale = scale_ref[...]   # (1, Cout_p)
    shift = shift_ref[...]   # (1, Cout_p)

    # Tile over H so the live f32 accumulator stays small (<= ~32 vregs).
    for h0 in range(0, H, tile_h):
        acc = jnp.zeros((tile_h * W, Cout_p), jnp.float32)
        for kd in range(3):
            for kh in range(3):
                for kw in range(3):
                    # Lane-dense (tile_h, W, 128) bf16 patch straight from the ref.
                    patch = planes[kd][0, 0,
                                       h0 + kh:h0 + kh + tile_h,
                                       kw:kw + W, :]
                    acc = acc + jnp.dot(
                        patch.reshape(tile_h * W, Cin_p),
                        w_ref[(kd * 3 + kh) * 3 + kw],
                        preferred_element_type=jnp.float32)
        y = jnp.maximum(acc * scale + shift, 0.0)          # folded BN/bias + ReLU
        o_ref[0, 0, h0:h0 + tile_h, :, :] = (
            y.reshape(tile_h, W, Cout_p).astype(o_ref.dtype))


def conv_layer3d_pallas(x_ncdhw, weight_oidhw, bias, enable_bn,
                        gamma=None, beta=None, running_mean=None, running_var=None,
                        eps=1e-5):
    """Forward pass of ConvLayer3D.  x_ncdhw: (N, Cin, D, H, W) float32 (PyTorch layout)."""
    N, Cin, D, H, W = x_ncdhw.shape
    Cout = weight_oidhw.shape[0]
    Cin_p = _round_up(Cin, _LANES)
    Cout_p = _round_up(Cout, _LANES)

    # --- wrapper glue (plain JAX): layout, lane padding, bf16 cast, BN folding ---
    x = jnp.transpose(x_ncdhw, (0, 2, 3, 4, 1))                       # (N, D, H, W, Cin)
    x = jnp.pad(x, ((0, 0), (1, 1), (1, 1), (1, 1), (0, Cin_p - Cin)))
    x = x.astype(jnp.bfloat16)                                        # (N, D+2, H+2, W+2, Cin_p)

    w = jnp.transpose(weight_oidhw, (2, 3, 4, 1, 0))                  # (3,3,3,Cin,Cout)
    w = jnp.pad(w, ((0, 0), (0, 0), (0, 0), (0, Cin_p - Cin), (0, Cout_p - Cout)))
    w = w.reshape(27, Cin_p, Cout_p).astype(jnp.bfloat16)             # 2-D MXU operands per tap

    if enable_bn:
        scale = gamma / jnp.sqrt(running_var + eps)                   # (Cout,)
        shift = beta - running_mean * scale + bias * scale            # (Cout,)
    else:
        scale = jnp.ones((Cout,), jnp.float32)
        shift = bias
    scale = jnp.pad(scale.astype(jnp.float32), (0, Cout_p - Cout)).reshape(1, Cout_p)
    shift = jnp.pad(shift.astype(jnp.float32), (0, Cout_p - Cout)).reshape(1, Cout_p)

    Hp, Wp = H + 2, W + 2
    tile_h = _pick_tile_h(H, W)

    kernel = functools.partial(_conv3d_bn_relu_kernel, tile_h=tile_h)

    out_ndhwc = pl.pallas_call(
        kernel,
        out_shape=jax.ShapeDtypeStruct((N, D, H, W, Cout_p), jnp.float32),
        grid_spec=pltpu.PrefetchScalarGridSpec(
            num_scalar_prefetch=0,
            grid=(N, D),
            in_specs=[
                # three views of the same padded activation: planes d, d+1, d+2
                pl.BlockSpec((1, 1, Hp, Wp, Cin_p), lambda n, d: (n, d, 0, 0, 0)),
                pl.BlockSpec((1, 1, Hp, Wp, Cin_p), lambda n, d: (n, d + 1, 0, 0, 0)),
                pl.BlockSpec((1, 1, Hp, Wp, Cin_p), lambda n, d: (n, d + 2, 0, 0, 0)),
                pl.BlockSpec((27, Cin_p, Cout_p), lambda n, d: (0, 0, 0)),
                pl.BlockSpec((1, Cout_p), lambda n, d: (0, 0)),
                pl.BlockSpec((1, Cout_p), lambda n, d: (0, 0)),
            ],
            out_specs=pl.BlockSpec((1, 1, H, W, Cout_p), lambda n, d: (n, d, 0, 0, 0)),
        ),
        compiler_params=pltpu.CompilerParams(
            dimension_semantics=("parallel", "parallel"),
            vmem_limit_bytes=32 * 1024 * 1024),
    )(x, x, x, w, scale, shift)

    # strip lane padding, back to PyTorch NCDHW layout
    out = out_ndhwc[..., :Cout]
    return jnp.transpose(out, (0, 4, 1, 2, 3))


def _reference(x_ncdhw, weight_oidhw, bias, enable_bn,
               gamma=None, beta=None, running_mean=None, running_var=None, eps=1e-5):
    """Pure-JAX reference (lax.conv) using the same bf16-rounded operands as the kernel."""
    xb = x_ncdhw.astype(jnp.bfloat16).astype(jnp.float32)
    wb = weight_oidhw.astype(jnp.bfloat16).astype(jnp.float32)
    x_ndhwc = jnp.transpose(xb, (0, 2, 3, 4, 1))
    w_dhwio = jnp.transpose(wb, (2, 3, 4, 1, 0))
    y = jax.lax.conv_general_dilated(
        x_ndhwc, w_dhwio, window_strides=(1, 1, 1), padding="SAME",
        dimension_numbers=("NDHWC", "DHWIO", "NDHWC"),
        preferred_element_type=jnp.float32)
    y = y + bias.reshape(1, 1, 1, 1, -1)
    if enable_bn:
        scale = gamma / jnp.sqrt(running_var + eps)
        y = (y - running_mean.reshape(1, 1, 1, 1, -1)) * scale.reshape(1, 1, 1, 1, -1) \
            + beta.reshape(1, 1, 1, 1, -1)
    y = jnp.maximum(y, 0.0)
    return jnp.transpose(y, (0, 4, 1, 2, 3))


if __name__ == "__main__":
    # Small shapes consistent with the module: N=2, Cin=4, Cout=8, D=H=W=8.
    N, Cin, Cout, D, H, W = 2, 4, 8, 8, 8, 8

    key = jax.random.PRNGKey(0)
    k_x, k_w, k_b, k_g, k_be, k_m, k_v = jax.random.split(key, 7)

    x = jax.random.normal(k_x, (N, Cin, D, H, W), jnp.float32)          # NCDHW (PyTorch)
    weight = jax.random.normal(k_w, (Cout, Cin, 3, 3, 3), jnp.float32) * 0.1
    bias = jax.random.normal(k_b, (Cout,), jnp.float32) * 0.1
    gamma = 1.0 + 0.1 * jax.random.normal(k_g, (Cout,), jnp.float32)
    beta = 0.1 * jax.random.normal(k_be, (Cout,), jnp.float32)
    running_mean = 0.1 * jax.random.normal(k_m, (Cout,), jnp.float32)
    running_var = 1.0 + 0.1 * jax.random.uniform(k_v, (Cout,), jnp.float32)

    for enable_bn in (True, False):
        out = conv_layer3d_pallas(x, weight, bias, enable_bn,
                                  gamma, beta, running_mean, running_var)
        out = jax.block_until_ready(out)

        ref = _reference(x, weight, bias, enable_bn,
                         gamma, beta, running_mean, running_var)
        ref = jax.block_until_ready(ref)

        assert out.shape == (N, Cout, D, H, W)
        err = float(jnp.max(jnp.abs(out - ref)))
        assert err < 1e-3, f"mismatch vs reference conv3d (enable_bn={enable_bn}, err={err})"

    print("KERNEL_OK")
</pallas_src>

<mosaic_0001>
module attributes {stable_mosaic.version = 11 : i64} {
  func.func @_conv3d_bn_relu_kernel(%arg0: i32, %arg1: i32, %arg2: memref<1x1x10x10x128xbf16, #tpu.memory_space<vmem>>, %arg3: memref<1x1x10x10x128xbf16, #tpu.memory_space<vmem>>, %arg4: memref<1x1x10x10x128xbf16, #tpu.memory_space<vmem>>, %arg5: memref<27x128x128xbf16, #tpu.memory_space<vmem>>, %arg6: memref<1x128xf32, #tpu.memory_space<vmem>>, %arg7: memref<1x128xf32, #tpu.memory_space<vmem>>, %arg8: memref<1x1x8x8x128xf32, #tpu.memory_space<vmem>>) attributes {dimension_semantics = [#tpu.dimension_semantics<parallel>, #tpu.dimension_semantics<parallel>], iteration_bounds = array<i64: 2, 8>, scalar_prefetch = 0 : i64, scratch_operands = 0 : i64, tpu.core_type = #tpu.core_type<tc>, window_params = [{transform_indices = @transform_0, window_bounds = array<i64: 1, 1, 10, 10, 128>}, {transform_indices = @transform_1, window_bounds = array<i64: 1, 1, 10, 10, 128>}, {transform_indices = @transform_2, window_bounds = array<i64: 1, 1, 10, 10, 128>}, {pipeline_mode = #tpu.pipeline_mode<synchronous>, transform_indices = @transform_3, window_bounds = array<i64: 27, 128, 128>}, {pipeline_mode = #tpu.pipeline_mode<synchronous>, transform_indices = @transform_4, window_bounds = array<i64: 1, 128>}, {pipeline_mode = #tpu.pipeline_mode<synchronous>, transform_indices = @transform_5, window_bounds = array<i64: 1, 128>}, {transform_indices = @transform_6, window_bounds = array<i64: 1, 1, 8, 8, 128>}]} {
    %c0 = arith.constant 0 : index
    %c0_0 = arith.constant 0 : index
    %0 = vector.load %arg6[%c0, %c0_0] : memref<1x128xf32, #tpu.memory_space<vmem>>, vector<1x128xf32>
    %c0_1 = arith.constant 0 : index
    %c0_2 = arith.constant 0 : index
    %1 = vector.load %arg7[%c0_1, %c0_2] : memref<1x128xf32, #tpu.memory_space<vmem>>, vector<1x128xf32>
    %cst = arith.constant 0.000000e+00 : f32
    %2 = vector.broadcast %cst : f32 to vector<64x128xf32>
    %c0_3 = arith.constant 0 : index
    %c0_4 = arith.constant 0 : index
    %c0_5 = arith.constant 0 : index
    %c0_6 = arith.constant 0 : index
    %c0_7 = arith.constant 0 : index
    %3 = vector.load %arg2[%c0_3, %c0_4, %c0_5, %c0_6, %c0_7] : memref<1x1x10x10x128xbf16, #tpu.memory_space<vmem>>, vector<1x1x8x8x128xbf16>
    %4 = vector.shape_cast %3 : vector<1x1x8x8x128xbf16> to vector<8x8x128xbf16>
    %5 = vector.shape_cast %4 : vector<8x8x128xbf16> to vector<64x128xbf16>
    %c0_8 = arith.constant 0 : index
    %c0_9 = arith.constant 0 : index
    %c0_10 = arith.constant 0 : index
    %6 = vector.load %arg5[%c0_8, %c0_9, %c0_10] : memref<27x128x128xbf16, #tpu.memory_space<vmem>>, vector<1x128x128xbf16>
    %7 = vector.shape_cast %6 : vector<1x128x128xbf16> to vector<128x128xbf16>
    %cst_11 = arith.constant dense<0.000000e+00> : vector<64x128xf32>
    %8 = tpu.matmul %5, %7, %cst_11 {dimension_numbers = #tpu.dot_dimension_numbers<[1], [0], [0], [1], [0, 0, 1, 1], [], []>} : vector<64x128xbf16>, vector<128x128xbf16>, vector<64x128xf32> -> vector<64x128xf32>
    %9 = arith.addf %2, %8 : vector<64x128xf32>
    %c0_12 = arith.constant 0 : index
    %c0_13 = arith.constant 0 : index
    %c0_14 = arith.constant 0 : index
    %c1 = arith.constant 1 : index
    %c0_15 = arith.constant 0 : index
    %10 = vector.load %arg2[%c0_12, %c0_13, %c0_14, %c1, %c0_15] : memref<1x1x10x10x128xbf16, #tpu.memory_space<vmem>>, vector<1x1x8x8x128xbf16>
    %11 = vector.shape_cast %10 : vector<1x1x8x8x128xbf16> to vector<8x8x128xbf16>
    %12 = vector.shape_cast %11 : vector<8x8x128xbf16> to vector<64x128xbf16>
    %c1_16 = arith.constant 1 : index
    %c0_17 = arith.constant 0 : index
    %c0_18 = arith.constant 0 : index
    %13 = vector.load %arg5[%c1_16, %c0_17, %c0_18] : memref<27x128x128xbf16, #tpu.memory_space<vmem>>, vector<1x128x128xbf16>
    %14 = vector.shape_cast %13 : vector<1x128x128xbf16> to vector<128x128xbf16>
    %cst_19 = arith.constant dense<0.000000e+00> : vector<64x128xf32>
    %15 = tpu.matmul %12, %14, %cst_19 {dimension_numbers = #tpu.dot_dimension_numbers<[1], [0], [0], [1], [0, 0, 1, 1], [], []>} : vector<64x128xbf16>, vector<128x128xbf16>, vector<64x128xf32> -> vector<64x128xf32>
    %16 = arith.addf %9, %15 : vector<64x128xf32>
    %c0_20 = arith.constant 0 : index
    %c0_21 = arith.constant 0 : index
    %c0_22 = arith.constant 0 : index
    %c2 = arith.constant 2 : index
    %c0_23 = arith.constant 0 : index
    %17 = vector.load %arg2[%c0_20, %c0_21, %c0_22, %c2, %c0_23] : memref<1x1x10x10x128xbf16, #tpu.memory_space<vmem>>, vector<1x1x8x8x128xbf16>
    %18 = vector.shape_cast %17 : vector<1x1x8x8x128xbf16> to vector<8x8x128xbf16>
    %19 = vector.shape_cast %18 : vector<8x8x128xbf16> to vector<64x128xbf16>
    %c2_24 = arith.constant 2 : index
    %c0_25 = arith.constant 0 : index
    %c0_26 = arith.constant 0 : index
    %20 = vector.load %arg5[%c2_24, %c0_25, %c0_26] : memref<27x128x128xbf16, #tpu.memory_space<vmem>>, vector<1x128x128xbf16>
    %21 = vector.shape_cast %20 : vector<1x128x128xbf16> to vector<128x128xbf16>
    %cst_27 = arith.constant dense<0.000000e+00> : vector<64x128xf32>
    %22 = tpu.matmul %19, %21, %cst_27 {dimension_numbers = #tpu.dot_dimension_numbers<[1], [0], [0], [1], [0, 0, 1, 1], [], []>} : vector<64x128xbf16>, vector<128x128xbf16>, vector<64x128xf32> -> vector<64x128xf32>
    %23 = arith.addf %16, %22 : vector<64x128xf32>
    %c0_28 = arith.constant 0 : index
    %c0_29 = arith.constant 0 : index
    %c1_30 = arith.constant 1 : index
    %c0_31 = arith.constant 0 : index
    %c0_32 = arith.constant 0 : index
    %24 = vector.load %arg2[%c0_28, %c0_29, %c1_30, %c0_31, %c0_32] : memref<1x1x10x10x128xbf16, #tpu.memory_space<vmem>>, vector<1x1x8x8x128xbf16>
    %25 = vector.shape_cast %24 : vector<1x1x8x8x128xbf16> to vector<8x8x128xbf16>
    %26 = vector.shape_cast %25 : vector<8x8x128xbf16> to vector<64x128xbf16>
    %c3 = arith.constant 3 : index
    %c0_33 = arith.constant 0 : index
    %c0_34 = arith.constant 0 : index
    %27 = vector.load %arg5[%c3, %c0_33, %c0_34] : memref<27x128x128xbf16, #tpu.memory_space<vmem>>, vector<1x128x128xbf16>
    %28 = vector.shape_cast %27 : vector<1x128x128xbf16> to vector<128x128xbf16>
    %cst_35 = arith.constant dense<0.000000e+00> : vector<64x128xf32>
    %29 = tpu.matmul %26, %28, %cst_35 {dimension_numbers = #tpu.dot_dimension_numbers<[1], [0], [0], [1], [0, 0, 1, 1], [], []>} : vector<64x128xbf16>, vector<128x128xbf16>, vector<64x128xf32> -> vector<64x128xf32>
    %30 = arith.addf %23, %29 : vector<64x128xf32>
    %c0_36 = arith.constant 0 : index
    %c0_37 = arith.constant 0 : index
    %c1_38 = arith.constant 1 : index
    %c1_39 = arith.constant 1 : index
    %c0_40 = arith.constant 0 : index
    %31 = vector.load %arg2[%c0_36, %c0_37, %c1_38, %c1_39, %c0_40] : memref<1x1x10x10x128xbf16, #tpu.memory_space<vmem>>, vector<1x1x8x8x128xbf16>
    %32 = vector.shape_cast %31 : vector<1x1x8x8x128xbf16> to vector<8x8x128xbf16>
    %33 = vector.shape_cast %32 : vector<8x8x128xbf16> to vector<64x128xbf16>
    %c4 = arith.constant 4 : index
    %c0_41 = arith.constant 0 : index
    %c0_42 = arith.constant 0 : index
    %34 = vector.load %arg5[%c4, %c0_41, %c0_42] : memref<27x128x128xbf16, #tpu.memory_space<vmem>>, vector<1x128x128xbf16>
    %35 = vector.shape_cast %34 : vector<1x128x128xbf16> to vector<128x128xbf16>
    %cst_43 = arith.constant dense<0.000000e+00> : vector<64x128xf32>
    %36 = tpu.matmul %33, %35, %cst_43 {dimension_numbers = #tpu.dot_dimension_numbers<[1], [0], [0], [1], [0, 0, 1, 1], [], []>} : vector<64x128xbf16>, vector<128x128xbf16>, vector<64x128xf32> -> vector<64x128xf32>
    %37 = arith.addf %30, %36 : vector<64x128xf32>
    %c0_44 = arith.constant 0 : index
    %c0_45 = arith.constant 0 : index
    %c1_46 = arith.constant 1 : index
    %c2_47 = arith.constant 2 : index
    %c0_48 = arith.constant 0 : index
    %38 = vector.load %arg2[%c0_44, %c0_45, %c1_46, %c2_47, %c0_48] : memref<1x1x10x10x128xbf16, #tpu.memory_space<vmem>>, vector<1x1x8x8x128xbf16>
    %39 = vector.shape_cast %38 : vector<1x1x8x8x128xbf16> to vector<8x8x128xbf16>
    %40 = vector.shape_cast %39 : vector<8x8x128xbf16> to vector<64x128xbf16>
    %c5 = arith.constant 5 : index
    %c0_49 = arith.constant 0 : index
    %c0_50 = arith.constant 0 : index
    %41 = vector.load %arg5[%c5, %c0_49, %c0_50] : memref<27x128x128xbf16, #tpu.memory_space<vmem>>, vector<1x128x128xbf16>
    %42 = vector.shape_cast %41 : vector<1x128x128xbf16> to vector<128x128xbf16>
    %cst_51 = arith.constant dense<0.000000e+00> : vector<64x128xf32>
    %43 = tpu.matmul %40, %42, %cst_51 {dimension_numbers = #tpu.dot_dimension_numbers<[1], [0], [0], [1], [0, 0, 1, 1], [], []>} : vector<64x128xbf16>, vector<128x128xbf16>, vector<64x128xf32> -> vector<64x128xf32>
    %44 = arith.addf %37, %43 : vector<64x128xf32>
    %c0_52 = arith.constant 0 : index
    %c0_53 = arith.constant 0 : index
    %c2_54 = arith.constant 2 : index
    %c0_55 = arith.constant 0 : index
    %c0_56 = arith.constant 0 : index
    %45 = vector.load %arg2[%c0_52, %c0_53, %c2_54, %c0_55, %c0_56] : memref<1x1x10x10x128xbf16, #tpu.memory_space<vmem>>, vector<1x1x8x8x128xbf16>
    %46 = vector.shape_cast %45 : vector<1x1x8x8x128xbf16> to vector<8x8x128xbf16>
    %47 = vector.shape_cast %46 : vector<8x8x128xbf16> to vector<64x128xbf16>
    %c6 = arith.constant 6 : index
    %c0_57 = arith.constant 0 : index
    %c0_58 = arith.constant 0 : index
    %48 = vector.load %arg5[%c6, %c0_57, %c0_58] : memref<27x128x128xbf16, #tpu.memory_space<vmem>>, vector<1x128x128xbf16>
    %49 = vector.shape_cast %48 : vector<1x128x128xbf16> to vector<128x128xbf16>
    %cst_59 = arith.constant dense<0.000000e+00> : vector<64x128xf32>
    %50 = tpu.matmul %47, %49, %cst_59 {dimension_numbers = #tpu.dot_dimension_numbers<[1], [0], [0], [1], [0, 0, 1, 1], [], []>} : vector<64x128xbf16>, vector<128x128xbf16>, vector<64x128xf32> -> vector<64x128xf32>
    %51 = arith.addf %44, %50 : vector<64x128xf32>
    %c0_60 = arith.constant 0 : index
    %c0_61 = arith.constant 0 : index
    %c2_62 = arith.constant 2 : index
    %c1_63 = arith.constant 1 : index
    %c0_64 = arith.constant 0 : index
    %52 = vector.load %arg2[%c0_60, %c0_61, %c2_62, %c1_63, %c0_64] : memref<1x1x10x10x128xbf16, #tpu.memory_space<vmem>>, vector<1x1x8x8x128xbf16>
    %53 = vector.shape_cast %52 : vector<1x1x8x8x128xbf16> to vector<8x8x128xbf16>
    %54 = vector.shape_cast %53 : vector<8x8x128xbf16> to vector<64x128xbf16>
    %c7 = arith.constant 7 : index
    %c0_65 = arith.constant 0 : index
    %c0_66 = arith.constant 0 : index
    %55 = vector.load %arg5[%c7, %c0_65, %c0_66] : memref<27x128x128xbf16, #tpu.memory_space<vmem>>, vector<1x128x128xbf16>
    %56 = vector.shape_cast %55 : vector<1x128x128xbf16> to vector<128x128xbf16>
    %cst_67 = arith.constant dense<0.000000e+00> : vector<64x128xf32>
    %57 = tpu.matmul %54, %56, %cst_67 {dimension_numbers = #tpu.dot_dimension_numbers<[1], [0], [0], [1], [0, 0, 1, 1], [], []>} : vector<64x128xbf16>, vector<128x128xbf16>, vector<64x128xf32> -> vector<64x128xf32>
    %58 = arith.addf %51, %57 : vector<64x128xf32>
    %c0_68 = arith.constant 0 : index
    %c0_69 = arith.constant 0 : index
    %c2_70 = arith.constant 2 : index
    %c2_71 = arith.constant 2 : index
    %c0_72 = arith.constant 0 : index
    %59 = vector.load %arg2[%c0_68, %c0_69, %c2_70, %c2_71, %c0_72] : memref<1x1x10x10x128xbf16, #tpu.memory_space<vmem>>, vector<1x1x8x8x128xbf16>
    %60 = vector.shape_cast %59 : vector<1x1x8x8x128xbf16> to vector<8x8x128xbf16>
    %61 = vector.shape_cast %60 : vector<8x8x128xbf16> to vector<64x128xbf16>
    %c8 = arith.constant 8 : index
    %c0_73 = arith.constant 0 : index
    %c0_74 = arith.constant 0 : index
    %62 = vector.load %arg5[%c8, %c0_73, %c0_74] : memref<27x128x128xbf16, #tpu.memory_space<vmem>>, vector<1x128x128xbf16>
    %63 = vector.shape_cast %62 : vector<1x128x128xbf16> to vector<128x128xbf16>
    %cst_75 = arith.constant dense<0.000000e+00> : vector<64x128xf32>
    %64 = tpu.matmul %61, %63, %cst_75 {dimension_numbers = #tpu.dot_dimension_numbers<[1], [0], [0], [1], [0, 0, 1, 1], [], []>} : vector<64x128xbf16>, vector<128x128xbf16>, vector<64x128xf32> -> vector<64x128xf32>
    %65 = arith.addf %58, %64 : vector<64x128xf32>
    %c0_76 = arith.constant 0 : index
    %c0_77 = arith.constant 0 : index
    %c0_78 = arith.constant 0 : index
    %c0_79 = arith.constant 0 : index
    %c0_80 = arith.constant 0 : index
    %66 = vector.load %arg3[%c0_76, %c0_77, %c0_78, %c0_79, %c0_80] : memref<1x1x10x10x128xbf16, #tpu.memory_space<vmem>>, vector<1x1x8x8x128xbf16>
    %67 = vector.shape_cast %66 : vector<1x1x8x8x128xbf16> to vector<8x8x128xbf16>
    %68 = vector.shape_cast %67 : vector<8x8x128xbf16> to vector<64x128xbf16>
    %c9 = arith.constant 9 : index
    %c0_81 = arith.constant 0 : index
    %c0_82 = arith.constant 0 : index
    %69 = vector.load %arg5[%c9, %c0_81, %c0_82] : memref<27x128x128xbf16, #tpu.memory_space<vmem>>, vector<1x128x128xbf16>
    %70 = vector.shape_cast %69 : vector<1x128x128xbf16> to vector<128x128xbf16>
    %cst_83 = arith.constant dense<0.000000e+00> : vector<64x128xf32>
    %71 = tpu.matmul %68, %70, %cst_83 {dimension_numbers = #tpu.dot_dimension_numbers<[1], [0], [0], [1], [0, 0, 1, 1], [], []>} : vector<64x128xbf16>, vector<128x128xbf16>, vector<64x128xf32> -> vector<64x128xf32>
    %72 = arith.addf %65, %71 : vector<64x128xf32>
    %c0_84 = arith.constant 0 : index
    %c0_85 = arith.constant 0 : index
    %c0_86 = arith.constant 0 : index
    %c1_87 = arith.constant 1 : index
    %c0_88 = arith.constant 0 : index
    %73 = vector.load %arg3[%c0_84, %c0_85, %c0_86, %c1_87, %c0_88] : memref<1x1x10x10x128xbf16, #tpu.memory_space<vmem>>, vector<1x1x8x8x128xbf16>
    %74 = vector.shape_cast %73 : vector<1x1x8x8x128xbf16> to vector<8x8x128xbf16>
    %75 = vector.shape_cast %74 : vector<8x8x128xbf16> to vector<64x128xbf16>
    %c10 = arith.constant 10 : index
    %c0_89 = arith.constant 0 : index
    %c0_90 = arith.constant 0 : index
    %76 = vector.load %arg5[%c10, %c0_89, %c0_90] : memref<27x128x128xbf16, #tpu.memory_space<vmem>>, vector<1x128x128xbf16>
    %77 = vector.shape_cast %76 : vector<1x128x128xbf16> to vector<128x128xbf16>
    %cst_91 = arith.constant dense<0.000000e+00> : vector<64x128xf32>
    %78 = tpu.matmul %75, %77, %cst_91 {dimension_numbers = #tpu.dot_dimension_numbers<[1], [0], [0], [1], [0, 0, 1, 1], [], []>} : vector<64x128xbf16>, vector<128x128xbf16>, vector<64x128xf32> -> vector<64x128xf32>
    %79 = arith.addf %72, %78 : vector<64x128xf32>
    %c0_92 = arith.constant 0 : index
    %c0_93 = arith.constant 0 : index
    %c0_94 = arith.constant 0 : index
    %c2_95 = arith.constant 2 : index
    %c0_96 = arith.constant 0 : index
    %80 = vector.load %arg3[%c0_92, %c0_93, %c0_94, %c2_95, %c0_96] : memref<1x1x10x10x128xbf16, #tpu.memory_space<vmem>>, vector<1x1x8x8x128xbf16>
    %81 = vector.shape_cast %80 : vector<1x1x8x8x128xbf16> to vector<8x8x128xbf16>
    %82 = vector.shape_cast %81 : vector<8x8x128xbf16> to vector<64x128xbf16>
    %c11 = arith.constant 11 : index
    %c0_97 = arith.constant 0 : index
    %c0_98 = arith.constant 0 : index
    %83 = vector.load %arg5[%c11, %c0_97, %c0_98] : memref<27x128x128xbf16, #tpu.memory_space<vmem>>, vector<1x128x128xbf16>
    %84 = vector.shape_cast %83 : vector<1x128x128xbf16> to vector<128x128xbf16>
    %cst_99 = arith.constant dense<0.000000e+00> : vector<64x128xf32>
    %85 = tpu.matmul %82, %84, %cst_99 {dimension_numbers = #tpu.dot_dimension_numbers<[1], [0], [0], [1], [0, 0, 1, 1], [], []>} : vector<64x128xbf16>, vector<128x128xbf16>, vector<64x128xf32> -> vector<64x128xf32>
    %86 = arith.addf %79, %85 : vector<64x128xf32>
    %c0_100 = arith.constant 0 : index
    %c0_101 = arith.constant 0 : index
    %c1_102 = arith.constant 1 : index
    %c0_103 = arith.constant 0 : index
    %c0_104 = arith.constant 0 : index
    %87 = vector.load %arg3[%c0_100, %c0_101, %c1_102, %c0_103, %c0_104] : memref<1x1x10x10x128xbf16, #tpu.memory_space<vmem>>, vector<1x1x8x8x128xbf16>
    %88 = vector.shape_cast %87 : vector<1x1x8x8x128xbf16> to vector<8x8x128xbf16>
    %89 = vector.shape_cast %88 : vector<8x8x128xbf16> to vector<64x128xbf16>
    %c12 = arith.constant 12 : index
    %c0_105 = arith.constant 0 : index
    %c0_106 = arith.constant 0 : index
    %90 = vector.load %arg5[%c12, %c0_105, %c0_106] : memref<27x128x128xbf16, #tpu.memory_space<vmem>>, vector<1x128x128xbf16>
    %91 = vector.shape_cast %90 : vector<1x128x128xbf16> to vector<128x128xbf16>
    %cst_107 = arith.constant dense<0.000000e+00> : vector<64x128xf32>
    %92 = tpu.matmul %89, %91, %cst_107 {dimension_numbers = #tpu.dot_dimension_numbers<[1], [0], [0], [1], [0, 0, 1, 1], [], []>} : vector<64x128xbf16>, vector<128x128xbf16>, vector<64x128xf32> -> vector<64x128xf32>
    %93 = arith.addf %86, %92 : vector<64x128xf32>
    %c0_108 = arith.constant 0 : index
    %c0_109 = arith.constant 0 : index
    %c1_110 = arith.constant 1 : index
    %c1_111 = arith.constant 1 : index
    %c0_112 = arith.constant 0 : index
    %94 = vector.load %arg3[%c0_108, %c0_109, %c1_110, %c1_111, %c0_112] : memref<1x1x10x10x128xbf16, #tpu.memory_space<vmem>>, vector<1x1x8x8x128xbf16>
    %95 = vector.shape_cast %94 : vector<1x1x8x8x128xbf16> to vector<8x8x128xbf16>
    %96 = vector.shape_cast %95 : vector<8x8x128xbf16> to vector<64x128xbf16>
    %c13 = arith.constant 13 : index
    %c0_113 = arith.constant 0 : index
    %c0_114 = arith.constant 0 : index
    %97 = vector.load %arg5[%c13, %c0_113, %c0_114] : memref<27x128x128xbf16, #tpu.memory_space<vmem>>, vector<1x128x128xbf16>
    %98 = vector.shape_cast %97 : vector<1x128x128xbf16> to vector<128x128xbf16>
    %cst_115 = arith.constant dense<0.000000e+00> : vector<64x128xf32>
    %99 = tpu.matmul %96, %98, %cst_115 {dimension_numbers = #tpu.dot_dimension_numbers<[1], [0], [0], [1], [0, 0, 1, 1], [], []>} : vector<64x128xbf16>, vector<128x128xbf16>, vector<64x128xf32> -> vector<64x128xf32>
    %100 = arith.addf %93, %99 : vector<64x128xf32>
    %c0_116 = arith.constant 0 : index
    %c0_117 = arith.constant 0 : index
    %c1_118 = arith.constant 1 : index
    %c2_119 = arith.constant 2 : index
    %c0_120 = arith.constant 0 : index
    %101 = vector.load %arg3[%c0_116, %c0_117, %c1_118, %c2_119, %c0_120] : memref<1x1x10x10x128xbf16, #tpu.memory_space<vmem>>, vector<1x1x8x8x128xbf16>
    %102 = vector.shape_cast %101 : vector<1x1x8x8x128xbf16> to vector<8x8x128xbf16>
    %103 = vector.shape_cast %102 : vector<8x8x128xbf16> to vector<64x128xbf16>
    %c14 = arith.constant 14 : index
    %c0_121 = arith.constant 0 : index
    %c0_122 = arith.constant 0 : index
    %104 = vector.load %arg5[%c14, %c0_121, %c0_122] : memref<27x128x128xbf16, #tpu.memory_space<vmem>>, vector<1x128x128xbf16>
    %105 = vector.shape_cast %104 : vector<1x128x128xbf16> to vector<128x128xbf16>
    %cst_123 = arith.constant dense<0.000000e+00> : vector<64x128xf32>
    %106 = tpu.matmul %103, %105, %cst_123 {dimension_numbers = #tpu.dot_dimension_numbers<[1], [0], [0], [1], [0, 0, 1, 1], [], []>} : vector<64x128xbf16>, vector<128x128xbf16>, vector<64x128xf32> -> vector<64x128xf32>
    %107 = arith.addf %100, %106 : vector<64x128xf32>
    %c0_124 = arith.constant 0 : index
    %c0_125 = arith.constant 0 : index
    %c2_126 = arith.constant 2 : index
    %c0_127 = arith.constant 0 : index
    %c0_128 = arith.constant 0 : index
    %108 = vector.load %arg3[%c0_124, %c0_125, %c2_126, %c0_127, %c0_128] : memref<1x1x10x10x128xbf16, #tpu.memory_space<vmem>>, vector<1x1x8x8x128xbf16>
    %109 = vector.shape_cast %108 : vector<1x1x8x8x128xbf16> to vector<8x8x128xbf16>
    %110 = vector.shape_cast %109 : vector<8x8x128xbf16> to vector<64x128xbf16>
    %c15 = arith.constant 15 : index
    %c0_129 = arith.constant 0 : index
    %c0_130 = arith.constant 0 : index
    %111 = vector.load %arg5[%c15, %c0_129, %c0_130] : memref<27x128x128xbf16, #tpu.memory_space<vmem>>, vector<1x128x128xbf16>
    %112 = vector.shape_cast %111 : vector<1x128x128xbf16> to vector<128x128xbf16>
    %cst_131 = arith.constant dense<0.000000e+00> : vector<64x128xf32>
    %113 = tpu.matmul %110, %112, %cst_131 {dimension_numbers = #tpu.dot_dimension_numbers<[1], [0], [0], [1], [0, 0, 1, 1], [], []>} : vector<64x128xbf16>, vector<128x128xbf16>, vector<64x128xf32> -> vector<64x128xf32>
    %114 = arith.addf %107, %113 : vector<64x128xf32>
    %c0_132 = arith.constant 0 : index
    %c0_133 = arith.constant 0 : index
    %c2_134 = arith.constant 2 : index
    %c1_135 = arith.constant 1 : index
    %c0_136 = arith.constant 0 : index
    %115 = vector.load %arg3[%c0_132, %c0_133, %c2_134, %c1_135, %c0_136] : memref<1x1x10x10x128xbf16, #tpu.memory_space<vmem>>, vector<1x1x8x8x128xbf16>
    %116 = vector.shape_cast %115 : vector<1x1x8x8x128xbf16> to vector<8x8x128xbf16>
    %117 = vector.shape_cast %116 : vector<8x8x128xbf16> to vector<64x128xbf16>
    %c16 = arith.constant 16 : index
    %c0_137 = arith.constant 0 : index
    %c0_138 = arith.constant 0 : index
    %118 = vector.load %arg5[%c16, %c0_137, %c0_138] : memref<27x128x128xbf16, #tpu.memory_space<vmem>>, vector<1x128x128xbf16>
    %119 = vector.shape_cast %118 : vector<1x128x128xbf16> to vector<128x128xbf16>
    %cst_139 = arith.constant dense<0.000000e+00> : vector<64x128xf32>
    %120 = tpu.matmul %117, %119, %cst_139 {dimension_numbers = #tpu.dot_dimension_numbers<[1], [0], [0], [1], [0, 0, 1, 1], [], []>} : vector<64x128xbf16>, vector<128x128xbf16>, vector<64x128xf32> -> vector<64x128xf32>
    %121 = arith.addf %114, %120 : vector<64x128xf32>
    %c0_140 = arith.constant 0 : index
    %c0_141 = arith.constant 0 : index
    %c2_142 = arith.constant 2 : index
    %c2_143 = arith.constant 2 : index
    %c0_144 = arith.constant 0 : index
    %122 = vector.load %arg3[%c0_140, %c0_141, %c2_142, %c2_143, %c0_144] : memref<1x1x10x10x128xbf16, #tpu.memory_space<vmem>>, vector<1x1x8x8x128xbf16>
    %123 = vector.shape_cast %122 : vector<1x1x8x8x128xbf16> to vector<8x8x128xbf16>
    %124 = vector.shape_cast %123 : vector<8x8x128xbf16> to vector<64x128xbf16>
    %c17 = arith.constant 17 : index
    %c0_145 = arith.constant 0 : index
    %c0_146 = arith.constant 0 : index
    %125 = vector.load %arg5[%c17, %c0_145, %c0_146] : memref<27x128x128xbf16, #tpu.memory_space<vmem>>, vector<1x128x128xbf16>
    %126 = vector.shape_cast %125 : vector<1x128x128xbf16> to vector<128x128xbf16>
    %cst_147 = arith.constant dense<0.000000e+00> : vector<64x128xf32>
    %127 = tpu.matmul %124, %126, %cst_147 {dimension_numbers = #tpu.dot_dimension_numbers<[1], [0], [0], [1], [0, 0, 1, 1], [], []>} : vector<64x128xbf16>, vector<128x128xbf16>, vector<64x128xf32> -> vector<64x128xf32>
    %128 = arith.addf %121, %127 : vector<64x128xf32>
    %c0_148 = arith.constant 0 : index
    %c0_149 = arith.constant 0 : index
    %c0_150 = arith.constant 0 : index
    %c0_151 = arith.constant 0 : index
    %c0_152 = arith.constant 0 : index
    %129 = vector.load %arg4[%c0_148, %c0_149, %c0_150, %c0_151, %c0_152] : memref<1x1x10x10x128xbf16, #tpu.memory_space<vmem>>, vector<1x1x8x8x128xbf16>
    %130 = vector.shape_cast %129 : vector<1x1x8x8x128xbf16> to vector<8x8x128xbf16>
    %131 = vector.shape_cast %130 : vector<8x8x128xbf16> to vector<64x128xbf16>
    %c18 = arith.constant 18 : index
    %c0_153 = arith.constant 0 : index
    %c0_154 = arith.constant 0 : index
    %132 = vector.load %arg5[%c18, %c0_153, %c0_154] : memref<27x128x128xbf16, #tpu.memory_space<vmem>>, vector<1x128x128xbf16>
    %133 = vector.shape_cast %132 : vector<1x128x128xbf16> to vector<128x128xbf16>
    %cst_155 = arith.constant dense<0.000000e+00> : vector<64x128xf32>
    %134 = tpu.matmul %131, %133, %cst_155 {dimension_numbers = #tpu.dot_dimension_numbers<[1], [0], [0], [1], [0, 0, 1, 1], [], []>} : vector<64x128xbf16>, vector<128x128xbf16>, vector<64x128xf32> -> vector<64x128xf32>
    %135 = arith.addf %128, %134 : vector<64x128xf32>
    %c0_156 = arith.constant 0 : index
    %c0_157 = arith.constant 0 : index
    %c0_158 = arith.constant 0 : index
    %c1_159 = arith.constant 1 : index
    %c0_160 = arith.constant 0 : index
    %136 = vector.load %arg4[%c0_156, %c0_157, %c0_158, %c1_159, %c0_160] : memref<1x1x10x10x128xbf16, #tpu.memory_space<vmem>>, vector<1x1x8x8x128xbf16>
    %137 = vector.shape_cast %136 : vector<1x1x8x8x128xbf16> to vector<8x8x128xbf16>
    %138 = vector.shape_cast %137 : vector<8x8x128xbf16> to vector<64x128xbf16>
    %c19 = arith.constant 19 : index
    %c0_161 = arith.constant 0 : index
    %c0_162 = arith.constant 0 : index
    %139 = vector.load %arg5[%c19, %c0_161, %c0_162] : memref<27x128x128xbf16, #tpu.memory_space<vmem>>, vector<1x128x128xbf16>
    %140 = vector.shape_cast %139 : vector<1x128x128xbf16> to vector<128x128xbf16>
    %cst_163 = arith.constant dense<0.000000e+00> : vector<64x128xf32>
    %141 = tpu.matmul %138, %140, %cst_163 {dimension_numbers = #tpu.dot_dimension_numbers<[1], [0], [0], [1], [0, 0, 1, 1], [], []>} : vector<64x128xbf16>, vector<128x128xbf16>, vector<64x128xf32> -> vector<64x128xf32>
    %142 = arith.addf %135, %141 : vector<64x128xf32>
    %c0_164 = arith.constant 0 : index
    %c0_165 = arith.constant 0 : index
    %c0_166 = arith.constant 0 : index
    %c2_167 = arith.constant 2 : index
    %c0_168 = arith.constant 0 : index
    %143 = vector.load %arg4[%c0_164, %c0_165, %c0_166, %c2_167, %c0_168] : memref<1x1x10x10x128xbf16, #tpu.memory_space<vmem>>, vector<1x1x8x8x128xbf16>
    %144 = vector.shape_cast %143 : vector<1x1x8x8x128xbf16> to vector<8x8x128xbf16>
    %145 = vector.shape_cast %144 : vector<8x8x128xbf16> to vector<64x128xbf16>
    %c20 = arith.constant 20 : index
    %c0_169 = arith.constant 0 : index
    %c0_170 = arith.constant 0 : index
    %146 = vector.load %arg5[%c20, %c0_169, %c0_170] : memref<27x128x128xbf16, #tpu.memory_space<vmem>>, vector<1x128x128xbf16>
    %147 = vector.shape_cast %146 : vector<1x128x128xbf16> to vector<128x128xbf16>
    %cst_171 = arith.constant dense<0.000000e+00> : vector<64x128xf32>
    %148 = tpu.matmul %145, %147, %cst_171 {dimension_numbers = #tpu.dot_dimension_numbers<[1], [0], [0], [1], [0, 0, 1, 1], [], []>} : vector<64x128xbf16>, vector<128x128xbf16>, vector<64x128xf32> -> vector<64x128xf32>
    %149 = arith.addf %142, %148 : vector<64x128xf32>
    %c0_172 = arith.constant 0 : index
    %c0_173 = arith.constant 0 : index
    %c1_174 = arith.constant 1 : index
    %c0_175 = arith.constant 0 : index
    %c0_176 = arith.constant 0 : index
    %150 = vector.load %arg4[%c0_172, %c0_173, %c1_174, %c0_175, %c0_176] : memref<1x1x10x10x128xbf16, #tpu.memory_space<vmem>>, vector<1x1x8x8x128xbf16>
    %151 = vector.shape_cast %150 : vector<1x1x8x8x128xbf16> to vector<8x8x128xbf16>
    %152 = vector.shape_cast %151 : vector<8x8x128xbf16> to vector<64x128xbf16>
    %c21 = arith.constant 21 : index
    %c0_177 = arith.constant 0 : index
    %c0_178 = arith.constant 0 : index
    %153 = vector.load %arg5[%c21, %c0_177, %c0_178] : memref<27x128x128xbf16, #tpu.memory_space<vmem>>, vector<1x128x128xbf16>
    %154 = vector.shape_cast %153 : vector<1x128x128xbf16> to vector<128x128xbf16>
    %cst_179 = arith.constant dense<0.000000e+00> : vector<64x128xf32>
    %155 = tpu.matmul %152, %154, %cst_179 {dimension_numbers = #tpu.dot_dimension_numbers<[1], [0], [0], [1], [0, 0, 1, 1], [], []>} : vector<64x128xbf16>, vector<128x128xbf16>, vector<64x128xf32> -> vector<64x128xf32>
    %156 = arith.addf %149, %155 : vector<64x128xf32>
    %c0_180 = arith.constant 0 : index
    %c0_181 = arith.constant 0 : index
    %c1_182 = arith.constant 1 : index
    %c1_183 = arith.constant 1 : index
    %c0_184 = arith.constant 0 : index
    %157 = vector.load %arg4[%c0_180, %c0_181, %c1_182, %c1_183, %c0_184] : memref<1x1x10x10x128xbf16, #tpu.memory_space<vmem>>, vector<1x1x8x8x128xbf16>
    %158 = vector.shape_cast %157 : vector<1x1x8x8x128xbf16> to vector<8x8x128xbf16>
    %159 = vector.shape_cast %158 : vector<8x8x128xbf16> to vector<64x128xbf16>
    %c22 = arith.constant 22 : index
    %c0_185 = arith.constant 0 : index
    %c0_186 = arith.constant 0 : index
    %160 = vector.load %arg5[%c22, %c0_185, %c0_186] : memref<27x128x128xbf16, #tpu.memory_space<vmem>>, vector<1x128x128xbf16>
    %161 = vector.shape_cast %160 : vector<1x128x128xbf16> to vector<128x128xbf16>
    %cst_187 = arith.constant dense<0.000000e+00> : vector<64x128xf32>
    %162 = tpu.matmul %159, %161, %cst_187 {dimension_numbers = #tpu.dot_dimension_numbers<[1], [0], [0], [1], [0, 0, 1, 1], [], []>} : vector<64x128xbf16>, vector<128x128xbf16>, vector<64x128xf32> -> vector<64x128xf32>
    %163 = arith.addf %156, %162 : vector<64x128xf32>
    %c0_188 = arith.constant 0 : index
    %c0_189 = arith.constant 0 : index
    %c1_190 = arith.constant 1 : index
    %c2_191 = arith.constant 2 : index
    %c0_192 = arith.constant 0 : index
    %164 = vector.load %arg4[%c0_188, %c0_189, %c1_190, %c2_191, %c0_192] : memref<1x1x10x10x128xbf16, #tpu.memory_space<vmem>>, vector<1x1x8x8x128xbf16>
    %165 = vector.shape_cast %164 : vector<1x1x8x8x128xbf16> to vector<8x8x128xbf16>
    %166 = vector.shape_cast %165 : vector<8x8x128xbf16> to vector<64x128xbf16>
    %c23 = arith.constant 23 : index
    %c0_193 = arith.constant 0 : index
    %c0_194 = arith.constant 0 : index
    %167 = vector.load %arg5[%c23, %c0_193, %c0_194] : memref<27x128x128xbf16, #tpu.memory_space<vmem>>, vector<1x128x128xbf16>
    %168 = vector.shape_cast %167 : vector<1x128x128xbf16> to vector<128x128xbf16>
    %cst_195 = arith.constant dense<0.000000e+00> : vector<64x128xf32>
    %169 = tpu.matmul %166, %168, %cst_195 {dimension_numbers = #tpu.dot_dimension_numbers<[1], [0], [0], [1], [0, 0, 1, 1], [], []>} : vector<64x128xbf16>, vector<128x128xbf16>, vector<64x128xf32> -> vector<64x128xf32>
    %170 = arith.addf %163, %169 : vector<64x128xf32>
    %c0_196 = arith.constant 0 : index
    %c0_197 = arith.constant 0 : index
    %c2_198 = arith.constant 2 : index
    %c0_199 = arith.constant 0 : index
    %c0_200 = arith.constant 0 : index
    %171 = vector.load %arg4[%c0_196, %c0_197, %c2_198, %c0_199, %c0_200] : memref<1x1x10x10x128xbf16, #tpu.memory_space<vmem>>, vector<1x1x8x8x128xbf16>
    %172 = vector.shape_cast %171 : vector<1x1x8x8x128xbf16> to vector<8x8x128xbf16>
    %173 = vector.shape_cast %172 : vector<8x8x128xbf16> to vector<64x128xbf16>
    %c24 = arith.constant 24 : index
    %c0_201 = arith.constant 0 : index
    %c0_202 = arith.constant 0 : index
    %174 = vector.load %arg5[%c24, %c0_201, %c0_202] : memref<27x128x128xbf16, #tpu.memory_space<vmem>>, vector<1x128x128xbf16>
    %175 = vector.shape_cast %174 : vector<1x128x128xbf16> to vector<128x128xbf16>
    %cst_203 = arith.constant dense<0.000000e+00> : vector<64x128xf32>
    %176 = tpu.matmul %173, %175, %cst_203 {dimension_numbers = #tpu.dot_dimension_numbers<[1], [0], [0], [1], [0, 0, 1, 1], [], []>} : vector<64x128xbf16>, vector<128x128xbf16>, vector<64x128xf32> -> vector<64x128xf32>
    %177 = arith.addf %170, %176 : vector<64x128xf32>
    %c0_204 = arith.constant 0 : index
    %c0_205 = arith.constant 0 : index
    %c2_206 = arith.constant 2 : index
    %c1_207 = arith.constant 1 : index
    %c0_208 = arith.constant 0 : index
    %178 = vector.load %arg4[%c0_204, %c0_205, %c2_206, %c1_207, %c0_208] : memref<1x1x10x10x128xbf16, #tpu.memory_space<vmem>>, vector<1x1x8x8x128xbf16>
    %179 = vector.shape_cast %178 : vector<1x1x8x8x128xbf16> to vector<8x8x128xbf16>
    %180 = vector.shape_cast %179 : vector<8x8x128xbf16> to vector<64x128xbf16>
    %c25 = arith.constant 25 : index
    %c0_209 = arith.constant 0 : index
    %c0_210 = arith.constant 0 : index
    %181 = vector.load %arg5[%c25, %c0_209, %c0_210] : memref<27x128x128xbf16, #tpu.memory_space<vmem>>, vector<1x128x128xbf16>
    %182 = vector.shape_cast %181 : vector<1x128x128xbf16> to vector<128x128xbf16>
    %cst_211 = arith.constant dense<0.000000e+00> : vector<64x128xf32>
    %183 = tpu.matmul %180, %182, %cst_211 {dimension_numbers = #tpu.dot_dimension_numbers<[1], [0], [0], [1], [0, 0, 1, 1], [], []>} : vector<64x128xbf16>, vector<128x128xbf16>, vector<64x128xf32> -> vector<64x128xf32>
    %184 = arith.addf %177, %183 : vector<64x128xf32>
    %c0_212 = arith.constant 0 : index
    %c0_213 = arith.constant 0 : index
    %c2_214 = arith.constant 2 : index
    %c2_215 = arith.constant 2 : index
    %c0_216 = arith.constant 0 : index
    %185 = vector.load %arg4[%c0_212, %c0_213, %c2_214, %c2_215, %c0_216] : memref<1x1x10x10x128xbf16, #tpu.memory_space<vmem>>, vector<1x1x8x8x128xbf16>
    %186 = vector.shape_cast %185 : vector<1x1x8x8x128xbf16> to vector<8x8x128xbf16>
    %187 = vector.shape_cast %186 : vector<8x8x128xbf16> to vector<64x128xbf16>
    %c26 = arith.constant 26 : index
    %c0_217 = arith.constant 0 : index
    %c0_218 = arith.constant 0 : index
    %188 = vector.load %arg5[%c26, %c0_217, %c0_218] : memref<27x128x128xbf16, #tpu.memory_space<vmem>>, vector<1x128x128xbf16>
    %189 = vector.shape_cast %188 : vector<1x128x128xbf16> to vector<128x128xbf16>
    %cst_219 = arith.constant dense<0.000000e+00> : vector<64x128xf32>
    %190 = tpu.matmul %187, %189, %cst_219 {dimension_numbers = #tpu.dot_dimension_numbers<[1], [0], [0], [1], [0, 0, 1, 1], [], []>} : vector<64x128xbf16>, vector<128x128xbf16>, vector<64x128xf32> -> vector<64x128xf32>
    %191 = arith.addf %184, %190 : vector<64x128xf32>
    %192 = vector.broadcast %0 : vector<1x128xf32> to vector<64x128xf32>
    %193 = arith.mulf %191, %192 : vector<64x128xf32>
    %194 = vector.broadcast %1 : vector<1x128xf32> to vector<64x128xf32>
    %195 = arith.addf %193, %194 : vector<64x128xf32>
    %cst_220 = arith.constant 0.000000e+00 : f32
    %196 = vector.broadcast %cst_220 : f32 to vector<64x128xf32>
    %197 = arith.maximumf %195, %196 : vector<64x128xf32>
    %198 = vector.shape_cast %197 : vector<64x128xf32> to vector<8x8x128xf32>
    %c0_221 = arith.constant 0 : index
    %c0_222 = arith.constant 0 : index
    %c0_223 = arith.constant 0 : index
    %c0_224 = arith.constant 0 : index
    %c0_225 = arith.constant 0 : index
    %199 = vector.load %arg8[%c0_221, %c0_222, %c0_223, %c0_224, %c0_225] : memref<1x1x8x8x128xf32, #tpu.memory_space<vmem>>, vector<1x1x8x8x128xf32>
    %200 = vector.shape_cast %199 : vector<1x1x8x8x128xf32> to vector<8x8x128xf32>
    %201 = vector.shape_cast %198 : vector<8x8x128xf32> to vector<1x1x8x8x128xf32>
    tpu.vector_store %arg8[%c0_221, %c0_222, %c0_223, %c0_224, %c0_225], %201 {strides = array<i32>} : memref<1x1x8x8x128xf32, #tpu.memory_space<vmem>>, vector<1x1x8x8x128xf32>,
    return
  }
  func.func @transform_0(%arg0: i32, %arg1: i32) -> (i32, i32, i32, i32, i32) {
    %c0_i32 = arith.constant 0 : i32
    %c0_i32_0 = arith.constant 0 : i32
    %c0_i32_1 = arith.constant 0 : i32
    %c0_i32_2 = arith.constant 0 : i32
    return %arg0, %arg1, %c0_i32, %c0_i32_0, %c0_i32_1 : i32, i32, i32, i32, i32
  }
  func.func @transform_1(%arg0: i32, %arg1: i32) -> (i32, i32, i32, i32, i32) {
    %c1_i32 = arith.constant 1 : i32
    %0 = arith.addi %arg1, %c1_i32 : i32
    %c0_i32 = arith.constant 0 : i32
    %c0_i32_0 = arith.constant 0 : i32
    %c0_i32_1 = arith.constant 0 : i32
    %c0_i32_2 = arith.constant 0 : i32
    return %arg0, %0, %c0_i32, %c0_i32_0, %c0_i32_1 : i32, i32, i32, i32, i32
  }
  func.func @transform_2(%arg0: i32, %arg1: i32) -> (i32, i32, i32, i32, i32) {
    %c2_i32 = arith.constant 2 : i32
    %0 = arith.addi %arg1, %c2_i32 : i32
    %c0_i32 = arith.constant 0 : i32
    %c0_i32_0 = arith.constant 0 : i32
    %c0_i32_1 = arith.constant 0 : i32
    %c0_i32_2 = arith.constant 0 : i32
    return %arg0, %0, %c0_i32, %c0_i32_0, %c0_i32_1 : i32, i32, i32, i32, i32
  }
  func.func @transform_3(%arg0: i32, %arg1: i32) -> (i32, i32, i32) {
    %c0_i32 = arith.constant 0 : i32
    %c0_i32_0 = arith.constant 0 : i32
    %c0_i32_1 = arith.constant 0 : i32
    %c0_i32_2 = arith.constant 0 : i32
    return %c0_i32, %c0_i32_0, %c0_i32_1 : i32, i32, i32
  }
  func.func @transform_4(%arg0: i32, %arg1: i32) -> (i32, i32) {
    %c0_i32 = arith.constant 0 : i32
    %c0_i32_0 = arith.constant 0 : i32
    %c0_i32_1 = arith.constant 0 : i32
    return %c0_i32, %c0_i32_0 : i32, i32
  }
  func.func @transform_5(%arg0: i32, %arg1: i32) -> (i32, i32) {
    %c0_i32 = arith.constant 0 : i32
    %c0_i32_0 = arith.constant 0 : i32
    %c0_i32_1 = arith.constant 0 : i32
    return %c0_i32, %c0_i32_0 : i32, i32
  }
  func.func @transform_6(%arg0: i32, %arg1: i32) -> (i32, i32, i32, i32, i32) {
    %c0_i32 = arith.constant 0 : i32
    %c0_i32_0 = arith.constant 0 : i32
    %c0_i32_1 = arith.constant 0 : i32
    %c0_i32_2 = arith.constant 0 : i32
    return %arg0, %arg1, %c0_i32, %c0_i32_0, %c0_i32_1 : i32, i32, i32, i32, i32
  }
}

</mosaic_0001>

<bundles_post_ra>
// kernel: tpu_custom_call.1
= control target key start
LH: loop header
LB: loop body
LE: loop exit
PB: predicated region body
PF: predicated region fallthrough
CT: control target
= control target key end

     0   :  { %11 = vsyncpa [#allocation3], 0  ;;  %s10976_s0 = inlined_call_operand.vmem [shape: bf16[2,10,10,10,128], index: 0, kind: input, shape index: {}]   ;;  %s10977_s1 = inlined_call_operand.vmem [shape: bf16[2,10,10,10,128], index: 1, kind: input, shape index: {}]   ;;  %s10978_s2 = inlined_call_operand.vmem [shape: bf16[2,10,10,10,128], index: 2, kind: input, shape index: {}]   ;;  %s10979_s3 = inlined_call_operand.vmem [shape: bf16[27,128,128], index: 3, kind: input, shape index: {}]   ;;  %s10980_s4 = inlined_call_operand.vmem [shape: f32[1,128], index: 4, kind: input, shape index: {}]   ;;  %s10981_s5 = inlined_call_operand.vmem [shape: f32[1,128], index: 5, kind: input, shape index: {}]   ;;  %s10982_s6 = inlined_call_operand.hbm [shape: f32[2,8,8,8,128], index: 6, kind: output, shape index: {}]  }
   0x1   :  { %13 = vsyncpa [#allocation3 + $0x1], 0  ;;  %s9175_s21 = smov 0   ;;  %s9177_s22 = smov 0  }
   0x2   :  { %s9179_s23 = smov 0   ;;  %s9181_s24 = smov 0  }
   0x3   :  { %s9183_s25 = smov 0   ;;  %s9185_s26 = smov 0  }
   0x4   :  { %s9187_s27 = smov 0   ;;  %s9189_s28 = smov 0  }
   0x5 LB: > { %s6495_s29 = sadd.s32 4294967295, %s9135_s28   ;;  %s6496_s30 = sadd.s32 4294967294, %s9135_s28   ;;  %s9135_s28 = sphi %s9189_s28, %s19_s28   ;;  %s9131_s27 = sphi %s9187_s27, %s11002_s27   ;;  %s9127_s26 = sphi %s9185_s26, %s11001_s26   ;;  %s9123_s25 = sphi %s9183_s25, %s11000_s25   ;;  %s9119_s24 = sphi %s9181_s24, %s10999_s24   ;;  %s9115_s23 = sphi %s9179_s23, %s10998_s23   ;;  %s9111_s22 = sphi %s9177_s22, %s10997_s22   ;;  %s9107_s21 = sphi %s9175_s21, %s10996_s21  }
   0x6   : > { %s28_s7 = sadd.s32 1, %s9127_s26  ;;  %s31_s8 = sadd.s32 1, %s9131_s27 }
   0x7   : > { %p29_p0 = scmp.ge.s32.totalorder %s28_s7, 8  ;;  %p201_p1 = scmp.ne.s32.totalorder %s9115_s23, %s9111_s22 }
   0x8   : > { %p202_p2 = scmp.eq.s32.totalorder %s6495_s29, 15  ;;  %p207_p5 = scmp.ne.s32.totalorder %s9111_s22, %s9107_s21 }
   0x9   : > { %s11004_s7 = smov (%p29_p0, %s28_s7), 0  ;;  %s11006_s8 = smov (!%p29_p0, %s31_s8), %s9131_s27 }
   0xa   : > { %10985 = sst [smem:[#allocation5_spill]] %s11004_s7  ;;  %s187_s9 = ssub.s32 %s9127_s26, %s11004_s7 }
   0xb   : > { %p9226_p3 = por %p202_p2, %p201_p1  ;;  %p33_p4 = scmp.ge.s32.totalorder %s11006_s8, 2 }
   0xc   : > { %p208_p6 = scmp.eq.s32.totalorder %s6496_s30, 15  ;;  %p6499_p7 = scmp.ge.s32.totalorder %s9135_s28, 1 }
   0xd   : > { %s11008_s8 = smov (%p33_p4, %s11006_s8), 0  ;;  %p275_p9 = scmp.lt.s32.totalorder %s9135_s28, 17 }
   0xe   : > { %10987 = sst [smem:[#allocation6_spill]] %s11008_s8  ;;  %p9235_p8 = por %p208_p6, %p207_p5 }
   0xf   : > { %s186_s12 = ssub.s32 %s9131_s27, %s11008_s8  ;;  %s191_s13 = sadd.s32 1, %s9115_s23 }
  0x10   : > { %s188_s14 = sor.u32 %s187_s9, %s186_s12  ;;  %p276_p10 = pnand %p6499_p7, %p275_p9 }
  0x11   : > { %p189_p11 = scmp.eq.s32.totalorder %s188_s14, 0  ;;  %v8789_v0 = vld [vmem:[%s10979_s3 + $0x40] sm:$0xff] (!%p276_p10)   ;;  %p329_p12 = scmp.lt.s32.totalorder (!%p276_p10), %s9123_s25, 1  ;;  %v8791_v2 = vld [vmem:[%s10979_s3 + $0x48] sm:$0xff] (!%p276_p10)   ;;  %v8793_v4 = vld [vmem:[%s10979_s3 + $0x50] sm:$0xff] (!%p276_p10)   ;;  %vm817_vm3 = vcmask (!%p276_p10), 1042432  }
  0x12   : > { %279 = sbr.rel (%p276_p10) target bundleno = 715 (0x2cb), region = 44  ;;  %v8790_v1 = vld [vmem:[%s10979_s3 + $0x340] sm:$0xff] (!%p276_p10)   ;;  %p331_p13 = scmp.lt.s32.totalorder (!%p276_p10), %s9119_s24, 9  ;;  %7840 = vmatprep.subr.bf16.mxu1 (!%p276_p10), %v8789_v0  ;;  %v8792_v3 = vld [vmem:[%s10979_s3 + $0x348] sm:$0xff] (!%p276_p10)   ;;  %v8794_v5 = vld [vmem:[%s10979_s3 + $0x350] sm:$0xff] (!%p276_p10)   ;;  %vm818_vm4 = vcmask (!%p276_p10), 1046532  }
  0x13   : > { %s9244_s15 = scalar_select %p189_p11, %s9115_s23, %s191_s13  }
  0x14   : > { %8152 = vmatprep.subr.bf16.mxu0 (!%p276_p10), %v8790_v1  ;;  %7841 = vmatpush3.bf16.msra.mxu1 (!%p276_p10), %v8789_v0  ;;  %s338_s29 = sadd.s32 (!%p276_p10), 1, %s9119_s24  ;;  %v8795_v6 = vld [vmem:[%s10979_s3 + $0x58] sm:$0xff] (!%p276_p10)   ;;  %v8797_v8 = vld [vmem:[%s10979_s3 + $0x60] sm:$0xff] (!%p276_p10)   ;;  %v8799_v10 = vld [vmem:[%s10979_s3 + $0x68] sm:$0xff] (!%p276_p10)   ;;  %vm395_vm0 = vsmask.f32 (!%p276_p10), 3328 }
  0x15   : > { %8153 = vmatpush3.bf16.msra.mxu0 (!%p276_p10), %v8790_v1  ;;  %7842 = vmatprep.subr.bf16.mxu1 (!%p276_p10), %v8791_v2  ;;  %p341_p0 = scmp.lt.s32.totalorder (!%p276_p10), %s338_s29, 9  ;;  %v8796_v7 = vld [vmem:[%s10979_s3 + $0x358] sm:$0xff] (!%p276_p10)   ;;  %v8798_v9 = vld [vmem:[%s10979_s3 + $0x360] sm:$0xff] (!%p276_p10)   ;;  %v8800_v13 = vld [vmem:[%s10979_s3 + $0x368] sm:$0xff] (!%p276_p10)   ;;  %vm396_vm1 = vsmask.f32 (!%p276_p10), 7440 }
  0x16   : > { %8154 = vmatprep.subr.bf16.mxu0 (!%p276_p10), %v8792_v3  ;;  %v8801_v16 = vld [vmem:[%s10979_s3 + $0x70] sm:$0xff] (!%p276_p10)   ;;  %v8803_v34 = vld [vmem:[%s10979_s3 + $0x78] sm:$0xff] (!%p276_p10)   ;;  %vm9334_vm2 = vmor (!%p276_p10), %vm395_vm0, %vm396_vm1  ;;  %s7512_s8 = sshll.u32 (!%p276_p10), %s9123_s25, 6 }
  0x17   : > { %v8802_v20 = vld [vmem:[%s10979_s3 + $0x370] sm:$0xff] (!%p276_p10)   ;;  %v8804_v45 = vld [vmem:[%s10979_s3 + $0x378] sm:$0xff] (!%p276_p10)   ;;  %v8805_v60 = vld [vmem:[%s10979_s3] sm:$0xff] (!%p276_p10)  }
  0x18   : > { %7843 = vmatpush3.bf16.msra.mxu1 (!%p276_p10), %v8791_v2  ;;  %v9365_v62 = vld [vmem:[%s10979_s3 + $0x380] sm:$0xff] (!%p276_p10)   ;;  %vm9508_vm5 = vmor (!%p276_p10), %vm817_vm3, %vm818_vm4 }
  0x19   : > { %s330_s30 = scalar_select %p329_p12, %s9123_s25, 1  ;;  %8155 = vmatpush3.bf16.msra.mxu0 %v8792_v3  ;;  %7844 = vmatprep.subr.bf16.mxu1 %v8793_v4  ;;  %v9037_v35 = vld [vmem:[%s10979_s3 + $0x6a0] sm:$0xff]  }
  0x1a   : > { %s332_s13 = scalar_select %p331_p13, %s9119_s24, 9  ;;  %8156 = vmatprep.subr.bf16.mxu0 %v8794_v5 }
  0x1b   : > { %s9265_s17 = smul.u32 200, %s330_s30  ;;  %s11010_s29 = smov (!%p341_p0, %s338_s29), 9 }
  0x1c   : > { %s8712_s20 = smul.u32 20, %s332_s13  ;;  %7845 = vmatpush3.bf16.msra.mxu1 %v8793_v4 }
  0x1d   : > { %8157 = vmatpush3.bf16.msra.mxu0 %v8794_v5  ;;  %7846 = vmatprep.subr.bf16.mxu1 %v8795_v6  ;;  %s8714_s19 = smul.u32 20, %s11010_s29  ;;  %s349_s29 = sadd.s32 2, %s9119_s24 }
  0x1e   : > { %s335_s9 = sadd.s32 %s9265_s17, %s8712_s20  ;;  %8158 = vmatprep.subr.bf16.mxu0 %v8796_v7  ;;  %p9730_p1 = scmp.lt.s32.totalorder %s349_s29, 9 }
  0x1f   : > { %s6501_s16 = sshll.u32 %s335_s9, 2  ;;  %s345_s9 = sadd.s32 %s8714_s19, %s9265_s17 }
  0x20   : > { %s9287_s30 = scalar_lea.vmem %s10976_s0, %s6501_s16  ;;  %7847 = vmatpush3.bf16.msra.mxu1 %v8795_v6  ;;  %s6502_s13 = sshll.u32 %s345_s9, 2 }
  0x21   : > { %8159 = vmatpush3.bf16.msra.mxu0 %v8796_v7  ;;  %7848 = vmatprep.subr.bf16.mxu1 %v8797_v8  ;;  %v9294_v11 = vld [vmem:[%s9287_s30] sm:$0xf]  ;;  %v9297_v12 = vld [vmem:[%s9287_s30 + $0x8] sm:$0xf]  ;;  %v9303_v14 = vld [vmem:[%s9287_s30 + $0x4] sm:$0x1]  ;;  %s9320_s14 = scalar_lea.vmem %s10977_s1, %s6502_s13 }
  0x22   : > { %8160 = vmatprep.subr.bf16.mxu0 %v8798_v9  ;;  %v9306_v15 = vld [vmem:[%s9287_s30 + $0xc] sm:$0x1]  ;;  %v399_v17 = vshrl.u32 %v9294_v11, 16  ;;  %v402_v18 = vshll.u32 %v9294_v11, 16  ;;  %v408_v19 = vshll.u32 %v9303_v14, 16  ;;  %v413_v21 = vshrl.u32 %v9297_v12, 16 }
  0x23   : > { %v416_v22 = vshll.u32 %v9297_v12, 16  ;;  %v422_v23 = vshll.u32 %v9306_v15, 16  ;;  %v6956_v31 = vld [vmem:[%s9320_s14 + $0x8] sm:$0xf]  ;;  %v9327_v32 = vld [vmem:[%s9320_s14 + $0xc] sm:$0x1] }
  0x24   : > { %7849 = vmatpush3.bf16.msra.mxu1 %v8797_v8  ;;  %v401_v24 = vrot.slane %v399_v17, 4  ;;  %v404_v25 = vrot.slane %v402_v18, 5  ;;  %v410_v26 = vrot.slane %v408_v19, 5  ;;  %v415_v27 = vrot.slane %v413_v21, 4  ;;  %v6958_v33 = vld [vmem:[%s9320_s14 + $0x10] sm:$0xf] }
  0x25   : > { %8161 = vmatpush3.bf16.msra.mxu0 %v8798_v9  ;;  %7850 = vmatprep.subr.bf16.mxu1 %v8799_v10  ;;  %v418_v28 = vrot.slane %v416_v22, 5  ;;  %v424_v29 = vrot.slane %v422_v23, 5  ;;  %v9339_v37 = vld [vmem:[%s9320_s14 + $0x14] sm:$0x1]  ;;  %v3182_v38 = vshrl.u32 %v6956_v31, 16  ;;  %v3185_v39 = vshll.u32 %v6956_v31, 16 }
  0x26   : > { %8162 = vmatprep.subr.bf16.mxu0 %v8800_v13  ;;  %v405_v30 = vor.u32 %v404_v25, %v401_v24  ;;  %v3191_v40 = vshll.u32 %v9327_v32, 16  ;;  %v3196_v42 = vshrl.u32 %v6958_v33, 16  ;;  %v3199_v43 = vshll.u32 %v6958_v33, 16  ;;  %v9349_v52 = vld [vmem:[%s9287_s30 + $0x10] sm:$0xf]  ;;  %s11012_s29 = smov (!%p9730_p1, %s349_s29), 9 }
  0x27   : > { %v419_v36 = vor.u32 %v418_v28, %v415_v27  ;;  %v3205_v44 = vshll.u32 %v9339_v37, 16  ;;  %v3184_v47 = vrot.slane %v3182_v38, 4  ;;  %v3187_v48 = vrot.slane %v3185_v39, 5  ;;  %v9354_v57 = vld [vmem:[%s9287_s30 + $0x18] sm:$0xf]  ;;  %s8715_s16 = smul.u32 20, %s11012_s29 }
  0x28   : > { %7851 = vmatpush3.bf16.msra.mxu1 %v8799_v10  ;;  %v406_v41 = vrot.slane %v405_v30, 4  ;;  %v3198_v50 = vrot.slane %v3196_v42, 4  ;;  %v3201_v51 = vrot.slane %v3199_v43, 5  ;;  %v3193_v55 = vrot.slane %v3191_v40, 5  ;;  %v9357_v58 = vld [vmem:[%s9287_s30 + $0x14] sm:$0x1] }
  0x29   : > { %8163 = vmatpush3.bf16.msra.mxu0 %v8800_v13  ;;  %7852 = vmatprep.subr.bf16.mxu1 %v8801_v16  ;;  %v420_v46 = vrot.slane %v419_v36, 4  ;;  %v3188_v54 = vor.u32 %v3187_v48, %v3184_v47  ;;  %v3207_v56 = vrot.slane %v3205_v44, 5  ;;  %v9368_v63 = vld [vmem:[%s9287_s30 + $0x1c] sm:$0x1]  ;;  %v427_v0 = vshrl.u32 %v9349_v52, 16  ;;  %v8807_v44 = vld [vmem:[%s10979_s3 + $0x8] sm:$0xff]   ;;  %s9894_s13 = sadd.s32 %s8715_s16, %s9265_s17 }
  0x2a   : > { %8164 = vmatprep.subr.bf16.mxu0 %v8802_v20  ;;  %v411_v49 = vsel %vm9334_vm2, %v406_v41, %v410_v26  ;;  %v3202_v61 = vor.u32 %v3201_v51, %v3198_v50  ;;  %v430_v1 = vshll.u32 %v9349_v52, 16  ;;  %v436_v3 = vshll.u32 %v9357_v58, 16  ;;  %v6960_v6 = vld [vmem:[%s9320_s14 + $0x18] sm:$0xf]  ;;  %v9378_v13 = vld [vmem:[%s9320_s14 + $0x1c] sm:$0x1] }
  0x2b   : > { %v425_v53 = vsel %vm9334_vm2, %v420_v46, %v424_v29  ;;  %v3189_v2 = vrot.slane %v3188_v54, 4  ;;  %v441_v4 = vshrl.u32 %v9354_v57, 16  ;;  %v444_v5 = vshll.u32 %v9354_v57, 16  ;;  %v9386_v23 = vld [vmem:[%s9320_s14 + $0x24] sm:$0x1]  ;;  %s6503_s19 = sshll.u32 %s9894_s13, 2 }
  0x2c   : > { %7853 = vmatpush3.bf16.msra.mxu1 %v8801_v16  ;;  %v6520_v59 = vcombine.low %v411_v49, %v425_v53  ;;  %v3203_v7 = vrot.slane %v3202_v61, 4  ;;  %v429_v8 = vrot.slane %v427_v0, 4  ;;  %v432_v9 = vrot.slane %v430_v1, 5  ;;  %v8809_v53 = vld [vmem:[%s10979_s3 + $0x10] sm:$0xff]   ;;  %v9408_v61 = vld [vmem:[%s9287_s30 + $0x20] sm:$0xf]  ;;  %s9942_s9 = scalar_lea.vmem %s10978_s2, %s6503_s19 }
  0x2d   : > { %8165 = vmatpush3.bf16.msra.mxu0 %v8802_v20  ;;  %7854 = vmatprep.subr.bf16.mxu1 %v8803_v34  ;;  %v450_v10 = vshll.u32 %v9368_v63, 16  ;;  %v3194_v16 = vsel %vm9334_vm2, %v3189_v2, %v3193_v55  ;;  %v438_v17 = vrot.slane %v436_v3, 5  ;;  %v443_v18 = vrot.slane %v441_v4, 4  ;;  %v6962_v20 = vld [vmem:[%s9320_s14 + $0x20] sm:$0xf]  ;;  %v8808_v3 = vld [vmem:[%s10979_s3 + $0x388] sm:$0xff]  }
  0x2e   : > { %8166 = vmatprep.subr.bf16.mxu0 %v8804_v45  ;;  %7856 = vmatprep.mubr.bf16.mxu1 %v6520_v59  ;;  %v446_v19 = vrot.slane %v444_v5, 5  ;;  %v3208_v21 = vsel %vm9334_vm2, %v3203_v7, %v3207_v56  ;;  %v433_v22 = vor.u32 %v432_v9, %v429_v8  ;;  %v3210_v27 = vshrl.u32 %v6960_v6, 16  ;;  %v9411_v0 = vld [vmem:[%s9287_s30 + $0x28] sm:$0xf]  ;;  %v9414_v1 = vld [vmem:[%s9287_s30 + $0x24] sm:$0x1] }
  0x2f   : > { %v6988_v24 = vcombine.low %v3194_v16, %v3208_v21  ;;  %v452_v26 = vrot.slane %v450_v10, 5  ;;  %v3213_v29 = vshll.u32 %v6960_v6, 16  ;;  %v3219_v30 = vshll.u32 %v9378_v13, 16  ;;  %v8811_v7 = vld [vmem:[%s10979_s3 + $0x18] sm:$0xff]   ;;  %s7511_s20 = sshll.u32 %s9119_s24, 3  ;;  %s9137_s16 = smov [#allocation2]  }
  0x30   : > { %7855 = vmatpush3.bf16.msra.mxu1 %v8803_v34  ;;  %v447_v25 = vor.u32 %v446_v19, %v443_v18  ;;  %v434_v28 = vrot.slane %v433_v22, 4  ;;  %v3224_v31 = vshrl.u32 %v6962_v20, 16  ;;  %v3212_v34 = vrot.slane %v3210_v27, 4  ;;  %v8810_v18 = vld [vmem:[%s10979_s3 + $0x390] sm:$0xff]   ;;  %s9045_s18 = sshll.u32 %s9137_s16, 4  ;;  %s9046_s18 = int_to_ptr.vmem [resolvable:$false] %s9045_s18 }
  0x31   : > { %8167 = vmatpush3.bf16.msra.mxu0 %v8804_v45  ;;  %7864 = vmatprep.subr.bf16.mxu1 %v8805_v60  ;;  %v3227_v36 = vshll.u32 %v6962_v20, 16  ;;  %v3233_v38 = vshll.u32 %v9386_v23, 16  ;;  %v3215_v40 = vrot.slane %v3213_v29, 5  ;;  %v3221_v47 = vrot.slane %v3219_v30, 5  ;;  %v6966_v29 = vld [vmem:[%s9320_s14 + $0x30] sm:$0xf] }
  0x32   : > { %8176 = vmatprep.subr.bf16.mxu0 %v9365_v62  ;;  %8168 = vmatprep.mubr.bf16.mxu0 %v6988_v24  ;;  %v448_v33 = vrot.slane %v447_v25, 4  ;;  %v439_v39 = vsel %vm9334_vm2, %v434_v28, %v438_v17  ;;  %v3226_v41 = vrot.slane %v3224_v31, 4  ;;  %v3473_v50 = vrot.slane %v9327_v32, 5  ;;  %v9439_v28 = vld [vmem:[%s9320_s14 + $0x2c] sm:$0x1]  ;;  %v8813_v31 = vld [vmem:[%s10979_s3 + $0x20] sm:$0xff]  }
  0x33   : > { %v3229_v43 = vrot.slane %v3227_v36, 5  ;;  %v3216_v46 = vor.u32 %v3215_v40, %v3212_v34  ;;  %v3235_v48 = vrot.slane %v3233_v38, 5  ;;  %v3477_v54 = vrot.slane %v9339_v37, 5  ;;  %v9443_v30 = vld [vmem:[%s9320_s14 + $0x34] sm:$0x1]  ;;  %v8812_v38 = vld [vmem:[%s10979_s3 + $0x398] sm:$0xff]  }
  0x34   : > { %v453_v42 = vsel %vm9334_vm2, %v448_v33, %v452_v26  ;;  %v455_v4 = vshrl.u32 %v9408_v61, 16  ;;  %v458_v5 = vshll.u32 %v9408_v61, 16  ;;  %v464_v6 = vshll.u32 %v9414_v1, 16  ;;  %v6964_v26 = vld [vmem:[%s9320_s14 + $0x28] sm:$0xf]  ;;  %v8820_v37 = vld [vmem:[%s10979_s3 + $0x3b8] sm:$0xff]  }
  0x35   : > { %v6521_v45 = vcombine.low %v439_v39, %v453_v42  ;;  %v3230_v49 = vor.u32 %v3229_v43, %v3226_v41  ;;  %v3217_v51 = vrot.slane %v3216_v46, 4  ;;  %v469_v8 = vshrl.u32 %v9411_v0, 16 }
  0x36   : > { %v472_v9 = vshll.u32 %v9411_v0, 16  ;;  %v3481_v16 = vrot.slane %v9378_v13, 5  ;;  %v3485_v17 = vrot.slane %v9386_v23, 5  ;;  %v457_v19 = vrot.slane %v455_v4, 4  ;;  %v9470_v4 = vld [vmem:[%s9287_s30 + $0x3c] sm:$0x1] }
  0x37   : > { %7857 = vmatmul.mubr.bf16.vlgmr.msra.gmra.mrb[0].mxu1 %v6521_v45  ;;  %v3231_v55 = vrot.slane %v3230_v49, 4  ;;  %v3222_v56 = vsel %vm9334_vm2, %v3217_v51, %v3221_v47  ;;  %v460_v20 = vrot.slane %v458_v5, 5  ;;  %v466_v21 = vrot.slane %v464_v6, 5  ;;  %v9454_v47 = vld [vmem:[%s9287_s30 + $0x30] sm:$0xf]  ;;  %v8823_v13 = vld [vmem:[%s10979_s3 + $0x3c0] sm:$0xff]  }
  0x38   : > { %7865 = vmatpush3.bf16.msra.mxu1 %v8805_v60  ;;  %v9420_v60 = vld [vmem:[%s9287_s30 + $0x2c] sm:$0x1]  ;;  %v471_v22 = vrot.slane %v469_v8, 4  ;;  %v474_v24 = vrot.slane %v472_v9, 5  ;;  %v3241_v34 = vshll.u32 %v6964_v26, 16  ;;  %v3247_v36 = vshll.u32 %v9439_v28, 16 }
  0x39   : > { %7866 = vmatprep.subr.bf16.mxu1 %v8807_v44  ;;  %v3236_v59 = vsel %vm9334_vm2, %v3231_v55, %v3235_v48  ;;  %v478_v10 = vshll.u32 %v9420_v60, 16  ;;  %v461_v27 = vor.u32 %v460_v20, %v457_v19  ;;  %v3252_v40 = vshrl.u32 %v6966_v29, 16  ;;  %v8815_v48 = vld [vmem:[%s10979_s3 + $0x28] sm:$0xff]   ;;  %v8814_v8 = vld [vmem:[%s10979_s3 + $0x3a0] sm:$0xff]   ;;  %v6968_v20 = vld [vmem:[%s9320_s14 + $0x38] sm:$0xf] }
  0x3a   : > { %v6989_v2 = vcombine.low %v3222_v56, %v3236_v59  ;;  %v475_v33 = vor.u32 %v474_v24, %v471_v22  ;;  %v3255_v41 = vshll.u32 %v6966_v29, 16  ;;  %v3261_v42 = vshll.u32 %v9443_v30, 16  ;;  %v9462_v56 = vld [vmem:[%s9287_s30 + $0x38] sm:$0xf] }
  0x3b   : > { %v480_v25 = vrot.slane %v478_v10, 5  ;;  %v462_v39 = vrot.slane %v461_v27, 4  ;;  %v3243_v45 = vrot.slane %v3241_v34, 5  ;;  %v3249_v46 = vrot.slane %v3247_v36, 5  ;;  %v6970_v27 = vld [vmem:[%s9320_s14 + $0x40] sm:$0xf] }
  0x3c   : > { %7867 = vmatpush3.bf16.msra.mxu1 %v8807_v44  ;;  %8169 = vmatmul.mubr.bf16.vlgmr.msra.gmra.mrb[0].mxu0 %v6989_v2  ;;  %v476_v43 = vrot.slane %v475_v33, 4  ;;  %v3254_v51 = vrot.slane %v3252_v40, 4  ;;  %v3263_v55 = vrot.slane %v3261_v42, 5  ;;  %v483_v5 = vshrl.u32 %v9454_v47, 16  ;;  %v9487_v36 = vld [vmem:[%s9320_s14 + $0x44] sm:$0x1] }
  0x3d   : > { %7868 = vmatprep.subr.bf16.mxu1 %v8809_v53  ;;  %8177 = vmatpush3.bf16.msra.mxu0 %v9365_v62  ;;  %v3238_v62 = vshrl.u32 %v6964_v26, 16  ;;  %v467_v49 = vsel %vm9334_vm2, %v462_v39, %v466_v21  ;;  %v486_v6 = vshll.u32 %v9454_v47, 16  ;;  %v497_v19 = vshrl.u32 %v9462_v56, 16  ;;  %v9481_v21 = vld [vmem:[%s9320_s14 + $0x3c] sm:$0x1]  ;;  %v8816_v42 = vld [vmem:[%s10979_s3 + $0x3a8] sm:$0xff]  }
  0x3e   : > { %8178 = vmatprep.subr.bf16.mxu0 %v8808_v3  ;;  %v481_v59 = vsel %vm9334_vm2, %v476_v43, %v480_v25  ;;  %v485_v24 = vrot.slane %v483_v5, 4  ;;  %v500_v26 = vshll.u32 %v9462_v56, 16  ;;  %v506_v34 = vshll.u32 %v9470_v4, 16  ;;  %v8817_v43 = vld [vmem:[%s10979_s3 + $0x30] sm:$0xff]  }
  0x3f   : > { %v3240_v44 = vrot.slane %v3238_v62, 4  ;;  %v6522_v9 = vcombine.low %v467_v49, %v481_v59  ;;  %v488_v25 = vrot.slane %v486_v6, 5  ;;  %v499_v62 = vrot.slane %v497_v19, 4 }
  0x40   : > { %7869 = vmatpush3.bf16.msra.mxu1 %v8809_v53  ;;  %v3257_v53 = vrot.slane %v3255_v41, 5  ;;  %v502_v40 = vrot.slane %v500_v26, 5  ;;  %v3266_v41 = vshrl.u32 %v6968_v20, 16  ;;  %v3275_v49 = vshll.u32 %v9481_v21, 16 }
  0x41   : > { %7870 = vmatprep.subr.bf16.mxu1 %v8811_v7  ;;  %8179 = vmatpush3.bf16.msra.mxu0 %v8808_v3  ;;  %v3244_v2 = vor.u32 %v3243_v45, %v3240_v44  ;;  %v9467_v3 = vld [vmem:[%s9287_s30 + $0x34] sm:$0x1]  ;;  %v508_v45 = vrot.slane %v506_v34, 5  ;;  %v3280_v6 = vshrl.u32 %v6970_v27, 16  ;;  %v3489_v23 = vrot.slane %v9439_v28, 5 }
  0x42   : > { %8180 = vmatprep.subr.bf16.mxu0 %v8810_v18  ;;  %v492_v10 = vshll.u32 %v9467_v3, 16  ;;  %7860 = vmatprep.mubr.bf16.mxu1 %v6522_v9  ;;  %v3268_v59 = vrot.slane %v3266_v41, 4  ;;  %v3277_v5 = vrot.slane %v3275_v49, 5  ;;  %v3283_v9 = vshll.u32 %v6970_v27, 16  ;;  %v8818_v27 = vld [vmem:[%s10979_s3 + $0x3b0] sm:$0xff]  }
  0x43   : > { %v3245_v22 = vrot.slane %v3244_v2, 4  ;;  %v7002_v41 = vld [vmem:[%s9320_s14 + $0x18] sm:$0xe]  ;;  %v3497_v28 = vrot.slane %v9481_v21, 5  ;;  %v830_v21 = vrot.slane %v9357_v58, 5 }
  0x44   : > { %7871 = vmatpush3.bf16.msra.mxu1 %v8811_v7  ;;  %v3258_v7 = vor.u32 %v3257_v53, %v3254_v51  ;;  %v494_v33 = vrot.slane %v492_v10, 5  ;;  %v503_v53 = vor.u32 %v502_v40, %v499_v62  ;;  %v3289_v10 = vshll.u32 %v9487_v36, 16 }
  0x45   : > { %7872 = vmatprep.subr.bf16.mxu1 %v8813_v31  ;;  %8181 = vmatpush3.bf16.msra.mxu0 %v8810_v18  ;;  %v3250_v39 = vsel %vm9334_vm2, %v3245_v22, %v3249_v46  ;;  %v489_v18 = vor.u32 %v488_v25, %v485_v24  ;;  %v3285_v22 = vrot.slane %v3283_v9, 5  ;;  %v8819_v24 = vld [vmem:[%s10979_s3 + $0x38] sm:$0xff]   ;;  %v7001_v25 = vld [vmem:[%s9320_s14 + $0x10] sm:$0xe] }
  0x46   : > { %8182 = vmatprep.subr.bf16.mxu0 %v8812_v38  ;;  %v3259_v29 = vrot.slane %v3258_v7, 4  ;;  %v504_v7 = vrot.slane %v503_v53, 4  ;;  %v7009_v62 = vrot.slane %v7001_v25, 9  ;;  %v3291_v40 = vrot.slane %v3289_v10, 5  ;;  %v7006_v9 = vld [vmem:[%s9320_s14 + $0x38] sm:$0xe] }
  0x47   : > { %v490_v51 = vrot.slane %v489_v18, 4  ;;  %v8828_v25 = vld [vmem:[%s10979_s3 + $0x3d0] sm:$0xff]  }
  0x48   : > { %7873 = vmatpush3.bf16.msra.mxu1 %v8813_v31  ;;  %v3264_v44 = vsel %vm9334_vm2, %v3259_v29, %v3263_v55  ;;  %v3269_v31 = vshll.u32 %v6968_v20, 16  ;;  %v3282_v20 = vrot.slane %v3280_v6, 4  ;;  %v509_v29 = vsel %vm9334_vm2, %v504_v7, %v508_v45 }
  0x49   : > { %7874 = vmatprep.subr.bf16.mxu1 %v8815_v48  ;;  %8183 = vmatpush3.bf16.msra.mxu0 %v8812_v38  ;;  %v6990_v46 = vcombine.low %v3250_v39, %v3264_v44  ;;  %v495_v55 = vsel %vm9334_vm2, %v490_v51, %v494_v33  ;;  %v7000_v38 = vld [vmem:[%s9320_s14 + $0x8] sm:$0xe]  ;;  %v6532_v33 = vcombine.low %v9294_v11, %v9297_v12  ;;  %v7003_v44 = vld [vmem:[%s9320_s14 + $0x20] sm:$0xe]  ;;  %v7010_v12 = vrot.slane %v7002_v41, 9 }
  0x4a   : > { %8184 = vmatprep.subr.bf16.mxu0 %v8814_v8  ;;  %v3271_v2 = vrot.slane %v3269_v31, 5  ;;  %v7008_v26 = vrot.slane %v7000_v38, 9  ;;  %v6523_v34 = vcombine.low %v495_v55, %v509_v29  ;;  %v3286_v18 = vor.u32 %v3285_v22, %v3282_v20  ;;  %v7007_v55 = vld [vmem:[%s9320_s14 + $0x40] sm:$0xe] }
  0x4b   : > { %8172 = vmatprep.mubr.bf16.mxu0 %v6990_v46  ;;  %v3478_v11 = vsel %vm9508_vm5, %v7009_v62, %v3477_v54  ;;  %v7011_v49 = vrot.slane %v7003_v44, 9  ;;  %v6533_v54 = vcombine.low %v9349_v52, %v9354_v57  ;;  %v3482_v51 = vsel %vm9508_vm5, %v7010_v12, %v3481_v16  ;;  %v8825_v52 = vld [vmem:[%s10979_s3 + $0x88] sm:$0xff]   ;;  %v793_v22 = vld [vmem:[%s9287_s30] sm:$0xe]  ;;  %v8830_v62 = vld [vmem:[%s10979_s3 + $0x3d8] sm:$0xff]  }
  0x4c   : > { %7875 = vmatpush3.bf16.msra.mxu1 %v8815_v48  ;;  %v3272_v19 = vor.u32 %v3271_v2, %v3268_v59  ;;  %v3474_v45 = vsel %vm9508_vm5, %v7008_v26, %v3473_v50  ;;  %v822_v57 = vrot.slane %v9303_v14, 5  ;;  %v8826_v14 = vld [vmem:[%s10979_s3 + $0x3c8] sm:$0xff]   ;;  %v7005_v59 = vld [vmem:[%s9320_s14 + $0x30] sm:$0xe]  ;;  %v3501_v6 = vrot.slane %v9487_v36, 5  ;;  %v8831_v29 = vld [vmem:[%s10979_s3 + $0xa0] sm:$0xff]  }
  0x4d   : > { %7876 = vmatprep.subr.bf16.mxu1 %v8817_v43  ;;  %8185 = vmatpush3.bf16.msra.mxu0 %v8814_v8  ;;  %v8822_v8 = vld [vmem:[%s10979_s3 + $0x80] sm:$0xff]   ;;  %v7032_v50 = vcombine.low %v3474_v45, %v3478_v11  ;;  %v3486_v53 = vsel %vm9508_vm5, %v7011_v49, %v3485_v17  ;;  %v7004_v17 = vld [vmem:[%s9320_s14 + $0x28] sm:$0xe]  ;;  %v7014_v38 = vrot.slane %v7006_v9, 9  ;;  %v826_v20 = vrot.slane %v9306_v15, 5  ;;  %v8836_v49 = vld [vmem:[%s10979_s3 + $0xb0] sm:$0xff]  }
  0x4e   : > { %8186 = vmatprep.subr.bf16.mxu0 %v8816_v42  ;;  %v3273_v39 = vrot.slane %v3272_v19, 4  ;;  %7861 = vmatmul.mubr.bf16.gmra.mrb[4].mxu1 %v6523_v34  ;;  %v7033_v16 = vcombine.low %v3482_v51, %v3486_v53  ;;  %v7012_v2 = vrot.slane %v7004_v17, 9  ;;  %v7015_v19 = vrot.slane %v7007_v55, 9  ;;  %v794_v15 = vld [vmem:[%s9287_s30 + $0x8] sm:$0xe] }
  0x4f   : > { %7880 = vmatprep.mubr.bf16.mxu1 %v6532_v33  ;;  %v6544_v58 = vrot.slane %v793_v22, 9  ;;  %v6545_v26 = vrot.slane %v794_v15, 9  ;;  %v7082_v9 = vld [vmem:[%s9320_s14 + $0x18] sm:$0xf]  ;;  %v9664_v55 = vld [vmem:[%s9320_s14 + $0x1c] sm:$0x1] }
  0x50   : > { %7877 = vmatpush3.bf16.msra.mxu1 %v8817_v43  ;;  %v3278_v31 = vsel %vm9334_vm2, %v3273_v39, %v3277_v5  ;;  %v3287_v43 = vrot.slane %v3286_v18, 4  ;;  %v7013_v5 = vrot.slane %v7005_v59, 9  ;;  %v3490_v7 = vsel %vm9508_vm5, %v7012_v2, %v3489_v23  ;;  %v795_v18 = vld [vmem:[%s9287_s30 + $0x10] sm:$0xe]  ;;  %v8843_v59 = vld [vmem:[%s10979_s3 + $0x400] sm:$0xff]  }
  0x51   : > { %7878 = vmatprep.subr.bf16.mxu1 %v8819_v24  ;;  %8187 = vmatpush3.bf16.msra.mxu0 %v8816_v42  ;;  %v6534_v42 = vcombine.low %v9408_v61, %v9411_v0  ;;  %v8827_v61 = vld [vmem:[%s10979_s3 + $0x90] sm:$0xff]   ;;  %v3493_v0 = vrot.slane %v9443_v30, 5  ;;  %v6535_v30 = vcombine.low %v9454_v47, %v9462_v56  ;;  %v8829_v47 = vld [vmem:[%s10979_s3 + $0x98] sm:$0xff]   ;;  %v3498_v56 = vsel %vm9508_vm5, %v7014_v38, %v3497_v28 }
  0x52   : > { %8188 = vmatprep.subr.bf16.mxu0 %v8818_v27  ;;  %v3292_v32 = vsel %vm9334_vm2, %v3287_v43, %v3291_v40  ;;  %v823_v33 = vsel %vm9508_vm5, %v6544_v58, %v822_v57  ;;  %v827_v39 = vsel %vm9508_vm5, %v6545_v26, %v826_v20  ;;  %v6546_v41 = vrot.slane %v795_v18, 9  ;;  %v8832_v43 = vld [vmem:[%s10979_s3 + $0x3e0] sm:$0xff]   ;;  %v799_v57 = vld [vmem:[%s9287_s30 + $0x30] sm:$0xe] }
  0x53   : > { %v6991_v46 = vcombine.low %v3278_v31, %v3292_v32  ;;  %v3494_v10 = vsel %vm9508_vm5, %v7013_v5, %v3493_v0  ;;  %v6568_v40 = vcombine.low %v823_v33, %v827_v39  ;;  %v8833_v31 = vld [vmem:[%s10979_s3 + $0xa8] sm:$0xff]   ;;  %v846_v0 = vrot.slane %v9467_v3, 5  ;;  %v7080_v28 = vld [vmem:[%s9320_s14 + $0x10] sm:$0xf]  ;;  %v8849_v39 = vld [vmem:[%s10979_s3 + $0xd8] sm:$0xff]  }
  0x54   : > { %7879 = vmatpush3.bf16.msra.mxu1 %v8819_v24  ;;  %v7034_v36 = vcombine.low %v3490_v7, %v3494_v10  ;;  %v3502_v24 = vsel %vm9508_vm5, %v7015_v19, %v3501_v6  ;;  %v831_v45 = vsel %vm9508_vm5, %v6546_v41, %v830_v21  ;;  %v8834_v32 = vld [vmem:[%s10979_s3 + $0x3e8] sm:$0xff]   ;;  %v3845_v7 = vshrl.u32 %v7080_v28, 16  ;;  %v8847_v22 = vld [vmem:[%s10979_s3 + $0xd0] sm:$0xff]  }
  0x55   : > { %7888 = vmatprep.subr.bf16.mxu1 %v8822_v8  ;;  %8173 = vmatmul.mubr.bf16.gmra.mrb[4].mxu0 %v6991_v46  ;;  %v7035_v34 = vcombine.low %v3498_v56, %v3502_v24  ;;  %v8839_v46 = vld [vmem:[%s10979_s3 + $0xb8] sm:$0xff]   ;;  %v8845_v5 = vld [vmem:[%s10979_s3 + $0xc8] sm:$0xff]   ;;  %v3848_v10 = vshll.u32 %v7080_v28, 16  ;;  %v3859_v19 = vshrl.u32 %v7082_v9, 16  ;;  %v3862_v20 = vshll.u32 %v7082_v9, 16 }
  0x56   : > { %8189 = vmatpush3.bf16.msra.mxu0 %v8818_v27  ;;  %8192 = vmatprep.mubr.bf16.mxu0 %v7032_v50  ;;  %v834_v27 = vrot.slane %v9368_v63, 5  ;;  %v796_v63 = vld [vmem:[%s9287_s30 + $0x18] sm:$0xe]  ;;  %v838_v50 = vrot.slane %v9414_v1, 5  ;;  %v8844_v3 = vld [vmem:[%s9320_s14 + $0x20] ss:$8 sps:$4 sm:$0xff]  }
  0x57   : > { %8190 = vmatprep.subr.bf16.mxu0 %v8820_v37  ;;  %7881 = vmatmul.mubr.bf16.vlgmr.msra.gmra.mrb[0].mxu1 %v6533_v54  ;;  %v6547_v44 = vrot.slane %v796_v63, 9  ;;  %v798_v54 = vld [vmem:[%s9287_s30 + $0x28] sm:$0xe]  ;;  %v8840_v1 = vld [vmem:[%s10979_s3 + $0x3f8] sm:$0xff]   ;;  %v3868_v21 = vshll.u32 %v9664_v55, 16  ;;  %v3850_v56 = vrot.slane %v3848_v10, 5 }
  0x58   : > { %7889 = vmatpush3.bf16.msra.mxu1 %v8822_v8  ;;  %7884 = vmatprep.mubr.bf16.mxu1 %v6534_v42  ;;  %v8842_v8 = vld [vmem:[%s9320_s14 + $0x10] ss:$8 sps:$4 sm:$0xff]   ;;  %v842_v42 = vrot.slane %v9420_v60, 5  ;;  %v6549_v53 = vrot.slane %v798_v54, 9  ;;  %v8841_v60 = vld [vmem:[%s10979_s3 + $0xc0] sm:$0xff]   ;;  %v3861_v15 = vrot.slane %v3859_v19, 4 }
  0x59   : > { %7890 = vmatprep.subr.bf16.mxu1 %v8825_v52  ;;  %v835_v11 = vsel %vm9508_vm5, %v6547_v44, %v834_v27  ;;  %v8856_v24 = vld [vmem:[%s9320_s14 + $0x30] ss:$8 sps:$4 sm:$0xff]   ;;  %v3864_v58 = vrot.slane %v3862_v20, 5  ;;  %v7086_v63 = vld [vmem:[%s9320_s14 + $0x28] sm:$0xf] }
  0x5a   : > { %8191 = vmatpush3.bf16.msra.mxu0 %v8820_v37  ;;  %v6569_v12 = vcombine.low %v831_v45, %v835_v11  ;;  %v797_v37 = vld [vmem:[%s9287_s30 + $0x20] sm:$0xe]  ;;  %v843_v23 = vsel %vm9508_vm5, %v6549_v53, %v842_v42  ;;  %v8861_v33 = vld [vmem:[%s9287_s30 + $0x8] ss:$8 sps:$4 sm:$0xff]   ;;  %v9699_v42 = vld [vmem:[%s9320_s14 + $0x2c] sm:$0x1] }
  0x5b   : > { %8200 = vmatprep.subr.bf16.mxu0 %v8823_v13  ;;  %v6548_v51 = vrot.slane %v797_v37, 9  ;;  %v8851_v45 = vld [vmem:[%s10979_s3 + $0xe0] sm:$0xff]   ;;  %v8859_v10 = vld [vmem:[%s10979_s3 + $0xf8] sm:$0xff]  }
  0x5c   : > { %7891 = vmatpush3.bf16.msra.mxu1 %v8825_v52  ;;  %v8837_v52 = vld [vmem:[%s10979_s3 + $0x3f0] sm:$0xff]   ;;  %v8858_v11 = vld [vmem:[%s9320_s14 + $0x40] ss:$8 sps:$4 sm:$0xff]  }
  0x5d   : > { %8193 = vmatmul.mubr.bf16.vlgmr.msra.gmra.mrb[0].mxu0 %v7033_v16  ;;  %7892 = vmatprep.subr.bf16.mxu1 %v8827_v61  ;;  %v850_v16 = vrot.slane %v9470_v4, 5  ;;  %v9656_v4 = vld [vmem:[%s9320_s14 + $0x14] sm:$0x1] }
  0x5e   : > { %8201 = vmatpush3.bf16.msra.mxu0 %v8823_v13  ;;  %8196 = vmatprep.mubr.bf16.mxu0 %v7034_v36  ;;  %v800_v13 = vld [vmem:[%s9287_s30 + $0x38] sm:$0xe]  ;;  %v3854_v38 = vshll.u32 %v9656_v4, 16  ;;  %v8846_v36 = vld [vmem:[%s10979_s3 + $0x408] sm:$0xff]  }
  0x5f   : > { %8202 = vmatprep.subr.bf16.mxu0 %v8826_v14  ;;  %7885 = vmatmul.mubr.bf16.gmra.mrb[4].mxu1 %v6535_v30  ;;  %v6551_v17 = vrot.slane %v800_v13, 9 }
  0x60   : > { %7893 = vmatpush3.bf16.msra.mxu1 %v8827_v61  ;;  %7904 = vmatprep.mubr.bf16.mxu1 %v6568_v40  ;;  %v839_v61 = vsel %vm9508_vm5, %v6548_v51, %v838_v50  ;;  %v3856_v27 = vrot.slane %v3854_v38, 5  ;;  %v8848_v40 = vld [vmem:[%s10979_s3 + $0x410] sm:$0xff]   ;;  %v3890_v50 = vshll.u32 %v7086_v63, 16 }
  0x61   : > { %7894 = vmatprep.subr.bf16.mxu1 %v8829_v47  ;;  %v6570_v2 = vcombine.low %v839_v61, %v843_v23  ;;  %v851_v30 = vsel %vm9508_vm5, %v6551_v17, %v850_v16  ;;  %v8854_v61 = vld [vmem:[%s10979_s3 + $0x428] sm:$0xff]  }
  0x62   : > { %8203 = vmatpush3.bf16.msra.mxu0 %v8826_v14  ;;  %v6550_v14 = vrot.slane %v799_v57, 9  ;;  %v3892_v53 = vrot.slane %v3890_v50, 5  ;;  %v8852_v57 = vld [vmem:[%s10979_s3 + $0x420] sm:$0xff]  }
  0x63   : > { %8204 = vmatprep.subr.bf16.mxu0 %v8828_v25 }
  0x64   : > { %7895 = vmatpush3.bf16.msra.mxu1 %v8829_v47  ;;  %v847_v6 = vsel %vm9508_vm5, %v6550_v14, %v846_v0  ;;  %v3847_v47 = vrot.slane %v3845_v7, 4  ;;  %v8855_v0 = vld [vmem:[%s10979_s3 + $0xf0] sm:$0xff]  }
  0x65   : > { %8197 = vmatmul.mubr.bf16.gmra.mrb[4].mxu0 %v7035_v34  ;;  %7896 = vmatprep.subr.bf16.mxu1 %v8831_v29  ;;  %v3870_v34 = vrot.slane %v3868_v21, 5  ;;  %v8857_v7 = vld [vmem:[%s10979_s3 + $0x430] sm:$0xff]  }
  0x66   : > { %8205 = vmatpush3.bf16.msra.mxu0 %v8828_v25  ;;  %8216 = vmatprep.mubr.bf16.mxu0 %v8842_v8  ;;  %v6571_v25 = vcombine.low %v847_v6, %v851_v30  ;;  %v3851_v26 = vor.u32 %v3850_v56, %v3847_v47  ;;  %v4136_v56 = vrot.slane %v9656_v4, 5 }
  0x67   : > { %8206 = vmatprep.subr.bf16.mxu0 %v8830_v62 }
  0x68   : > { %7897 = vmatpush3.bf16.msra.mxu1 %v8831_v29  ;;  %v7084_v29 = vld [vmem:[%s9320_s14 + $0x20] sm:$0xf]  ;;  %v3852_v18 = vrot.slane %v3851_v26, 4 }
  0x69   : > { %7898 = vmatprep.subr.bf16.mxu1 %v8833_v31  ;;  %v3873_v44 = vshrl.u32 %v7084_v29, 16  ;;  %v3876_v8 = vshll.u32 %v7084_v29, 16  ;;  %v9755_v29 = vld [vmem:[%s9320_s14 + $0x44] sm:$0x1] }
  0x6a   : > { %8207 = vmatpush3.bf16.msra.mxu0 %v8830_v62  ;;  %v3865_v62 = vor.u32 %v3864_v58, %v3861_v15  ;;  %v8860_v15 = vld [vmem:[%s10979_s3 + $0x438] sm:$0xff]  }
  0x6b   : > { %8208 = vmatprep.subr.bf16.mxu0 %v8832_v43  ;;  %v3875_v37 = vrot.slane %v3873_v44, 4  ;;  %v3878_v54 = vrot.slane %v3876_v8, 5  ;;  %v8875_v44 = vld [vmem:[%s9287_s30 + $0x28] ss:$8 sps:$4 sm:$0xff]  }
  0x6c   : > { %7899 = vmatpush3.bf16.msra.mxu1 %v8833_v31  ;;  %v3866_v41 = vrot.slane %v3865_v62, 4  ;;  %v8850_v31 = vld [vmem:[%s10979_s3 + $0x418] sm:$0xff]   ;;  %v8862_v62 = vld [vmem:[%s10979_s3 + $0x100] sm:$0xff]  }
  0x6d   : > { %7900 = vmatprep.subr.bf16.mxu1 %v8836_v49  ;;  %v3879_v13 = vor.u32 %v3878_v54, %v3875_v37  ;;  %v8863_v37 = vld [vmem:[%s10979_s3 + $0x440] sm:$0xff]  }
  0x6e   : > { %8209 = vmatpush3.bf16.msra.mxu0 %v8832_v43  ;;  %v3871_v43 = vsel %vm9334_vm2, %v3866_v41, %v3870_v34  ;;  %v8864_v34 = vld [vmem:[%s9287_s30 + $0x18] ss:$8 sps:$4 sm:$0xff]   ;;  %v3938_v41 = vshll.u32 %v9755_v29, 16 }
  0x6f   : > { %8210 = vmatprep.subr.bf16.mxu0 %v8834_v32  ;;  %v9718_v14 = vrot.slane %v3879_v13, 4  ;;  %v6616_v13 = vld [vmem:[%s9287_s30 + $0x8] sm:$0xf] }
  0x70   : > { %7901 = vmatpush3.bf16.msra.mxu1 %v8836_v49  ;;  %v9696_v49 = vld [vmem:[%s9320_s14 + $0x24] sm:$0x1]  ;;  %v9773_v54 = vrot.slane %v3938_v41, 5  ;;  %v6622_v41 = vld [vmem:[%s9287_s30 + $0x20] sm:$0xf] }
  0x71   : > { %7902 = vmatprep.subr.bf16.mxu1 %v8839_v46 }
  0x72   : > { %8211 = vmatpush3.bf16.msra.mxu0 %v8834_v32  ;;  %v3887_v32 = vshrl.u32 %v7086_v63, 16 }
  0x73   : > { %8212 = vmatprep.subr.bf16.mxu0 %v8837_v52 }
  0x74   : > { %7903 = vmatpush3.bf16.msra.mxu1 %v8839_v46  ;;  %v3889_v51 = vrot.slane %v3887_v32, 4 }
  0x75   : > { %7912 = vmatprep.subr.bf16.mxu1 %v8841_v60 }
  0x76   : > { %8213 = vmatpush3.bf16.msra.mxu0 %v8837_v52  ;;  %v8853_v52 = vld [vmem:[%s10979_s3 + $0xe8] sm:$0xff]   ;;  %v3893_v23 = vor.u32 %v3892_v53, %v3889_v51 }
  0x77   : > { %8214 = vmatprep.subr.bf16.mxu0 %v8840_v1  ;;  %7905 = vmatmul.mubr.bf16.vlgmr.msra.gmra.mrb[0].mxu1 %v6569_v12  ;;  %v3857_v12 = vsel %vm9334_vm2, %v3852_v18, %v3856_v27  ;;  %v7092_v27 = vld [vmem:[%s9320_s14 + $0x40] sm:$0xf]  ;;  %v9763_v18 = vld [vmem:[%s9320_s14 + $0x4c] sm:$0x1] }
  0x78   : > { %7913 = vmatpush3.bf16.msra.mxu1 %v8841_v60  ;;  %7908 = vmatprep.mubr.bf16.mxu1 %v6570_v2  ;;  %v7112_v46 = vcombine.low %v3857_v12, %v3871_v43  ;;  %v3896_v60 = vshll.u32 %v9699_v42, 16  ;;  %v9722_v2 = vld [vmem:[%s9320_s14 + $0x34] sm:$0x1]  ;;  %v3894_v28 = vrot.slane %v3893_v23, 4  ;;  %v3929_v63 = vshrl.u32 %v7092_v27, 16 }
  0x79   : > { %7914 = vmatprep.subr.bf16.mxu1 %v8845_v5  ;;  %v3910_v21 = vshll.u32 %v9722_v2, 16 }
  0x7a   : > { %8215 = vmatpush3.bf16.msra.mxu0 %v8840_v1  ;;  %v3882_v1 = vshll.u32 %v9696_v49, 16  ;;  %v3898_v17 = vrot.slane %v3896_v60, 5  ;;  %v3931_v50 = vrot.slane %v3929_v63, 4  ;;  %v9778_v60 = vld [vmem:[%s9287_s30 + $0xc] sm:$0x1] }
  0x7b   : > { %8224 = vmatprep.subr.bf16.mxu0 %v8843_v59 }
  0x7c   : > { %7915 = vmatpush3.bf16.msra.mxu1 %v8845_v5  ;;  %v9716_v16 = vrot.slane %v3882_v1, 5  ;;  %v7090_v5 = vld [vmem:[%s9320_s14 + $0x38] sm:$0xf] }
  0x7d   : > { %8217 = vmatmul.mubr.bf16.vlgmr.msra.gmra.mrb[0].mxu0 %v8844_v3  ;;  %7916 = vmatprep.subr.bf16.mxu1 %v8847_v22  ;;  %v9726_v3 = vld [vmem:[%s9320_s14 + $0x3c] sm:$0x1]  ;;  %v3915_v9 = vshrl.u32 %v7090_v5, 16  ;;  %v3918_v38 = vshll.u32 %v7090_v5, 16 }
  0x7e   : > { %8225 = vmatpush3.bf16.msra.mxu0 %v8843_v59  ;;  %8220 = vmatprep.mubr.bf16.mxu0 %v8856_v24  ;;  %v7088_v59 = vld [vmem:[%s9320_s14 + $0x30] sm:$0xf]  ;;  %v3924_v47 = vshll.u32 %v9726_v3, 16  ;;  %v4140_v24 = vrot.slane %v9664_v55, 5  ;;  %v3885_v58 = vsel %vm9334_vm2, %v9718_v14, %v9716_v16  ;;  %v9784_v16 = vld [vmem:[%s9287_s30 + $0x14] sm:$0x1] }
  0x7f   : > { %8226 = vmatprep.subr.bf16.mxu0 %v8846_v36  ;;  %7909 = vmatmul.mubr.bf16.gmra.mrb[4].mxu1 %v6571_v25  ;;  %v3901_v6 = vshrl.u32 %v7088_v59, 16  ;;  %v3904_v30 = vshll.u32 %v7088_v59, 16  ;;  %v3899_v25 = vsel %vm9334_vm2, %v3894_v28, %v3898_v17  ;;  %v1194_v14 = vshrl.u32 %v6616_v13, 16  ;;  %v8867_v59 = vld [vmem:[%s10979_s3 + $0x110] sm:$0xff]  }
  0x80   : > { %7917 = vmatpush3.bf16.msra.mxu1 %v8847_v22  ;;  %7928 = vmatprep.mubr.bf16.mxu1 %v8861_v33  ;;  %v3920_v22 = vrot.slane %v3918_v38, 5  ;;  %v7094_v33 = vld [vmem:[%s9320_s14 + $0x48] sm:$0xf]  ;;  %v3926_v32 = vrot.slane %v3924_v47, 5  ;;  %v7113_v1 = vcombine.low %v3885_v58, %v3899_v25  ;;  %v1197_v17 = vshll.u32 %v6616_v13, 16 }
  0x81   : > { %7918 = vmatprep.subr.bf16.mxu1 %v8849_v39  ;;  %v3903_v19 = vrot.slane %v3901_v6, 4  ;;  %v3906_v20 = vrot.slane %v3904_v30, 5  ;;  %v3946_v12 = vshll.u32 %v7094_v33, 16  ;;  %v1203_v28 = vshll.u32 %v9778_v60, 16  ;;  %v7124_v58 = vld [vmem:[%s9320_s14 + $0x10] sm:$0xe] }
  0x82   : > { %8227 = vmatpush3.bf16.msra.mxu0 %v8846_v36  ;;  %v3917_v36 = vrot.slane %v3915_v9, 4  ;;  %v8866_v9 = vld [vmem:[%s10979_s3 + $0x448] sm:$0xff]   ;;  %v1199_v38 = vrot.slane %v1197_v17, 5  ;;  %v9837_v13 = vld [vmem:[%s9287_s30 + $0x24] sm:$0x1]  ;;  %v4144_v17 = vrot.slane %v9696_v49, 5 }
  0x83   : > { %8228 = vmatprep.subr.bf16.mxu0 %v8848_v40  ;;  %v3907_v26 = vor.u32 %v3906_v20, %v3903_v19  ;;  %v3948_v53 = vrot.slane %v3946_v12, 5  ;;  %v1217_v19 = vshll.u32 %v9784_v16, 16  ;;  %v8878_v20 = vld [vmem:[%s9287_s30 + $0x38] ss:$8 sps:$4 sm:$0xff]  }
  0x84   : > { %7919 = vmatpush3.bf16.msra.mxu1 %v8849_v39  ;;  %v3921_v39 = vor.u32 %v3920_v22, %v3917_v36 }
  0x85   : > { %8221 = vmatmul.mubr.bf16.gmra.mrb[4].mxu0 %v8858_v11  ;;  %7920 = vmatprep.subr.bf16.mxu1 %v8851_v45  ;;  %v3908_v8 = vrot.slane %v3907_v26, 4  ;;  %v3943_v11 = vshrl.u32 %v7094_v33, 16  ;;  %v7125_v33 = vld [vmem:[%s9320_s14 + $0x18] sm:$0xe] }
  0x86   : > { %8229 = vmatpush3.bf16.msra.mxu0 %v8848_v40  ;;  %8240 = vmatprep.mubr.bf16.mxu0 %v7112_v46  ;;  %v3932_v40 = vshll.u32 %v7092_v27, 16  ;;  %v3922_v43 = vrot.slane %v3921_v39, 4  ;;  %v1205_v27 = vrot.slane %v1203_v28, 5  ;;  %v1219_v39 = vrot.slane %v1217_v19, 5  ;;  %v8872_v28 = vld [vmem:[%s10979_s3 + $0x460] sm:$0xff]  }
  0x87   : > { %8230 = vmatprep.subr.bf16.mxu0 %v8850_v31  ;;  %v3945_v51 = vrot.slane %v3943_v11, 4  ;;  %v7133_v63 = vrot.slane %v7125_v33, 9  ;;  %v4148_v19 = vrot.slane %v9699_v42, 5  ;;  %v9871_v33 = vld [vmem:[%s9287_s30 + $0x34] sm:$0x1] }
  0x88   : > { %7921 = vmatpush3.bf16.msra.mxu1 %v8851_v45  ;;  %v3912_v45 = vrot.slane %v3910_v21, 5  ;;  %v3934_v46 = vrot.slane %v3932_v40, 5  ;;  %v3927_v5 = vsel %vm9334_vm2, %v3922_v43, %v3926_v32  ;;  %v6620_v40 = vld [vmem:[%s9287_s30 + $0x18] sm:$0xf]  ;;  %v8868_v43 = vld [vmem:[%s10979_s3 + $0x450] sm:$0xff]  }
  0x89   : > { %7922 = vmatprep.subr.bf16.mxu1 %v8853_v52  ;;  %v3949_v23 = vor.u32 %v3948_v53, %v3945_v51  ;;  %v4141_v4 = vsel %vm9508_vm5, %v7133_v63, %v4140_v24 }
  0x8a   : > { %8231 = vmatpush3.bf16.msra.mxu0 %v8850_v31  ;;  %v8865_v31 = vld [vmem:[%s10979_s3 + $0x108] sm:$0xff]  }
  0x8b   : > { %8232 = vmatprep.subr.bf16.mxu0 %v8852_v57  ;;  %v3950_v36 = vrot.slane %v3949_v23, 4 }
  0x8c   : > { %7923 = vmatpush3.bf16.msra.mxu1 %v8853_v52  ;;  %v3952_v52 = vshll.u32 %v9763_v18, 16 }
  0x8d   : > { %7924 = vmatprep.subr.bf16.mxu1 %v8855_v0 }
  0x8e   : > { %8233 = vmatpush3.bf16.msra.mxu0 %v8852_v57  ;;  %v3935_v57 = vor.u32 %v3934_v46, %v3931_v50  ;;  %v9819_v46 = vld [vmem:[%s9287_s30 + $0x1c] sm:$0x1] }
  0x8f   : > { %8234 = vmatprep.subr.bf16.mxu0 %v8854_v61  ;;  %v1231_v23 = vshll.u32 %v9819_v46, 16 }
  0x90   : > { %7925 = vmatpush3.bf16.msra.mxu1 %v8855_v0  ;;  %v6618_v0 = vld [vmem:[%s9287_s30 + $0x10] sm:$0xf]  ;;  %v3936_v21 = vrot.slane %v3935_v57, 4 }
  0x91   : > { %7926 = vmatprep.subr.bf16.mxu1 %v8859_v10  ;;  %v1208_v6 = vshrl.u32 %v6618_v0, 16  ;;  %v1211_v30 = vshll.u32 %v6618_v0, 16  ;;  %v8870_v0 = vld [vmem:[%s10979_s3 + $0x458] sm:$0xff]  }
  0x92   : > { %8235 = vmatpush3.bf16.msra.mxu0 %v8854_v61  ;;  %v3913_v61 = vsel %vm9334_vm2, %v3908_v8, %v3912_v45  ;;  %v8869_v8 = vld [vmem:[%s10979_s3 + $0x118] sm:$0xff]   ;;  %v3941_v45 = vsel %vm9334_vm2, %v3936_v21, %v9773_v54  ;;  %v1236_v54 = vshrl.u32 %v6622_v41, 16 }
  0x93   : > { %8236 = vmatprep.subr.bf16.mxu0 %v8857_v7  ;;  %v1210_v22 = vrot.slane %v1208_v6, 4  ;;  %v1213_v47 = vrot.slane %v1211_v30, 5  ;;  %v7114_v25 = vcombine.low %v3913_v61, %v3927_v5  ;;  %v1245_v5 = vshll.u32 %v9837_v13, 16  ;;  %v7126_v30 = vld [vmem:[%s9320_s14 + $0x20] sm:$0xe] }
  0x94   : > { %7927 = vmatpush3.bf16.msra.mxu1 %v8859_v10  ;;  %v1196_v10 = vrot.slane %v1194_v14, 4  ;;  %v1238_v61 = vrot.slane %v1236_v54, 4 }
  0x95   : > { %7936 = vmatprep.subr.bf16.mxu1 %v8862_v62 }
  0x96   : > { %8237 = vmatpush3.bf16.msra.mxu0 %v8857_v7  ;;  %v3954_v7 = vrot.slane %v3952_v52, 5  ;;  %v1200_v26 = vor.u32 %v1199_v38, %v1196_v10  ;;  %v1239_v52 = vshll.u32 %v6622_v41, 16  ;;  %v1233_v10 = vrot.slane %v1231_v23, 5  ;;  %v8876_v38 = vld [vmem:[%s10979_s3 + $0x130] sm:$0xff]  }
  0x97   : > { %8238 = vmatprep.subr.bf16.mxu0 %v8860_v15  ;;  %7929 = vmatmul.mubr.bf16.vlgmr.msra.gmra.mrb[0].mxu1 %v8864_v34  ;;  %v1214_v34 = vor.u32 %v1213_v47, %v1210_v22  ;;  %v7134_v22 = vrot.slane %v7126_v30, 9  ;;  %v7130_v30 = vld [vmem:[%s9320_s14 + $0x40] sm:$0xe] }
  0x98   : > { %7937 = vmatpush3.bf16.msra.mxu1 %v8862_v62  ;;  %7932 = vmatprep.mubr.bf16.mxu1 %v8875_v44  ;;  %v7132_v62 = vrot.slane %v7124_v58, 9  ;;  %v1222_v44 = vshrl.u32 %v6620_v40, 16  ;;  %v3955_v11 = vsel %vm9334_vm2, %v3950_v36, %v3954_v7  ;;  %v1241_v24 = vrot.slane %v1239_v52, 5  ;;  %v6624_v58 = vld [vmem:[%s9287_s30 + $0x28] sm:$0xf] }
  0x99   : > { %7938 = vmatprep.subr.bf16.mxu1 %v8865_v31  ;;  %v1215_v12 = vrot.slane %v1214_v34, 4  ;;  %v1247_v36 = vrot.slane %v1245_v5, 5  ;;  %v1253_v34 = vshll.u32 %v6624_v58, 16  ;;  %v7129_v52 = vld [vmem:[%s9320_s14 + $0x38] sm:$0xe] }
  0x9a   : > { %8239 = vmatpush3.bf16.msra.mxu0 %v8860_v15  ;;  %v1201_v15 = vrot.slane %v1200_v26, 4  ;;  %v4137_v50 = vsel %vm9508_vm5, %v7132_v62, %v4136_v56  ;;  %v8871_v56 = vld [vmem:[%s10979_s3 + $0x120] sm:$0xff]   ;;  %v1242_v6 = vor.u32 %v1241_v24, %v1238_v61  ;;  %v1250_v62 = vshrl.u32 %v6624_v58, 16  ;;  %v9903_v61 = vld [vmem:[%s9287_s30 + $0x3c] sm:$0x1] }
  0x9b   : > { %8248 = vmatprep.subr.bf16.mxu0 %v8863_v37  ;;  %v1220_v51 = vsel %vm9334_vm2, %v1215_v12, %v1219_v39  ;;  %v7156_v14 = vcombine.low %v4137_v50, %v4141_v4  ;;  %v8879_v12 = vld [vmem:[%s10979_s3 + $0x138] sm:$0xff]   ;;  %v8881_v4 = vld [vmem:[%s10979_s3 + $0x140] sm:$0xff]   ;;  %v1287_v49 = vshll.u32 %v9903_v61, 16 }
  0x9c   : > { %7939 = vmatpush3.bf16.msra.mxu1 %v8865_v31  ;;  %v1225_v31 = vshll.u32 %v6620_v40, 16  ;;  %v1206_v32 = vsel %vm9334_vm2, %v1201_v15, %v1205_v27  ;;  %v1243_v21 = vrot.slane %v1242_v6, 4  ;;  %v6626_v27 = vld [vmem:[%s9287_s30 + $0x30] sm:$0xf]  ;;  %v1273_v15 = vshll.u32 %v9871_v33, 16 }
  0x9d   : > { %8241 = vmatmul.mubr.bf16.vlgmr.msra.gmra.mrb[0].mxu0 %v7113_v1  ;;  %7940 = vmatprep.subr.bf16.mxu1 %v8867_v59  ;;  %v7115_v1 = vcombine.low %v3941_v45, %v3955_v11  ;;  %v6648_v57 = vcombine.low %v1206_v32, %v1220_v51  ;;  %v1264_v63 = vshrl.u32 %v6626_v27, 16  ;;  %v1267_v40 = vshll.u32 %v6626_v27, 16  ;;  %v8877_v11 = vld [vmem:[%s10979_s3 + $0x470] sm:$0xff]  }
  0x9e   : > { %8249 = vmatpush3.bf16.msra.mxu0 %v8863_v37  ;;  %8244 = vmatprep.mubr.bf16.mxu0 %v7114_v25  ;;  %v1224_v37 = vrot.slane %v1222_v44, 4  ;;  %v1227_v53 = vrot.slane %v1225_v31, 5  ;;  %v9865_v25 = vld [vmem:[%s9287_s30 + $0x2c] sm:$0x1]  ;;  %v1248_v41 = vsel %vm9334_vm2, %v1243_v21, %v1247_v36  ;;  %v1252_v44 = vrot.slane %v1250_v62, 4  ;;  %v8882_v36 = vld [vmem:[%s10979_s3 + $0x480] sm:$0xff]  }
  0x9f   : > { %8250 = vmatprep.subr.bf16.mxu0 %v8866_v9  ;;  %7933 = vmatmul.mubr.bf16.gmra.mrb[4].mxu1 %v8878_v20  ;;  %v8874_v20 = vld [vmem:[%s10979_s3 + $0x468] sm:$0xff]   ;;  %v1259_v39 = vshll.u32 %v9865_v25, 16  ;;  %v4152_v45 = vrot.slane %v9722_v2, 5  ;;  %v1266_v31 = vrot.slane %v1264_v63, 4  ;;  %v4156_v32 = vrot.slane %v9726_v3, 5 }
  0xa0   : > { %7941 = vmatpush3.bf16.msra.mxu1 %v8867_v59  ;;  %v1228_v55 = vor.u32 %v1227_v53, %v1224_v37  ;;  %7952 = vmatprep.mubr.bf16.mxu1 %v6648_v57  ;;  %v8873_v59 = vld [vmem:[%s10979_s3 + $0x128] sm:$0xff]   ;;  %v4160_v2 = vrot.slane %v9755_v29, 5  ;;  %v1275_v54 = vrot.slane %v1273_v15, 5  ;;  %v7128_v51 = vld [vmem:[%s9320_s14 + $0x30] sm:$0xe] }
  0xa1   : > { %7942 = vmatprep.subr.bf16.mxu1 %v8869_v8  ;;  %v1261_v37 = vrot.slane %v1259_v39, 5  ;;  %v7131_v62 = vld [vmem:[%s9320_s14 + $0x48] sm:$0xe] }
  0xa2   : > { %8251 = vmatpush3.bf16.msra.mxu0 %v8866_v9  ;;  %v9853_v9 = vld [vmem:[%s9320_s14 + $0x28] sm:$0xe]  ;;  %v1229_v7 = vrot.slane %v1228_v55, 4  ;;  %v6630_v55 = vld [vmem:[%s9287_s30 + $0x40] sm:$0xf] }
  0xa3   : > { %8252 = vmatprep.subr.bf16.mxu0 %v8868_v43  ;;  %v7135_v47 = vrot.slane %v9853_v9, 9  ;;  %v1292_v6 = vshrl.u32 %v6630_v55, 16  ;;  %v1295_v21 = vshll.u32 %v6630_v55, 16  ;;  %v8888_v55 = vld [vmem:[%s10979_s3 + $0x498] sm:$0xff]  }
  0xa4   : > { %7943 = vmatpush3.bf16.msra.mxu1 %v8869_v8  ;;  %v1234_v26 = vsel %vm9334_vm2, %v1229_v7, %v1233_v10  ;;  %v1255_v8 = vrot.slane %v1253_v34, 5  ;;  %v4164_v7 = vrot.slane %v9763_v18, 5  ;;  %v1289_v18 = vrot.slane %v1287_v49, 5  ;;  %v8893_v49 = vld [vmem:[%s10979_s3 + $0x170] sm:$0xff]  }
  0xa5   : > { %8245 = vmatmul.mubr.bf16.gmra.mrb[4].mxu0 %v7115_v1  ;;  %7944 = vmatprep.subr.bf16.mxu1 %v8871_v56  ;;  %v6649_v3 = vcombine.low %v1234_v26, %v1248_v41  ;;  %v9900_v1 = vsel %vm9508_vm5, %v7134_v22, %v4144_v17  ;;  %v8880_v17 = vld [vmem:[%s10979_s3 + $0x478] sm:$0xff]   ;;  %v8883_v22 = vld [vmem:[%s10979_s3 + $0x148] sm:$0xff]   ;;  %v1294_v26 = vrot.slane %v1292_v6, 4  ;;  %v4149_v34 = vsel %vm9508_vm5, %v7135_v47, %v4148_v19 }
  0xa6   : > { %8253 = vmatpush3.bf16.msra.mxu0 %v8868_v43  ;;  %8264 = vmatprep.mubr.bf16.mxu0 %v7156_v14  ;;  %v1269_v43 = vrot.slane %v1267_v40, 5  ;;  %v1256_v50 = vor.u32 %v1255_v8, %v1252_v44  ;;  %v9907_v14 = vld [vmem:[%s9287_s30 + $0x44] sm:$0x1]  ;;  %v1297_v63 = vrot.slane %v1295_v21, 5  ;;  %v7138_v40 = vrot.slane %v7130_v30, 9  ;;  %v8892_v6 = vld [vmem:[%s10979_s3 + $0x4a8] sm:$0xff]  }
  0xa7   : > { %8254 = vmatprep.subr.bf16.mxu0 %v8870_v0  ;;  %v1301_v27 = vshll.u32 %v9907_v14, 16  ;;  %v6660_v44 = vld [vmem:[%s9287_s30 + $0x8] sm:$0xe]  ;;  %v6661_v8 = vld [vmem:[%s9287_s30 + $0x10] sm:$0xe]  ;;  %v1505_v21 = vrot.slane %v9871_v33, 5 }
  0xa8   : > { %7945 = vmatpush3.bf16.msra.mxu1 %v8871_v56  ;;  %v1270_v53 = vor.u32 %v1269_v43, %v1266_v31  ;;  %v6628_v56 = vld [vmem:[%s9287_s30 + $0x38] sm:$0xf]  ;;  %v1257_v57 = vrot.slane %v1256_v50, 4  ;;  %v1298_v19 = vor.u32 %v1297_v63, %v1294_v26  ;;  %v6668_v47 = vrot.slane %v6660_v44, 9  ;;  %v4490_v63 = vld [vmem:[%s9942_s9] sm:$0xf] }
  0xa9   : > { %7946 = vmatprep.subr.bf16.mxu1 %v8873_v59  ;;  %v1278_v23 = vshrl.u32 %v6628_v56, 16  ;;  %v1303_v41 = vrot.slane %v1301_v27, 5  ;;  %v1489_v31 = vrot.slane %v9784_v16, 5  ;;  %v7139_v50 = vrot.slane %v7131_v62, 9  ;;  %v6666_v62 = vld [vmem:[%s9287_s30 + $0x38] sm:$0xe] }
  0xaa   : > { %8255 = vmatpush3.bf16.msra.mxu0 %v8870_v0  ;;  %v1271_v24 = vrot.slane %v1270_v53, 4  ;;  %v7136_v0 = vrot.slane %v7128_v51, 9  ;;  %v1262_v5 = vsel %vm9334_vm2, %v1257_v57, %v1261_v37  ;;  %v8887_v53 = vld [vmem:[%s10979_s3 + $0x158] sm:$0xff]   ;;  %v8886_v57 = vld [vmem:[%s10979_s3 + $0x490] sm:$0xff]   ;;  %v4510_v44 = vshll.u32 %v4490_v63, 16 }
  0xab   : > { %8256 = vmatprep.subr.bf16.mxu0 %v8872_v28 }
  0xac   : > { %7947 = vmatpush3.bf16.msra.mxu1 %v8873_v59  ;;  %v1281_v59 = vshll.u32 %v6628_v56, 16  ;;  %v1276_v10 = vsel %vm9334_vm2, %v1271_v24, %v1275_v54  ;;  %v4153_v15 = vsel %vm9508_vm5, %v7136_v0, %v4152_v45  ;;  %v7157_v45 = vcombine.low %v9900_v1, %v4149_v34  ;;  %v8884_v54 = vld [vmem:[%s10979_s3 + $0x488] sm:$0xff]   ;;  %v8890_v0 = vld [vmem:[%s10979_s3 + $0x4a0] sm:$0xff]  }
  0xad   : > { %7948 = vmatprep.subr.bf16.mxu1 %v8876_v38  ;;  %v6650_v58 = vcombine.low %v1262_v5, %v1276_v10  ;;  %v4165_v1 = vsel %vm9508_vm5, %v7139_v50, %v4164_v7  ;;  %v8891_v24 = vld [vmem:[%s10979_s3 + $0x168] sm:$0xff]   ;;  %v1493_v7 = vrot.slane %v9819_v46, 5  ;;  %v8894_v46 = vld [vmem:[%s10979_s3 + $0x4b0] sm:$0xff]   ;;  %v1509_v34 = vrot.slane %v9903_v61, 5 }
  0xae   : > { %8257 = vmatpush3.bf16.msra.mxu0 %v8872_v28  ;;  %v1280_v28 = vrot.slane %v1278_v23, 4  ;;  %v8898_v23 = vld [vmem:[%s9942_s9] ss:$8 sps:$4 sm:$0xff]   ;;  %v4512_v61 = vrot.slane %v4510_v44, 5  ;;  %v8911_v44 = vld [vmem:[%s10979_s3 + $0x1b0] sm:$0xff]  }
  0xaf   : > { %8258 = vmatprep.subr.bf16.mxu0 %v8874_v20  ;;  %v6664_v5 = vld [vmem:[%s9287_s30 + $0x28] sm:$0xe] }
  0xb0   : > { %7949 = vmatpush3.bf16.msra.mxu1 %v8876_v38  ;;  %v7137_v38 = vrot.slane %v7129_v52, 9 }
  0xb1   : > { %7950 = vmatprep.subr.bf16.mxu1 %v8879_v12 }
  0xb2   : > { %8259 = vmatpush3.bf16.msra.mxu0 %v8874_v20  ;;  %v1283_v20 = vrot.slane %v1281_v59, 5  ;;  %v4157_v42 = vsel %vm9508_vm5, %v7137_v38, %v4156_v32  ;;  %v1299_v32 = vrot.slane %v1298_v19, 4  ;;  %v6662_v59 = vld [vmem:[%s9287_s30 + $0x18] sm:$0xe]  ;;  %v1497_v38 = vrot.slane %v9837_v13, 5  ;;  %v8897_v13 = vld [vmem:[%s10979_s3 + $0x180] sm:$0xff]  }
  0xb3   : > { %8260 = vmatprep.subr.bf16.mxu0 %v8877_v11  ;;  %v7158_v16 = vcombine.low %v4153_v15, %v4157_v42  ;;  %v6670_v30 = vrot.slane %v6662_v59, 9  ;;  %v4492_v15 = vld [vmem:[%s9942_s9 + $0x8] sm:$0xf]  ;;  %v4494_v59 = vld [vmem:[%s9942_s9 + $0x10] sm:$0xf] }
  0xb4   : > { %7951 = vmatpush3.bf16.msra.mxu1 %v8879_v12  ;;  %v1284_v39 = vor.u32 %v1283_v20, %v1280_v28  ;;  %v6669_v12 = vrot.slane %v6661_v8, 9  ;;  %v6665_v28 = vld [vmem:[%s9287_s30 + $0x30] sm:$0xe]  ;;  %v1501_v20 = vrot.slane %v9865_v25, 5  ;;  %v10028_v8 = vld [vmem:[%s9942_s9 + $0x4] sm:$0x1] }
  0xb5   : > { %7960 = vmatprep.subr.bf16.mxu1 %v8881_v4  ;;  %v1494_v25 = vsel %vm9508_vm5, %v6670_v30, %v1493_v7  ;;  %v4524_v42 = vshll.u32 %v4492_v15, 16  ;;  %v4538_v30 = vshll.u32 %v4494_v59, 16  ;;  %v8906_v7 = vld [vmem:[%s10979_s3 + $0x4d8] sm:$0xff]  }
  0xb6   : > { %8261 = vmatpush3.bf16.msra.mxu0 %v8877_v11  ;;  %v1485_v11 = vrot.slane %v9778_v60, 5  ;;  %v1285_v9 = vrot.slane %v1284_v39, 4  ;;  %v8885_v60 = vld [vmem:[%s10979_s3 + $0x150] sm:$0xff]   ;;  %v1490_v51 = vsel %vm9508_vm5, %v6669_v12, %v1489_v31  ;;  %v1513_v39 = vrot.slane %v9907_v14, 5 }
  0xb7   : > { %8262 = vmatprep.subr.bf16.mxu0 %v8880_v17  ;;  %7953 = vmatmul.mubr.bf16.vlgmr.msra.gmra.mrb[0].mxu1 %v6649_v3  ;;  %v4161_v3 = vsel %vm9508_vm5, %v7138_v40, %v4160_v2  ;;  %v8889_v2 = vld [vmem:[%s10979_s3 + $0x160] sm:$0xff]   ;;  %v6674_v14 = vrot.slane %v6666_v62, 9  ;;  %v4500_v62 = vld [vmem:[%s9942_s9 + $0x28] sm:$0xf] }
  0xb8   : > { %7961 = vmatpush3.bf16.msra.mxu1 %v8881_v4  ;;  %7956 = vmatprep.mubr.bf16.mxu1 %v6650_v58  ;;  %v1290_v43 = vsel %vm9334_vm2, %v1285_v9, %v1289_v18  ;;  %v1486_v37 = vsel %vm9508_vm5, %v6668_v47, %v1485_v11  ;;  %v1304_v4 = vsel %vm9334_vm2, %v1299_v32, %v1303_v41  ;;  %v8895_v58 = vld [vmem:[%s10979_s3 + $0x178] sm:$0xff]   ;;  %v6667_v40 = vld [vmem:[%s9287_s30 + $0x40] sm:$0xe]  ;;  %v4507_v41 = vshrl.u32 %v4490_v63, 16  ;;  %v10031_v47 = vld [vmem:[%s9942_s9 + $0xc] sm:$0x1] }
  0xb9   : > { %7962 = vmatprep.subr.bf16.mxu1 %v8883_v22  ;;  %v6651_v52 = vcombine.low %v1290_v43, %v1304_v4  ;;  %v6692_v56 = vcombine.low %v1486_v37, %v1490_v51  ;;  %v7159_v29 = vcombine.low %v4161_v3, %v4165_v1  ;;  %v8896_v18 = vld [vmem:[%s10979_s3 + $0x4b8] sm:$0xff]   ;;  %v4521_v11 = vshrl.u32 %v4492_v15, 16  ;;  %v8901_v43 = vld [vmem:[%s10979_s3 + $0x188] sm:$0xff]   ;;  %v8899_v32 = vld [vmem:[%s10979_s3 + $0x4c0] sm:$0xff]  }
  0xba   : > { %8263 = vmatpush3.bf16.msra.mxu0 %v8880_v17  ;;  %v6663_v17 = vld [vmem:[%s9287_s30 + $0x20] sm:$0xe]  ;;  %v6675_v12 = vrot.slane %v6667_v40, 9  ;;  %v4516_v37 = vshll.u32 %v10028_v8, 16  ;;  %v8900_v51 = vld [vmem:[%s9942_s9 + $0x10] ss:$8 sps:$4 sm:$0xff]  }
  0xbb   : > { %8272 = vmatprep.subr.bf16.mxu0 %v8882_v36  ;;  %v6671_v10 = vrot.slane %v6663_v17, 9  ;;  %v4523_v31 = vrot.slane %v4521_v11, 4  ;;  %v8902_v4 = vld [vmem:[%s10979_s3 + $0x4c8] sm:$0xff]   ;;  %v8917_v1 = vld [vmem:[%s9287_s30 + $0x10] ss:$8 sps:$4 sm:$0xff]   ;;  %v4577_v40 = vshrl.u32 %v4500_v62, 16 }
  0xbc   : > { %7963 = vmatpush3.bf16.msra.mxu1 %v8883_v22  ;;  %v6673_v22 = vrot.slane %v6665_v28, 9  ;;  %v8912_v3 = vld [vmem:[%s9942_s9 + $0x20] ss:$8 sps:$4 sm:$0xff]   ;;  %v8914_v17 = vld [vmem:[%s9942_s9 + $0x30] ss:$8 sps:$4 sm:$0xff]   ;;  %v4580_v15 = vshll.u32 %v4500_v62, 16 }
  0xbd   : > { %8265 = vmatmul.mubr.bf16.vlgmr.msra.gmra.mrb[0].mxu0 %v7157_v45  ;;  %7964 = vmatprep.subr.bf16.mxu1 %v8885_v60  ;;  %v1498_v33 = vsel %vm9508_vm5, %v6671_v10, %v1497_v38  ;;  %v4509_v45 = vrot.slane %v4507_v41, 4  ;;  %v8910_v41 = vld [vmem:[%s10979_s3 + $0x4e8] sm:$0xff]  }
  0xbe   : > { %8273 = vmatpush3.bf16.msra.mxu0 %v8882_v36  ;;  %8268 = vmatprep.mubr.bf16.mxu0 %v7158_v16  ;;  %v6672_v36 = vrot.slane %v6664_v5, 9  ;;  %v1506_v27 = vsel %vm9508_vm5, %v6673_v22, %v1505_v21  ;;  %v6693_v9 = vcombine.low %v1494_v25, %v1498_v33  ;;  %v4530_v16 = vshll.u32 %v10031_v47, 16  ;;  %v4498_v33 = vld [vmem:[%s9942_s9 + $0x20] sm:$0xf] }
  0xbf   : > { %8274 = vmatprep.subr.bf16.mxu0 %v8884_v54  ;;  %7957 = vmatmul.mubr.bf16.gmra.mrb[4].mxu1 %v6651_v52  ;;  %v4513_v50 = vor.u32 %v4512_v61, %v4509_v45  ;;  %v1514_v52 = vsel %vm9508_vm5, %v6675_v12, %v1513_v39  ;;  %v4563_v39 = vshrl.u32 %v4498_v33, 16  ;;  %v4566_v63 = vshll.u32 %v4498_v33, 16  ;;  %v10101_v45 = vld [vmem:[%s9942_s9 + $0x2c] sm:$0x1] }
  0xc0   : > { %7965 = vmatpush3.bf16.msra.mxu1 %v8885_v60  ;;  %7976 = vmatprep.mubr.bf16.mxu1 %v6692_v56  ;;  %v1502_v26 = vsel %vm9508_vm5, %v6672_v36, %v1501_v20  ;;  %v4526_v60 = vrot.slane %v4524_v42, 5  ;;  %v8903_v56 = vld [vmem:[%s10979_s3 + $0x190] sm:$0xff]   ;;  %v8907_v20 = vld [vmem:[%s10979_s3 + $0x1a0] sm:$0xff]  }
  0xc1   : > { %7966 = vmatprep.subr.bf16.mxu1 %v8887_v53  ;;  %v6694_v19 = vcombine.low %v1502_v26, %v1506_v27  ;;  %v10074_v36 = vld [vmem:[%s9942_s9 + $0x14] sm:$0x1]  ;;  %v10084_v26 = vld [vmem:[%s9942_s9 + $0x1c] sm:$0x1]  ;;  %v4568_v12 = vrot.slane %v4566_v63, 5 }
  0xc2   : > { %8275 = vmatpush3.bf16.msra.mxu0 %v8884_v54  ;;  %v4527_v54 = vor.u32 %v4526_v60, %v4523_v31  ;;  %v4544_v27 = vshll.u32 %v10074_v36, 16  ;;  %v4502_v31 = vld [vmem:[%s9942_s9 + $0x30] sm:$0xf]  ;;  %v4504_v60 = vld [vmem:[%s9942_s9 + $0x38] sm:$0xf] }
  0xc3   : > { %8276 = vmatprep.subr.bf16.mxu0 %v8886_v57 }
  0xc4   : > { %7967 = vmatpush3.bf16.msra.mxu1 %v8887_v53  ;;  %v1510_v53 = vsel %vm9508_vm5, %v6674_v14, %v1509_v34  ;;  %v10089_v34 = vld [vmem:[%s9942_s9 + $0x24] sm:$0x1]  ;;  %v4565_v14 = vrot.slane %v4563_v39, 4 }
  0xc5   : > { %8269 = vmatmul.mubr.bf16.gmra.mrb[4].mxu0 %v7159_v29  ;;  %7968 = vmatprep.subr.bf16.mxu1 %v8889_v2  ;;  %v4528_v29 = vrot.slane %v4527_v54, 4  ;;  %v4572_v61 = vshll.u32 %v10089_v34, 16 }
  0xc6   : > { %8277 = vmatpush3.bf16.msra.mxu0 %v8886_v57  ;;  %8288 = vmatprep.mubr.bf16.mxu0 %v8898_v23  ;;  %v4514_v57 = vrot.slane %v4513_v50, 4  ;;  %v8905_v23 = vld [vmem:[%s10979_s3 + $0x198] sm:$0xff]   ;;  %v4591_v50 = vshrl.u32 %v4502_v31, 16 }
  0xc7   : > { %8278 = vmatprep.subr.bf16.mxu0 %v8888_v55 }
  0xc8   : > { %7969 = vmatpush3.bf16.msra.mxu1 %v8889_v2  ;;  %v4532_v2 = vrot.slane %v4530_v16, 5 }
  0xc9   : > { %7970 = vmatprep.subr.bf16.mxu1 %v8891_v24 }
  0xca   : > { %8279 = vmatpush3.bf16.msra.mxu0 %v8888_v55  ;;  %v4518_v55 = vrot.slane %v4516_v37, 5  ;;  %v4533_v28 = vsel %vm9334_vm2, %v4528_v29, %v4532_v2  ;;  %v4594_v37 = vshll.u32 %v4502_v31, 16  ;;  %v8918_v2 = vld [vmem:[%s10979_s3 + $0x1c0] sm:$0xff]  }
  0xcb   : > { %8280 = vmatprep.subr.bf16.mxu0 %v8890_v0 }
  0xcc   : > { %7971 = vmatpush3.bf16.msra.mxu1 %v8891_v24  ;;  %v6695_v24 = vcombine.low %v1510_v53, %v1514_v52  ;;  %v4519_v5 = vsel %vm9334_vm2, %v4514_v57, %v4518_v55  ;;  %v8913_v53 = vld [vmem:[%s10979_s3 + $0x4f0] sm:$0xff]   ;;  %v8915_v52 = vld [vmem:[%s10979_s3 + $0x1b8] sm:$0xff]   ;;  %v10121_v57 = vrot.slane %v4591_v50, 4  ;;  %v10123_v55 = vrot.slane %v4594_v37, 5 }
  0xcd   : > { %7972 = vmatprep.subr.bf16.mxu1 %v8893_v49  ;;  %v7212_v21 = vcombine.low %v4519_v5, %v4533_v28  ;;  %v8916_v5 = vld [vmem:[%s10979_s3 + $0x4f8] sm:$0xff]  }
  0xce   : > { %8281 = vmatpush3.bf16.msra.mxu0 %v8890_v0  ;;  %v8904_v0 = vld [vmem:[%s10979_s3 + $0x4d0] sm:$0xff]  }
  0xcf   : > { %8282 = vmatprep.subr.bf16.mxu0 %v8892_v6 }
  0xd0   : > { %7973 = vmatpush3.bf16.msra.mxu1 %v8893_v49  ;;  %v4496_v49 = vld [vmem:[%s9942_s9 + $0x18] sm:$0xf] }
  0xd1   : > { %7974 = vmatprep.subr.bf16.mxu1 %v8895_v58  ;;  %v4549_v10 = vshrl.u32 %v4496_v49, 16  ;;  %v4552_v38 = vshll.u32 %v4496_v49, 16  ;;  %v6740_v49 = vld [vmem:[%s9287_s30 + $0x10] sm:$0xf] }
  0xd2   : > { %8283 = vmatpush3.bf16.msra.mxu0 %v8892_v6  ;;  %v4535_v6 = vshrl.u32 %v4494_v59, 16  ;;  %v10134_v59 = vld [vmem:[%s9942_s9 + $0x3c] sm:$0x1] }
  0xd3   : > { %8284 = vmatprep.subr.bf16.mxu0 %v8894_v46  ;;  %v4554_v25 = vrot.slane %v4552_v38, 5  ;;  %v1860_v38 = vshll.u32 %v6740_v49, 16 }
  0xd4   : > { %7975 = vmatpush3.bf16.msra.mxu1 %v8895_v58  ;;  %v4537_v22 = vrot.slane %v4535_v6, 4  ;;  %v4540_v58 = vrot.slane %v4538_v30, 5  ;;  %v6742_v30 = vld [vmem:[%s9287_s30 + $0x18] sm:$0xf] }
  0xd5   : > { %7984 = vmatprep.subr.bf16.mxu1 %v8897_v13 }
  0xd6   : > { %8285 = vmatpush3.bf16.msra.mxu0 %v8894_v46  ;;  %v8908_v46 = vld [vmem:[%s10979_s3 + $0x4e0] sm:$0xff]   ;;  %v4541_v11 = vor.u32 %v4540_v58, %v4537_v22  ;;  %v1871_v22 = vshrl.u32 %v6742_v30, 16  ;;  %v1874_v58 = vshll.u32 %v6742_v30, 16 }
  0xd7   : > { %8286 = vmatprep.subr.bf16.mxu0 %v8896_v18  ;;  %7977 = vmatmul.mubr.bf16.vlgmr.msra.gmra.mrb[0].mxu1 %v6693_v9  ;;  %v4558_v9 = vshll.u32 %v10084_v26, 16 }
  0xd8   : > { %7985 = vmatpush3.bf16.msra.mxu1 %v8897_v13  ;;  %7980 = vmatprep.mubr.bf16.mxu1 %v6694_v19  ;;  %v4551_v13 = vrot.slane %v4549_v10, 4  ;;  %v10098_v19 = vrot.slane %v4544_v27, 5  ;;  %v10106_v54 = vrot.slane %v4541_v11, 4  ;;  %v1857_v10 = vshrl.u32 %v6740_v49, 16 }
  0xd9   : > { %7986 = vmatprep.subr.bf16.mxu1 %v8901_v43  ;;  %v1873_v39 = vrot.slane %v1871_v22, 4  ;;  %v1876_v63 = vrot.slane %v1874_v58, 5  ;;  %v8927_v22 = vld [vmem:[%s10979_s3 + $0x1e0] sm:$0xff]  }
  0xda   : > { %8287 = vmatpush3.bf16.msra.mxu0 %v8896_v18  ;;  %v8909_v18 = vld [vmem:[%s10979_s3 + $0x1a8] sm:$0xff]   ;;  %v4555_v42 = vor.u32 %v4554_v25, %v4551_v13  ;;  %v4547_v28 = vsel %vm9334_vm2, %v10106_v54, %v10098_v19  ;;  %v1859_v13 = vrot.slane %v1857_v10, 4  ;;  %v1862_v25 = vrot.slane %v1860_v38, 5 }
  0xdb   : > { %8296 = vmatprep.subr.bf16.mxu0 %v8899_v32  ;;  %v4802_v54 = vrot.slane %v10031_v47, 5 }
  0xdc   : > { %7987 = vmatpush3.bf16.msra.mxu1 %v8901_v43  ;;  %v4579_v43 = vrot.slane %v4577_v40, 4  ;;  %v10108_v16 = vrot.slane %v4555_v42, 4  ;;  %v8931_v40 = vld [vmem:[%s9287_s30 + $0x30] ss:$8 sps:$4 sm:$0xff]   ;;  %v1863_v11 = vor.u32 %v1862_v25, %v1859_v13  ;;  %v8921_v42 = vld [vmem:[%s10979_s3 + $0x1c8] sm:$0xff]  }
  0xdd   : > { %8289 = vmatmul.mubr.bf16.vlgmr.msra.gmra.mrb[0].mxu0 %v8900_v51  ;;  %7988 = vmatprep.subr.bf16.mxu1 %v8903_v56  ;;  %v10110_v51 = vrot.slane %v4558_v9, 5  ;;  %v8926_v13 = vld [vmem:[%s10979_s3 + $0x518] sm:$0xff]  }
  0xde   : > { %8297 = vmatpush3.bf16.msra.mxu0 %v8899_v32  ;;  %8292 = vmatprep.mubr.bf16.mxu0 %v8912_v3  ;;  %v4582_v32 = vrot.slane %v4580_v15, 5  ;;  %v4608_v3 = vshll.u32 %v4504_v60, 16  ;;  %v4597_v15 = vor.u32 %v10123_v55, %v10121_v57  ;;  %v1864_v31 = vrot.slane %v1863_v11, 4  ;;  %v6744_v57 = vld [vmem:[%s9287_s30 + $0x20] sm:$0xf] }
  0xdf   : > { %8298 = vmatprep.subr.bf16.mxu0 %v8902_v4  ;;  %7981 = vmatmul.mubr.bf16.gmra.mrb[4].mxu1 %v6695_v24  ;;  %v4561_v6 = vsel %vm9334_vm2, %v10108_v16, %v10110_v51  ;;  %v1888_v30 = vshll.u32 %v6744_v57, 16  ;;  %v8928_v11 = vld [vmem:[%s10979_s3 + $0x520] sm:$0xff]  }
  0xe0   : > { %7989 = vmatpush3.bf16.msra.mxu1 %v8903_v56  ;;  %8000 = vmatprep.mubr.bf16.mxu1 %v8917_v1  ;;  %v4586_v56 = vshll.u32 %v10101_v45, 16  ;;  %v10119_v1 = vrot.slane %v4572_v61, 5  ;;  %v4583_v24 = vor.u32 %v4582_v32, %v4579_v43  ;;  %v1877_v61 = vor.u32 %v1876_v63, %v1873_v39  ;;  %v8923_v43 = vld [vmem:[%s10979_s3 + $0x1d0] sm:$0xff]  }
  0xe1   : > { %7990 = vmatprep.subr.bf16.mxu1 %v8905_v23  ;;  %v7213_v16 = vcombine.low %v4547_v28, %v4561_v6  ;;  %v1885_v6 = vshrl.u32 %v6744_v57, 16 }
  0xe2   : > { %8299 = vmatpush3.bf16.msra.mxu0 %v8902_v4  ;;  %v4605_v4 = vshrl.u32 %v4504_v60, 16  ;;  %v4584_v62 = vrot.slane %v4583_v24, 4  ;;  %v4798_v60 = vrot.slane %v10028_v8, 5  ;;  %v1878_v37 = vrot.slane %v1877_v61, 4  ;;  %v8922_v8 = vld [vmem:[%s10979_s3 + $0x508] sm:$0xff]  }
  0xe3   : > { %8300 = vmatprep.subr.bf16.mxu0 %v8904_v0 }
  0xe4   : > { %7991 = vmatpush3.bf16.msra.mxu1 %v8905_v23  ;;  %v10125_v29 = vrot.slane %v4605_v4, 4  ;;  %v4569_v23 = vor.u32 %v4568_v12, %v4565_v14  ;;  %v8919_v12 = vld [vmem:[%s10979_s3 + $0x500] sm:$0xff]  }
  0xe5   : > { %8293 = vmatmul.mubr.bf16.gmra.mrb[4].mxu0 %v8914_v17  ;;  %7992 = vmatprep.subr.bf16.mxu1 %v8907_v20  ;;  %v10138_v17 = vld [vmem:[%s9287_s30 + $0x14] sm:$0x1] }
  0xe6   : > { %8301 = vmatpush3.bf16.msra.mxu0 %v8904_v0  ;;  %8312 = vmatprep.mubr.bf16.mxu0 %v7212_v21  ;;  %v10131_v0 = vld [vmem:[%s9942_s9 + $0x34] sm:$0x1]  ;;  %v1866_v21 = vshll.u32 %v10138_v17, 16  ;;  %v4570_v27 = vrot.slane %v4569_v23, 4  ;;  %v8925_v23 = vld [vmem:[%s10979_s3 + $0x1d8] sm:$0xff]  }
  0xe7   : > { %8302 = vmatprep.subr.bf16.mxu0 %v8906_v7 }
  0xe8   : > { %7993 = vmatpush3.bf16.msra.mxu1 %v8907_v20  ;;  %v4610_v20 = vrot.slane %v4608_v3, 5  ;;  %v1868_v19 = vrot.slane %v1866_v21, 5  ;;  %v4575_v32 = vsel %vm9334_vm2, %v4570_v27, %v10119_v1  ;;  %v1887_v27 = vrot.slane %v1885_v6, 4 }
  0xe9   : > { %7994 = vmatprep.subr.bf16.mxu1 %v8909_v18 }
  0xea   : > { %8303 = vmatpush3.bf16.msra.mxu0 %v8906_v7  ;;  %v10153_v7 = vld [vmem:[%s9287_s30 + $0x1c] sm:$0x1]  ;;  %v4611_v9 = vor.u32 %v4610_v20, %v10125_v29  ;;  %v1869_v47 = vsel %vm9334_vm2, %v1864_v31, %v1868_v19  ;;  %v8934_v29 = vld [vmem:[%s9287_s30 + $0x40] ss:$8 sps:$4 sm:$0xff]  }
  0xeb   : > { %8304 = vmatprep.subr.bf16.mxu0 %v8908_v46  ;;  %v1880_v33 = vshll.u32 %v10153_v7, 16 }
  0xec   : > { %7995 = vmatpush3.bf16.msra.mxu1 %v8909_v18  ;;  %v8920_v18 = vld [vmem:[%s9287_s30 + $0x20] ss:$8 sps:$4 sm:$0xff]   ;;  %v4612_v3 = vrot.slane %v4611_v9, 4  ;;  %v10230_v9 = vld [vmem:[%s9287_s30 + $0x3c] sm:$0x1] }
  0xed   : > { %7996 = vmatprep.subr.bf16.mxu1 %v8911_v44  ;;  %v1882_v14 = vrot.slane %v1880_v33, 5  ;;  %v10213_v33 = vld [vmem:[%s9287_s30 + $0x24] sm:$0x1] }
  0xee   : > { %8305 = vmatpush3.bf16.msra.mxu0 %v8908_v46  ;;  %v4588_v46 = vrot.slane %v4586_v56, 5  ;;  %v4598_v56 = vrot.slane %v4597_v15, 4  ;;  %v8929_v15 = vld [vmem:[%s10979_s3 + $0x1e8] sm:$0xff]  }
  0xef   : > { %8306 = vmatprep.subr.bf16.mxu0 %v8910_v41  ;;  %v1883_v1 = vsel %vm9334_vm2, %v1878_v37, %v1882_v14  ;;  %v1894_v14 = vshll.u32 %v10213_v33, 16 }
  0xf0   : > { %7997 = vmatpush3.bf16.msra.mxu1 %v8911_v44  ;;  %v4614_v44 = vshll.u32 %v10134_v59, 16  ;;  %v4589_v50 = vsel %vm9334_vm2, %v4584_v62, %v4588_v46  ;;  %v6772_v28 = vcombine.low %v1869_v47, %v1883_v1  ;;  %v1890_v62 = vrot.slane %v1888_v30, 5 }
  0xf1   : > { %7998 = vmatprep.subr.bf16.mxu1 %v8915_v52  ;;  %v7214_v55 = vcombine.low %v4575_v32, %v4589_v50  ;;  %v10235_v50 = vld [vmem:[%s9942_s9 + $0x10] sm:$0xe]  ;;  %v4810_v47 = vrot.slane %v10084_v26, 5  ;;  %v1896_v57 = vrot.slane %v1894_v14, 5 }
  0xf2   : > { %8307 = vmatpush3.bf16.msra.mxu0 %v8910_v41  ;;  %v4600_v41 = vshll.u32 %v10131_v0, 16  ;;  %v4616_v4 = vrot.slane %v4614_v44, 5  ;;  %v10223_v44 = vld [vmem:[%s9287_s30 + $0x34] sm:$0x1] }
  0xf3   : > { %8308 = vmatprep.subr.bf16.mxu0 %v8913_v53 }
  0xf4   : > { %7999 = vmatpush3.bf16.msra.mxu1 %v8915_v52  ;;  %v4602_v51 = vrot.slane %v4600_v41, 5  ;;  %v4773_v52 = vld [vmem:[%s9942_s9 + $0x8] sm:$0xe]  ;;  %v4617_v38 = vsel %vm9334_vm2, %v4612_v3, %v4616_v4  ;;  %v6748_v41 = vld [vmem:[%s9287_s30 + $0x30] sm:$0xf]  ;;  %v4806_v3 = vrot.slane %v10074_v36, 5 }
  0xf5   : > { %8008 = vmatprep.subr.bf16.mxu1 %v8918_v2  ;;  %v7225_v49 = vrot.slane %v4773_v52, 9  ;;  %v1913_v19 = vshrl.u32 %v6748_v41, 16  ;;  %v1916_v61 = vshll.u32 %v6748_v41, 16  ;;  %v8930_v52 = vld [vmem:[%s10979_s3 + $0x528] sm:$0xff]   ;;  %v8935_v36 = vld [vmem:[%s10979_s3 + $0x1f8] sm:$0xff]  }
  0xf6   : > { %8309 = vmatpush3.bf16.msra.mxu0 %v8913_v53  ;;  %v4772_v53 = vld [vmem:[%s9942_s9] sm:$0xe]  ;;  %v4603_v10 = vsel %vm9334_vm2, %v4598_v56, %v4602_v51  ;;  %v8932_v56 = vld [vmem:[%s10979_s3 + $0x1f0] sm:$0xff]  }
  0xf7   : > { %8310 = vmatprep.subr.bf16.mxu0 %v8916_v5  ;;  %8001 = vmatmul.mubr.bf16.vlgmr.msra.gmra.mrb[0].mxu1 %v8920_v18  ;;  %v7224_v24 = vrot.slane %v4772_v53, 9  ;;  %v4803_v46 = vsel %vm9508_vm5, %v7225_v49, %v4802_v54  ;;  %v7215_v25 = vcombine.low %v4603_v10, %v4617_v38  ;;  %v10216_v18 = vld [vmem:[%s9287_s30 + $0x2c] sm:$0x1]  ;;  %v1915_v37 = vrot.slane %v1913_v19, 4  ;;  %v10258_v10 = vld [vmem:[%s9287_s30 + $0x44] sm:$0x1] }
  0xf8   : > { %8009 = vmatpush3.bf16.msra.mxu1 %v8918_v2  ;;  %8004 = vmatprep.mubr.bf16.mxu1 %v8931_v40  ;;  %v6746_v2 = vld [vmem:[%s9287_s30 + $0x28] sm:$0xf]  ;;  %v1918_v54 = vrot.slane %v1916_v61, 5  ;;  %v1936_v53 = vshll.u32 %v10230_v9, 16 }
  0xf9   : > { %8010 = vmatprep.subr.bf16.mxu1 %v8921_v42  ;;  %v1899_v20 = vshrl.u32 %v6746_v2, 16  ;;  %v1902_v21 = vshll.u32 %v6746_v2, 16  ;;  %v4799_v58 = vsel %vm9508_vm5, %v7224_v24, %v4798_v60  ;;  %v6752_v2 = vld [vmem:[%s9287_s30 + $0x40] sm:$0xf] }
  0xfa   : > { %8311 = vmatpush3.bf16.msra.mxu0 %v8916_v5  ;;  %v8924_v5 = vld [vmem:[%s10979_s3 + $0x510] sm:$0xff]   ;;  %v7248_v39 = vcombine.low %v4799_v58, %v4803_v46  ;;  %v1919_v1 = vor.u32 %v1918_v54, %v1915_v37  ;;  %v1938_v30 = vrot.slane %v1936_v53, 5  ;;  %v1944_v38 = vshll.u32 %v6752_v2, 16  ;;  %v10264_v58 = vld [vmem:[%s9287_s30 + $0x4c] sm:$0x1] }
  0xfb   : > { %8320 = vmatprep.subr.bf16.mxu0 %v8919_v12  ;;  %v1901_v63 = vrot.slane %v1899_v20, 4  ;;  %v1904_v40 = vrot.slane %v1902_v21, 5  ;;  %v8933_v20 = vld [vmem:[%s10979_s3 + $0x530] sm:$0xff]   ;;  %v1964_v19 = vshll.u32 %v10264_v58, 16 }
  0xfc   : > { %8011 = vmatpush3.bf16.msra.mxu1 %v8921_v42  ;;  %v6750_v42 = vld [vmem:[%s9287_s30 + $0x38] sm:$0xf]  ;;  %v1920_v21 = vrot.slane %v1919_v1, 4 }
  0xfd   : > { %8313 = vmatmul.mubr.bf16.vlgmr.msra.gmra.mrb[0].mxu0 %v7213_v16  ;;  %8012 = vmatprep.subr.bf16.mxu1 %v8923_v43  ;;  %v1927_v31 = vshrl.u32 %v6750_v42, 16  ;;  %v1930_v60 = vshll.u32 %v6750_v42, 16  ;;  %v1905_v32 = vor.u32 %v1904_v40, %v1901_v63  ;;  %v10238_v16 = vld [vmem:[%s9942_s9 + $0x18] sm:$0xe]  ;;  %v4818_v63 = vrot.slane %v10101_v45, 5  ;;  %v8937_v45 = vld [vmem:[%s10979_s3 + $0x200] sm:$0xff]  }
  0xfe   : > { %8321 = vmatpush3.bf16.msra.mxu0 %v8919_v12  ;;  %8316 = vmatprep.mubr.bf16.mxu0 %v7214_v55  ;;  %v1908_v12 = vshll.u32 %v10216_v18, 16  ;;  %v7226_v55 = vrot.slane %v10235_v50, 9  ;;  %v7227_v49 = vrot.slane %v10238_v16, 9  ;;  %v1950_v40 = vshll.u32 %v10258_v10, 16  ;;  %v6785_v16 = vld [vmem:[%s9287_s30 + $0x18] sm:$0xe] }
  0xff   : > { %8322 = vmatprep.subr.bf16.mxu0 %v8922_v8  ;;  %8005 = vmatmul.mubr.bf16.gmra.mrb[4].mxu1 %v8934_v29  ;;  %v1929_v51 = vrot.slane %v1927_v31, 4  ;;  %v1932_v4 = vrot.slane %v1930_v60, 5  ;;  %v1906_v26 = vrot.slane %v1905_v32, 4  ;;  %v6784_v32 = vld [vmem:[%s9287_s30 + $0x10] sm:$0xe] }
 0x100   : > { %8013 = vmatpush3.bf16.msra.mxu1 %v8923_v43  ;;  %8024 = vmatprep.mubr.bf16.mxu1 %v6772_v28  ;;  %v1891_v43 = vor.u32 %v1890_v62, %v1887_v27  ;;  %v1910_v24 = vrot.slane %v1908_v12, 5  ;;  %v1941_v28 = vshrl.u32 %v6752_v2, 16  ;;  %v1946_v27 = vrot.slane %v1944_v38, 5  ;;  %v4777_v12 = vld [vmem:[%s9942_s9 + $0x28] sm:$0xe] }
 0x101   : > { %8014 = vmatprep.subr.bf16.mxu1 %v8925_v23  ;;  %v1933_v29 = vor.u32 %v1932_v4, %v1929_v51  ;;  %v4807_v37 = vsel %vm9508_vm5, %v7226_v55, %v4806_v3  ;;  %v4811_v54 = vsel %vm9508_vm5, %v7227_v49, %v4810_v47  ;;  %v7229_v4 = vrot.slane %v4777_v12, 9  ;;  %v4778_v2 = vld [vmem:[%s9942_s9 + $0x30] sm:$0xe] }
 0x102   : > { %8323 = vmatpush3.bf16.msra.mxu0 %v8922_v8  ;;  %v1922_v8 = vshll.u32 %v10223_v44, 16  ;;  %v1943_v46 = vrot.slane %v1941_v28, 4  ;;  %v1952_v53 = vrot.slane %v1950_v40, 5  ;;  %v2148_v47 = vrot.slane %v10138_v17, 5  ;;  %v8941_v49 = vld [vmem:[%s10979_s3 + $0x210] sm:$0xff]  }
 0x103   : > { %8324 = vmatprep.subr.bf16.mxu0 %v8924_v5  ;;  %v6793_v55 = vrot.slane %v6785_v16, 9  ;;  %v4819_v17 = vsel %vm9508_vm5, %v7229_v4, %v4818_v63  ;;  %v8945_v63 = vld [vmem:[%s10979_s3 + $0x220] sm:$0xff]   ;;  %v8954_v40 = vld [vmem:[%s9942_s9 + $0x8] ss:$8 sps:$4 sm:$0xff]   ;;  %v2160_v12 = vrot.slane %v10216_v18, 5 }
 0x104   : > { %8015 = vmatpush3.bf16.msra.mxu1 %v8925_v23  ;;  %v1892_v23 = vrot.slane %v1891_v43, 4  ;;  %v1924_v6 = vrot.slane %v1922_v8, 5  ;;  %v1947_v60 = vor.u32 %v1946_v27, %v1943_v46  ;;  %v8939_v8 = vld [vmem:[%s10979_s3 + $0x208] sm:$0xff]   ;;  %v8942_v27 = vld [vmem:[%s10979_s3 + $0x550] sm:$0xff]  }
 0x105   : > { %8317 = vmatmul.mubr.bf16.gmra.mrb[4].mxu0 %v7215_v25  ;;  %8016 = vmatprep.subr.bf16.mxu1 %v8927_v22  ;;  %v4776_v25 = vld [vmem:[%s9942_s9 + $0x20] sm:$0xe]  ;;  %v8950_v18 = vld [vmem:[%s10979_s3 + $0x570] sm:$0xff]  }
 0x106   : > { %8325 = vmatpush3.bf16.msra.mxu0 %v8924_v5  ;;  %8336 = vmatprep.mubr.bf16.mxu0 %v7248_v39  ;;  %v6754_v5 = vld [vmem:[%s9287_s30 + $0x48] sm:$0xf]  ;;  %v4814_v39 = vrot.slane %v10089_v34, 5  ;;  %v1897_v41 = vsel %vm9334_vm2, %v1892_v23, %v1896_v57  ;;  %v8936_v34 = vld [vmem:[%s10979_s3 + $0x538] sm:$0xff]   ;;  %v1925_v61 = vsel %vm9334_vm2, %v1920_v21, %v1924_v6  ;;  %v7228_v31 = vrot.slane %v4776_v25, 9 }
 0x107   : > { %8326 = vmatprep.subr.bf16.mxu0 %v8926_v13  ;;  %v1958_v62 = vshll.u32 %v6754_v5, 16  ;;  %v1948_v3 = vrot.slane %v1947_v60, 4  ;;  %v6792_v57 = vrot.slane %v6784_v32, 9  ;;  %v4779_v23 = vld [vmem:[%s9942_s9 + $0x38] sm:$0xe]  ;;  %v7230_v6 = vrot.slane %v4778_v2, 9 }
 0x108   : > { %8017 = vmatpush3.bf16.msra.mxu1 %v8927_v22  ;;  %v1934_v22 = vrot.slane %v1933_v29, 4  ;;  %v2152_v29 = vrot.slane %v10153_v7, 5  ;;  %v8940_v21 = vld [vmem:[%s10979_s3 + $0x548] sm:$0xff]   ;;  %v6789_v60 = vld [vmem:[%s9287_s30 + $0x38] sm:$0xe] }
 0x109   : > { %8018 = vmatprep.subr.bf16.mxu1 %v8929_v15  ;;  %v1960_v42 = vrot.slane %v1958_v62, 5  ;;  %v1953_v7 = vsel %vm9334_vm2, %v1948_v3, %v1952_v53  ;;  %v2149_v38 = vsel %vm9508_vm5, %v6792_v57, %v2148_v47  ;;  %v8944_v62 = vld [vmem:[%s10979_s3 + $0x558] sm:$0xff]   ;;  %v7296_v32 = vld [vmem:[%s9942_s9 + $0x8] sm:$0xf]  ;;  %v6797_v16 = vrot.slane %v6789_v60, 9 }
 0x10a   : > { %8327 = vmatpush3.bf16.msra.mxu0 %v8926_v13  ;;  %v1955_v13 = vshrl.u32 %v6754_v5, 16  ;;  %v1939_v14 = vsel %vm9334_vm2, %v1934_v22, %v1938_v30  ;;  %v4815_v5 = vsel %vm9508_vm5, %v7228_v31, %v4814_v39  ;;  %v7231_v30 = vrot.slane %v4779_v23, 9  ;;  %v6788_v31 = vld [vmem:[%s9287_s30 + $0x30] sm:$0xe]  ;;  %v6790_v47 = vld [vmem:[%s9287_s30 + $0x40] sm:$0xe] }
 0x10b   : > { %8328 = vmatprep.subr.bf16.mxu0 %v8928_v11  ;;  %v6774_v51 = vcombine.low %v1925_v61, %v1939_v14  ;;  %v7250_v22 = vcombine.low %v4815_v5, %v4819_v17  ;;  %v2156_v61 = vrot.slane %v10213_v33, 5  ;;  %v2168_v33 = vrot.slane %v10230_v9, 5  ;;  %v8952_v9 = vld [vmem:[%s10979_s3 + $0x578] sm:$0xff]   ;;  %v10385_v2 = vld [vmem:[%s9942_s9 + $0xc] sm:$0x1]  ;;  %v8955_v17 = vld [vmem:[%s10979_s3 + $0x580] sm:$0xff]  }
 0x10c   : > { %8019 = vmatpush3.bf16.msra.mxu1 %v8929_v15  ;;  %v1957_v15 = vrot.slane %v1955_v13, 4  ;;  %v5170_v4 = vshrl.u32 %v7296_v32, 16  ;;  %v5173_v53 = vshll.u32 %v7296_v32, 16  ;;  %v2172_v3 = vrot.slane %v10258_v10, 5  ;;  %v10388_v23 = vld [vmem:[%s9942_s9 + $0x14] sm:$0x1] }
 0x10d   : > { %8020 = vmatprep.subr.bf16.mxu1 %v8932_v56  ;;  %v2169_v57 = vsel %vm9508_vm5, %v6797_v16, %v2168_v33 }
 0x10e   : > { %8329 = vmatpush3.bf16.msra.mxu0 %v8928_v11  ;;  %v1911_v11 = vsel %vm9334_vm2, %v1906_v26, %v1910_v24  ;;  %v1961_v43 = vor.u32 %v1960_v42, %v1957_v15  ;;  %v7249_v24 = vcombine.low %v4807_v37, %v4811_v54  ;;  %v4826_v26 = vrot.slane %v10134_v59, 5  ;;  %v8943_v59 = vld [vmem:[%s10979_s3 + $0x218] sm:$0xff]   ;;  %v8946_v15 = vld [vmem:[%s10979_s3 + $0x560] sm:$0xff]   ;;  %v6787_v42 = vld [vmem:[%s9287_s30 + $0x28] sm:$0xe] }
 0x10f   : > { %8330 = vmatprep.subr.bf16.mxu0 %v8930_v52  ;;  %v6773_v50 = vcombine.low %v1897_v41, %v1911_v11  ;;  %v8947_v41 = vld [vmem:[%s10979_s3 + $0x228] sm:$0xff]   ;;  %v6786_v11 = vld [vmem:[%s9287_s30 + $0x20] sm:$0xe]  ;;  %v6795_v14 = vrot.slane %v6787_v42, 9  ;;  %v6796_v37 = vrot.slane %v6788_v31, 9  ;;  %v2164_v54 = vrot.slane %v10223_v44, 5 }
 0x110   : > { %8021 = vmatpush3.bf16.msra.mxu1 %v8932_v56  ;;  %v8938_v56 = vld [vmem:[%s10979_s3 + $0x540] sm:$0xff]   ;;  %v1962_v1 = vrot.slane %v1961_v43, 4  ;;  %v4827_v25 = vsel %vm9508_vm5, %v7231_v30, %v4826_v26  ;;  %v8951_v43 = vld [vmem:[%s10979_s3 + $0x238] sm:$0xff]   ;;  %v5179_v30 = vshll.u32 %v10385_v2, 16  ;;  %v7304_v31 = vld [vmem:[%s9942_s9 + $0x28] sm:$0xf] }
 0x111   : > { %8022 = vmatprep.subr.bf16.mxu1 %v8935_v36  ;;  %v5226_v33 = vshrl.u32 %v7304_v31, 16 }
 0x112   : > { %8331 = vmatpush3.bf16.msra.mxu0 %v8930_v52  ;;  %v1966_v52 = vrot.slane %v1964_v19, 5  ;;  %v8948_v19 = vld [vmem:[%s10979_s3 + $0x568] sm:$0xff]  }
 0x113   : > { %8332 = vmatprep.subr.bf16.mxu0 %v8933_v20 }
 0x114   : > { %8023 = vmatpush3.bf16.msra.mxu1 %v8935_v36  ;;  %v1967_v28 = vsel %vm9334_vm2, %v1962_v1, %v1966_v52  ;;  %v4822_v36 = vrot.slane %v10131_v0, 5  ;;  %v2165_v1 = vsel %vm9508_vm5, %v6796_v37, %v2164_v54  ;;  %v10437_v37 = vld [vmem:[%s9942_s9 + $0x24] sm:$0x1] }
 0x115   : > { %8032 = vmatprep.subr.bf16.mxu1 %v8937_v45  ;;  %v6775_v46 = vcombine.low %v1953_v7, %v1967_v28  ;;  %v8957_v7 = vld [vmem:[%s10979_s3 + $0x248] sm:$0xff]   ;;  %v6818_v28 = vcombine.low %v2165_v1, %v2169_v57  ;;  %v5221_v1 = vshll.u32 %v10437_v37, 16  ;;  %v8967_v57 = vld [vmem:[%s10979_s3 + $0x270] sm:$0xff]  }
 0x116   : > { %8333 = vmatpush3.bf16.msra.mxu0 %v8933_v20  ;;  %v2153_v20 = vsel %vm9508_vm5, %v6793_v55, %v2152_v29  ;;  %v4823_v13 = vsel %vm9508_vm5, %v7230_v6, %v4822_v36  ;;  %v6791_v55 = vld [vmem:[%s9287_s30 + $0x48] sm:$0xe]  ;;  %v6798_v36 = vrot.slane %v6790_v47, 9  ;;  %v2176_v6 = vrot.slane %v10264_v58, 5  ;;  %v8959_v58 = vld [vmem:[%s10979_s3 + $0x250] sm:$0xff]   ;;  %s6365_s30 = sadd.s32 %s7512_s8, %s7511_s20 }
 0x117   : > { %8334 = vmatprep.subr.bf16.mxu0 %v8936_v34  ;;  %8025 = vmatmul.mubr.bf16.vlgmr.msra.gmra.mrb[0].mxu1 %v6773_v50  ;;  %v6816_v0 = vcombine.low %v2149_v38, %v2153_v20  ;;  %v7251_v39 = vcombine.low %v4823_v13, %v4827_v25  ;;  %v7298_v50 = vld [vmem:[%s9942_s9 + $0x10] sm:$0xf]  ;;  %v6799_v26 = vrot.slane %v6791_v55, 9  ;;  %v5193_v38 = vshll.u32 %v10388_v23, 16  ;;  %v8956_v20 = vld [vmem:[%s9942_s9 + $0x18] ss:$8 sps:$4 sm:$0xff]  }
 0x118   : > { %8033 = vmatpush3.bf16.msra.mxu1 %v8937_v45  ;;  %8028 = vmatprep.mubr.bf16.mxu1 %v6774_v51  ;;  %v6794_v45 = vrot.slane %v6786_v11, 9  ;;  %v2161_v51 = vsel %vm9508_vm5, %v6795_v14, %v2160_v12  ;;  %v5184_v44 = vshrl.u32 %v7298_v50, 16  ;;  %v5187_v52 = vshll.u32 %v7298_v50, 16  ;;  %v8968_v13 = vld [vmem:[%s9942_s9 + $0x28] ss:$8 sps:$4 sm:$0xff]   ;;  %v8963_v11 = vld [vmem:[%s10979_s3 + $0x260] sm:$0xff]  }
 0x119   : > { %8034 = vmatprep.subr.bf16.mxu1 %v8939_v8  ;;  %v5181_v25 = vrot.slane %v5179_v30, 5  ;;  %v7302_v14 = vld [vmem:[%s9942_s9 + $0x20] sm:$0xf]  ;;  %v10432_v12 = vld [vmem:[%s9942_s9 + $0x1c] sm:$0x1]  ;;  %s7513_s24 = sshll.u32 %s6365_s30, 7 }
 0x11a   : > { %8335 = vmatpush3.bf16.msra.mxu0 %v8936_v34  ;;  %v8949_v34 = vld [vmem:[%s10979_s3 + $0x230] sm:$0xff]   ;;  %v5186_v10 = vrot.slane %v5184_v44, 4  ;;  %v5189_v5 = vrot.slane %v5187_v52, 5  ;;  %v5212_v54 = vshrl.u32 %v7302_v14, 16  ;;  %v5215_v16 = vshll.u32 %v7302_v14, 16  ;;  %s10918_s17 = scalar_lea.hbm %s10982_s6, %s7513_s24 }
 0x11b   : > { %8344 = vmatprep.subr.bf16.mxu0 %v8938_v56  ;;  %v7306_v50 = vld [vmem:[%s9942_s9 + $0x30] sm:$0xf]  ;;  %v7310_v52 = vld [vmem:[%s9942_s9 + $0x40] sm:$0xf] }
 0x11c   : > { %8035 = vmatpush3.bf16.msra.mxu1 %v8939_v8  ;;  %v2157_v8 = vsel %vm9508_vm5, %v6794_v45, %v2156_v61  ;;  %v8962_v45 = vld [vmem:[%s10979_s3 + $0x598] sm:$0xff]   ;;  %v5243_v44 = vshll.u32 %v7306_v50, 16  ;;  %v5214_v47 = vrot.slane %v5212_v54, 4  ;;  %v5217_v55 = vrot.slane %v5215_v16, 5  ;;  %v2502_v30 = vld [vmem:[%s9320_s14] sm:$0xf] }
 0x11d   : > { %8337 = vmatmul.mubr.bf16.vlgmr.msra.gmra.mrb[0].mxu0 %v7249_v24  ;;  %8036 = vmatprep.subr.bf16.mxu1 %v8941_v49  ;;  %v6817_v29 = vcombine.low %v2157_v8, %v2161_v51  ;;  %v5172_v24 = vrot.slane %v5170_v4, 4  ;;  %v8970_v61 = vld [vmem:[%s9942_s9 + $0x38] ss:$8 sps:$4 sm:$0xff]   ;;  %v8965_v4 = vld [vmem:[%s10979_s3 + $0x268] sm:$0xff]  }
 0x11e   : > { %8345 = vmatpush3.bf16.msra.mxu0 %v8938_v56  ;;  %8340 = vmatprep.mubr.bf16.mxu0 %v7250_v22  ;;  %v8953_v56 = vld [vmem:[%s10979_s3 + $0x240] sm:$0xff]   ;;  %v5190_v22 = vor.u32 %v5189_v5, %v5186_v10  ;;  %v7308_v8 = vld [vmem:[%s9942_s9 + $0x38] sm:$0xf]  ;;  %v10459_v10 = vrot.slane %v5226_v33, 4 }
 0x11f   : > { %8346 = vmatprep.subr.bf16.mxu0 %v8940_v21  ;;  %8029 = vmatmul.mubr.bf16.gmra.mrb[4].mxu1 %v6775_v46  ;;  %v8958_v46 = vld [vmem:[%s10979_s3 + $0x588] sm:$0xff]   ;;  %v8964_v51 = vld [vmem:[%s10979_s3 + $0x5a0] sm:$0xff]  }
 0x120   : > { %8037 = vmatpush3.bf16.msra.mxu1 %v8941_v49  ;;  %8048 = vmatprep.mubr.bf16.mxu1 %v6816_v0  ;;  %v5175_v49 = vrot.slane %v5173_v53, 5  ;;  %v2173_v0 = vsel %vm9508_vm5, %v6798_v36, %v2172_v3  ;;  %v5240_v53 = vshrl.u32 %v7306_v50, 16  ;;  %v5207_v3 = vshll.u32 %v10432_v12, 16  ;;  %v10467_v36 = vld [vmem:[%s9942_s9 + $0x34] sm:$0x1] }
 0x121   : > { %8038 = vmatprep.subr.bf16.mxu1 %v8943_v59 }
 0x122   : > { %8347 = vmatpush3.bf16.msra.mxu0 %v8940_v21  ;;  %v5176_v21 = vor.u32 %v5175_v49, %v5172_v24  ;;  %v5257_v24 = vshll.u32 %v7308_v8, 16  ;;  %v8966_v49 = vld [vmem:[%s10979_s3 + $0x5a8] sm:$0xff]  }
 0x123   : > { %8348 = vmatprep.subr.bf16.mxu0 %v8942_v27 }
 0x124   : > { %8039 = vmatpush3.bf16.msra.mxu1 %v8943_v59  ;;  %v2177_v59 = vsel %vm9508_vm5, %v6799_v26, %v2176_v6  ;;  %v5242_v26 = vrot.slane %v5240_v53, 4  ;;  %v5245_v6 = vrot.slane %v5243_v44, 5 }
 0x125   : > { %8341 = vmatmul.mubr.bf16.gmra.mrb[4].mxu0 %v7251_v39  ;;  %8040 = vmatprep.subr.bf16.mxu1 %v8945_v63  ;;  %v5177_v39 = vrot.slane %v5176_v21, 4  ;;  %v2504_v21 = vld [vmem:[%s9320_s14 + $0x8] sm:$0xf] }
 0x126   : > { %8349 = vmatpush3.bf16.msra.mxu0 %v8942_v27  ;;  %8360 = vmatprep.mubr.bf16.mxu0 %v8954_v40  ;;  %v5195_v27 = vrot.slane %v5193_v38, 5  ;;  %v8973_v40 = vld [vmem:[%s9320_s14] ss:$8 sps:$4 sm:$0xff]   ;;  %v10471_v38 = vld [vmem:[%s9942_s9 + $0x3c] sm:$0x1] }
 0x127   : > { %8350 = vmatprep.subr.bf16.mxu0 %v8944_v62  ;;  %v5182_v42 = vsel %vm9334_vm2, %v5177_v39, %v5181_v25  ;;  %v2536_v25 = vshll.u32 %v2504_v21, 16  ;;  %v5218_v39 = vor.u32 %v5217_v55, %v5214_v47  ;;  %v5465_v47 = vrot.slane %v10388_v23, 5  ;;  %v8977_v55 = vld [vmem:[%s10979_s3 + $0x288] sm:$0xff]  }
 0x128   : > { %8041 = vmatpush3.bf16.msra.mxu1 %v8945_v63  ;;  %v5191_v63 = vrot.slane %v5190_v22, 4  ;;  %v2519_v22 = vshrl.u32 %v2502_v30, 16 }
 0x129   : > { %8042 = vmatprep.subr.bf16.mxu1 %v8947_v41  ;;  %v5219_v44 = vrot.slane %v5218_v39, 4  ;;  %v8990_v39 = vld [vmem:[%s9320_s14 + $0x30] ss:$8 sps:$4 sm:$0xff]  }
 0x12a   : > { %8351 = vmatpush3.bf16.msra.mxu0 %v8944_v62  ;;  %v6819_v62 = vcombine.low %v2173_v0, %v2177_v59  ;;  %v5259_v59 = vrot.slane %v5257_v24, 5 }
 0x12b   : > { %8352 = vmatprep.subr.bf16.mxu0 %v8946_v15 }
 0x12c   : > { %8043 = vmatpush3.bf16.msra.mxu1 %v8947_v41  ;;  %v8960_v41 = vld [vmem:[%s10979_s3 + $0x590] sm:$0xff]  }
 0x12d   : > { %8044 = vmatprep.subr.bf16.mxu1 %v8949_v34 }
 0x12e   : > { %8353 = vmatpush3.bf16.msra.mxu0 %v8946_v15  ;;  %v8961_v15 = vld [vmem:[%s10979_s3 + $0x258] sm:$0xff]  }
 0x12f   : > { %8354 = vmatprep.subr.bf16.mxu0 %v8948_v19 }
 0x130   : > { %8045 = vmatpush3.bf16.msra.mxu1 %v8949_v34  ;;  %v7300_v34 = vld [vmem:[%s9942_s9 + $0x18] sm:$0xf] }
 0x131   : > { %8046 = vmatprep.subr.bf16.mxu1 %v8951_v43  ;;  %v5201_v32 = vshll.u32 %v7300_v34, 16 }
 0x132   : > { %8355 = vmatpush3.bf16.msra.mxu0 %v8948_v19  ;;  %v5196_v19 = vsel %vm9334_vm2, %v5191_v63, %v5195_v27  ;;  %v8969_v27 = vld [vmem:[%s10979_s3 + $0x5b0] sm:$0xff]  }
 0x133   : > { %8356 = vmatprep.subr.bf16.mxu0 %v8950_v18  ;;  %v7328_v60 = vcombine.low %v5182_v42, %v5196_v19 }
 0x134   : > { %8047 = vmatpush3.bf16.msra.mxu1 %v8951_v43  ;;  %v5198_v43 = vshrl.u32 %v7300_v34, 16  ;;  %v2538_v34 = vrot.slane %v2536_v25, 5  ;;  %v2508_v25 = vld [vmem:[%s9320_s14 + $0x18] sm:$0xf] }
 0x135   : > { %8056 = vmatprep.subr.bf16.mxu1 %v8953_v56 }
 0x136   : > { %8357 = vmatpush3.bf16.msra.mxu0 %v8950_v18  ;;  %v5229_v18 = vshll.u32 %v7304_v31, 16  ;;  %v5249_v31 = vshll.u32 %v10467_v36, 16 }
 0x137   : > { %8358 = vmatprep.subr.bf16.mxu0 %v8952_v9  ;;  %8049 = vmatmul.mubr.bf16.vlgmr.msra.gmra.mrb[0].mxu1 %v6817_v29  ;;  %v5254_v29 = vshrl.u32 %v7308_v8, 16  ;;  %v8972_v8 = vld [vmem:[%s10979_s3 + $0x5b8] sm:$0xff]  }
 0x138   : > { %8057 = vmatpush3.bf16.msra.mxu1 %v8953_v56  ;;  %8052 = vmatprep.mubr.bf16.mxu1 %v6818_v28  ;;  %v10449_v56 = vrot.slane %v5201_v32, 5  ;;  %v10461_v5 = vrot.slane %v5229_v18, 5  ;;  %v10464_v28 = vld [vmem:[%s9942_s9 + $0x2c] sm:$0x1]  ;;  %v5263_v32 = vshll.u32 %v10471_v38, 16 }
 0x139   : > { %8058 = vmatprep.subr.bf16.mxu1 %v8957_v7  ;;  %v5256_v0 = vrot.slane %v5254_v29, 4  ;;  %v5235_v14 = vshll.u32 %v10464_v28, 16 }
 0x13a   : > { %8359 = vmatpush3.bf16.msra.mxu0 %v8952_v9  ;;  %v10447_v9 = vrot.slane %v5198_v43, 4  ;;  %v5246_v43 = vor.u32 %v5245_v6, %v5242_v26 }
 0x13b   : > { %8368 = vmatprep.subr.bf16.mxu0 %v8955_v17  ;;  %v5260_v54 = vor.u32 %v5259_v59, %v5256_v0  ;;  %v8979_v0 = vld [vmem:[%s10979_s3 + $0x290] sm:$0xff]  }
 0x13c   : > { %8059 = vmatpush3.bf16.msra.mxu1 %v8957_v7  ;;  %v5271_v7 = vshll.u32 %v7310_v52, 16  ;;  %v5247_v24 = vrot.slane %v5246_v43, 4  ;;  %v8981_v43 = vld [vmem:[%s10979_s3 + $0x298] sm:$0xff]  }
 0x13d   : > { %8361 = vmatmul.mubr.bf16.vlgmr.msra.gmra.mrb[0].mxu0 %v8956_v20  ;;  %8060 = vmatprep.subr.bf16.mxu1 %v8959_v58  ;;  %v10474_v20 = vld [vmem:[%s9942_s9 + $0x44] sm:$0x1] }
 0x13e   : > { %8369 = vmatpush3.bf16.msra.mxu0 %v8955_v17  ;;  %8364 = vmatprep.mubr.bf16.mxu0 %v8968_v13  ;;  %v5268_v17 = vshrl.u32 %v7310_v52, 16  ;;  %v2533_v13 = vshrl.u32 %v2504_v21, 16  ;;  %v5277_v50 = vshll.u32 %v10474_v20, 16 }
 0x13f   : > { %8370 = vmatprep.subr.bf16.mxu0 %v8958_v46  ;;  %8053 = vmatmul.mubr.bf16.gmra.mrb[4].mxu1 %v6819_v62  ;;  %v5204_v62 = vor.u32 %v10449_v56, %v10447_v9  ;;  %v8987_v56 = vld [vmem:[%s9320_s14 + $0x20] ss:$8 sps:$4 sm:$0xff]  }
 0x140   : > { %8061 = vmatpush3.bf16.msra.mxu1 %v8959_v58  ;;  %8072 = vmatprep.mubr.bf16.mxu1 %v8973_v40  ;;  %v8971_v58 = vld [vmem:[%s10979_s3 + $0x278] sm:$0xff]   ;;  %v5270_v63 = vrot.slane %v5268_v17, 4  ;;  %v5273_v40 = vrot.slane %v5271_v7, 5  ;;  %v2535_v19 = vrot.slane %v2533_v13, 4  ;;  %v5261_v17 = vrot.slane %v5260_v54, 4 }
 0x141   : > { %8062 = vmatprep.subr.bf16.mxu1 %v8961_v15  ;;  %v5205_v53 = vrot.slane %v5204_v62, 4  ;;  %v8978_v62 = vld [vmem:[%s10979_s3 + $0x5c8] sm:$0xff]  }
 0x142   : > { %8371 = vmatpush3.bf16.msra.mxu0 %v8958_v46  ;;  %v2522_v46 = vshll.u32 %v2502_v30, 16  ;;  %v5274_v16 = vor.u32 %v5273_v40, %v5270_v63  ;;  %v2539_v9 = vor.u32 %v2538_v34, %v2535_v19 }
 0x143   : > { %8372 = vmatprep.subr.bf16.mxu0 %v8960_v41 }
 0x144   : > { %8063 = vmatpush3.bf16.msra.mxu1 %v8961_v15  ;;  %v10486_v15 = vld [vmem:[%s9320_s14 + $0x4] sm:$0x1]  ;;  %v2524_v42 = vrot.slane %v2522_v46, 5  ;;  %v2540_v21 = vrot.slane %v2539_v9, 4  ;;  %v7341_v46 = vld [vmem:[%s9942_s9 + $0x10] sm:$0xe] }
 0x145   : > { %8365 = vmatmul.mubr.bf16.gmra.mrb[4].mxu0 %v8970_v61  ;;  %8064 = vmatprep.subr.bf16.mxu1 %v8963_v11  ;;  %v5223_v61 = vrot.slane %v5221_v1, 5  ;;  %v2528_v33 = vshll.u32 %v10486_v15, 16  ;;  %v5251_v1 = vrot.slane %v5249_v31, 5  ;;  %v2564_v31 = vshll.u32 %v2508_v25, 16 }
 0x146   : > { %8373 = vmatpush3.bf16.msra.mxu0 %v8960_v41  ;;  %8384 = vmatprep.mubr.bf16.mxu0 %v7328_v60  ;;  %v10489_v41 = vld [vmem:[%s9320_s14 + $0xc] sm:$0x1]  ;;  %v5232_v60 = vor.u32 %v10461_v5, %v10459_v10  ;;  %v5279_v10 = vrot.slane %v5277_v50, 5  ;;  %v8975_v5 = vld [vmem:[%s10979_s3 + $0x5c0] sm:$0xff]  }
 0x147   : > { %8374 = vmatprep.subr.bf16.mxu0 %v8962_v45  ;;  %v2542_v18 = vshll.u32 %v10489_v41, 16  ;;  %v2530_v7 = vrot.slane %v2528_v33, 5  ;;  %v5224_v6 = vsel %vm9334_vm2, %v5219_v44, %v5223_v61  ;;  %v5252_v13 = vsel %vm9334_vm2, %v5247_v24, %v5251_v1  ;;  %v2510_v33 = vld [vmem:[%s9320_s14 + $0x20] sm:$0xf] }
 0x148   : > { %8065 = vmatpush3.bf16.msra.mxu1 %v8963_v11  ;;  %v2521_v11 = vrot.slane %v2519_v22, 4  ;;  %v5233_v29 = vrot.slane %v5232_v60, 4  ;;  %v7340_v22 = vld [vmem:[%s9942_s9 + $0x8] sm:$0xe]  ;;  %v8980_v60 = vld [vmem:[%s10979_s3 + $0x5d0] sm:$0xff]   ;;  %v2566_v9 = vrot.slane %v2564_v31, 5 }
 0x149   : > { %8066 = vmatprep.subr.bf16.mxu1 %v8965_v4  ;;  %v2544_v23 = vrot.slane %v2542_v18, 5  ;;  %v7348_v34 = vrot.slane %v7340_v22, 9  ;;  %v2512_v18 = vld [vmem:[%s9320_s14 + $0x28] sm:$0xf]  ;;  %v2578_v1 = vshll.u32 %v2510_v33, 16 }
 0x14a   : > { %8375 = vmatpush3.bf16.msra.mxu0 %v8962_v45  ;;  %v5209_v45 = vrot.slane %v5207_v3, 5  ;;  %v2525_v52 = vor.u32 %v2524_v42, %v2521_v11  ;;  %v5237_v3 = vrot.slane %v5235_v14, 5  ;;  %v2561_v14 = vshrl.u32 %v2508_v25, 16 }
 0x14b   : > { %8376 = vmatprep.subr.bf16.mxu0 %v8964_v51  ;;  %v2545_v40 = vsel %vm9334_vm2, %v2540_v21, %v2544_v23  ;;  %v5473_v23 = vrot.slane %v10437_v37, 5  ;;  %v2580_v22 = vrot.slane %v2578_v1, 5  ;;  %v8997_v37 = vld [vmem:[%s10979_s3 + $0x2d0] sm:$0xff]  }
 0x14c   : > { %8067 = vmatpush3.bf16.msra.mxu1 %v8965_v4  ;;  %v8976_v4 = vld [vmem:[%s9320_s14 + $0x10] ss:$8 sps:$4 sm:$0xff]   ;;  %v5210_v26 = vsel %vm9334_vm2, %v5205_v53, %v5209_v45  ;;  %v2526_v30 = vrot.slane %v2525_v52, 4  ;;  %v5238_v59 = vsel %vm9334_vm2, %v5233_v29, %v5237_v3  ;;  %v7349_v45 = vrot.slane %v7341_v46, 9  ;;  %v10558_v53 = vld [vmem:[%s9320_s14 + $0x1c] sm:$0x1] }
 0x14d   : > { %8068 = vmatprep.subr.bf16.mxu1 %v8967_v57  ;;  %v7330_v19 = vcombine.low %v5238_v59, %v5252_v13  ;;  %v2563_v52 = vrot.slane %v2561_v14, 4  ;;  %v2575_v3 = vshrl.u32 %v2510_v33, 16  ;;  %v7343_v14 = vld [vmem:[%s9942_s9 + $0x20] sm:$0xe]  ;;  %v8991_v33 = vld [vmem:[%s10979_s3 + $0x2b8] sm:$0xff]  }
 0x14e   : > { %8377 = vmatpush3.bf16.msra.mxu0 %v8964_v51  ;;  %v8974_v51 = vld [vmem:[%s10979_s3 + $0x280] sm:$0xff]   ;;  %v2531_v63 = vsel %vm9334_vm2, %v2526_v30, %v2530_v7  ;;  %v10579_v30 = vld [vmem:[%s9320_s14 + $0x2c] sm:$0x1] }
 0x14f   : > { %8378 = vmatprep.subr.bf16.mxu0 %v8966_v49  ;;  %v6872_v61 = vcombine.low %v2531_v63, %v2545_v40  ;;  %v2567_v7 = vor.u32 %v2566_v9, %v2563_v52  ;;  %v2577_v21 = vrot.slane %v2575_v3, 4 }
 0x150   : > { %8069 = vmatpush3.bf16.msra.mxu1 %v8967_v57  ;;  %v5461_v57 = vrot.slane %v10385_v2, 5  ;;  %v5275_v2 = vrot.slane %v5274_v16, 4 }
 0x151   : > { %8070 = vmatprep.subr.bf16.mxu1 %v8971_v58  ;;  %v2581_v31 = vor.u32 %v2580_v22, %v2577_v21  ;;  %v2784_v22 = vld [vmem:[%s9320_s14] sm:$0xe] }
 0x152   : > { %8379 = vmatpush3.bf16.msra.mxu0 %v8966_v49  ;;  %v5265_v49 = vrot.slane %v5263_v32, 5  ;;  %v5280_v50 = vsel %vm9334_vm2, %v5275_v2, %v5279_v10  ;;  %v2570_v10 = vshll.u32 %v10558_v53, 16  ;;  %v8985_v2 = vld [vmem:[%s10979_s3 + $0x2a8] sm:$0xff]  }
 0x153   : > { %8380 = vmatprep.subr.bf16.mxu0 %v8969_v27  ;;  %v2582_v9 = vrot.slane %v2581_v31, 4  ;;  %v5485_v31 = vrot.slane %v10471_v38, 5 }
 0x154   : > { %8071 = vmatpush3.bf16.msra.mxu1 %v8971_v58  ;;  %v2506_v58 = vld [vmem:[%s9320_s14 + $0x10] sm:$0xf]  ;;  %v5266_v32 = vsel %vm9334_vm2, %v5261_v17, %v5265_v49  ;;  %v2572_v25 = vrot.slane %v2570_v10, 5 }
 0x155   : > { %8080 = vmatprep.subr.bf16.mxu1 %v8974_v51  ;;  %v2547_v11 = vshrl.u32 %v2506_v58, 16  ;;  %v2550_v42 = vshll.u32 %v2506_v58, 16  ;;  %v7331_v44 = vcombine.low %v5266_v32, %v5280_v50  ;;  %v2514_v17 = vld [vmem:[%s9320_s14 + $0x30] sm:$0xf]  ;;  %v10603_v32 = vld [vmem:[%s9942_s9 + $0x28] sm:$0xe] }
 0x156   : > { %8381 = vmatpush3.bf16.msra.mxu0 %v8969_v27  ;;  %v7329_v27 = vcombine.low %v5210_v26, %v5224_v6  ;;  %v10575_v26 = vld [vmem:[%s9320_s14 + $0x24] sm:$0x1]  ;;  %v2516_v6 = vld [vmem:[%s9320_s14 + $0x38] sm:$0xf]  ;;  %v2606_v63 = vshll.u32 %v2514_v17, 16  ;;  %v7352_v10 = vrot.slane %v10603_v32, 9 }
 0x157   : > { %8382 = vmatprep.subr.bf16.mxu0 %v8972_v8  ;;  %8073 = vmatmul.mubr.bf16.vlgmr.msra.gmra.mrb[0].mxu1 %v8976_v4  ;;  %v2549_v54 = vrot.slane %v2547_v11, 4  ;;  %v2552_v16 = vrot.slane %v2550_v42, 5  ;;  %v10555_v4 = vld [vmem:[%s9320_s14 + $0x14] sm:$0x1]  ;;  %v2617_v40 = vshrl.u32 %v2516_v6, 16  ;;  %v8986_v11 = vld [vmem:[%s10979_s3 + $0x5e8] sm:$0xff]  }
 0x158   : > { %8081 = vmatpush3.bf16.msra.mxu1 %v8974_v51  ;;  %8076 = vmatprep.mubr.bf16.mxu1 %v8987_v56  ;;  %v5466_v51 = vsel %vm9508_vm5, %v7349_v45, %v5465_v47  ;;  %v8983_v56 = vld [vmem:[%s10979_s3 + $0x2a0] sm:$0xff]   ;;  %v2592_v47 = vshll.u32 %v2512_v18, 16  ;;  %v2556_v49 = vshll.u32 %v10555_v4, 16  ;;  %v2568_v42 = vrot.slane %v2567_v7, 4  ;;  %v10606_v50 = vld [vmem:[%s9942_s9 + $0x30] sm:$0xe] }
 0x159   : > { %8082 = vmatprep.subr.bf16.mxu1 %v8977_v55  ;;  %v2553_v24 = vor.u32 %v2552_v16, %v2549_v54  ;;  %v2620_v45 = vshll.u32 %v2516_v6, 16 }
 0x15a   : > { %8383 = vmatpush3.bf16.msra.mxu0 %v8972_v8  ;;  %v5462_v8 = vsel %vm9508_vm5, %v7348_v34, %v5461_v57  ;;  %v2589_v57 = vshrl.u32 %v2512_v18, 16  ;;  %v2594_v58 = vrot.slane %v2592_v47, 5  ;;  %v2558_v13 = vrot.slane %v2556_v49, 5 }
 0x15b   : > { %8392 = vmatprep.subr.bf16.mxu0 %v8975_v5  ;;  %v7372_v29 = vcombine.low %v5462_v8, %v5466_v51  ;;  %v10584_v59 = vrot.slane %v2553_v24, 4  ;;  %v2598_v34 = vshll.u32 %v10579_v30, 16  ;;  %v2608_v18 = vrot.slane %v2606_v63, 5  ;;  %v8989_v51 = vld [vmem:[%s10979_s3 + $0x5f0] sm:$0xff]   ;;  %v8993_v24 = vld [vmem:[%s10979_s3 + $0x2c0] sm:$0xff]  }
 0x15c   : > { %8083 = vmatpush3.bf16.msra.mxu1 %v8977_v55  ;;  %v8982_v55 = vld [vmem:[%s10979_s3 + $0x5d8] sm:$0xff]   ;;  %v2591_v46 = vrot.slane %v2589_v57, 4  ;;  %v2619_v8 = vrot.slane %v2617_v40, 4  ;;  %v7351_v47 = vrot.slane %v7343_v14, 9  ;;  %v8994_v63 = vld [vmem:[%s10979_s3 + $0x600] sm:$0xff]  }
 0x15d   : > { %8385 = vmatmul.mubr.bf16.vlgmr.msra.gmra.mrb[0].mxu0 %v7329_v27  ;;  %8084 = vmatprep.subr.bf16.mxu1 %v8979_v0  ;;  %v2603_v27 = vshrl.u32 %v2514_v17, 16  ;;  %v2600_v1 = vrot.slane %v2598_v34, 5  ;;  %v2559_v49 = vsel %vm9334_vm2, %v10584_v59, %v2558_v13  ;;  %v7353_v17 = vrot.slane %v10606_v50, 9 }
 0x15e   : > { %8393 = vmatpush3.bf16.msra.mxu0 %v8975_v5  ;;  %8388 = vmatprep.mubr.bf16.mxu0 %v7330_v19  ;;  %v5469_v5 = vrot.slane %v10432_v12, 5  ;;  %v2584_v19 = vshll.u32 %v10575_v26, 16  ;;  %v5474_v12 = vsel %vm9508_vm5, %v7351_v47, %v5473_v23  ;;  %v2814_v34 = vrot.slane %v10489_v41, 5  ;;  %v9003_v47 = vld [vmem:[%s10979_s3 + $0x2e8] sm:$0xff]  }
 0x15f   : > { %8394 = vmatprep.subr.bf16.mxu0 %v8978_v62  ;;  %8077 = vmatmul.mubr.bf16.gmra.mrb[4].mxu1 %v8990_v39  ;;  %v10590_v39 = vld [vmem:[%s9320_s14 + $0x34] sm:$0x1]  ;;  %v2605_v54 = vrot.slane %v2603_v27, 4 }
 0x160   : > { %8085 = vmatpush3.bf16.msra.mxu1 %v8979_v0  ;;  %8096 = vmatprep.mubr.bf16.mxu1 %v6872_v61  ;;  %v8984_v0 = vld [vmem:[%s10979_s3 + $0x5e0] sm:$0xff]   ;;  %v7342_v61 = vld [vmem:[%s9942_s9 + $0x18] sm:$0xe]  ;;  %v2612_v16 = vshll.u32 %v10590_v39, 16 }
 0x161   : > { %8086 = vmatprep.subr.bf16.mxu1 %v8981_v43  ;;  %v7350_v57 = vrot.slane %v7342_v61, 9 }
 0x162   : > { %8395 = vmatpush3.bf16.msra.mxu0 %v8978_v62  ;;  %v8988_v62 = vld [vmem:[%s10979_s3 + $0x2b0] sm:$0xff]   ;;  %v2614_v7 = vrot.slane %v2612_v16, 5 }
 0x163   : > { %8396 = vmatprep.subr.bf16.mxu0 %v8980_v60  ;;  %v5470_v13 = vsel %vm9508_vm5, %v7350_v57, %v5469_v5  ;;  %v9002_v57 = vld [vmem:[%s10979_s3 + $0x620] sm:$0xff]  }
 0x164   : > { %8087 = vmatpush3.bf16.msra.mxu1 %v8981_v43  ;;  %v10600_v43 = vld [vmem:[%s9320_s14 + $0x3c] sm:$0x1] }
 0x165   : > { %8389 = vmatmul.mubr.bf16.gmra.mrb[4].mxu0 %v7331_v44  ;;  %8088 = vmatprep.subr.bf16.mxu1 %v8983_v56  ;;  %v2622_v44 = vrot.slane %v2620_v45, 5  ;;  %v2626_v52 = vshll.u32 %v10600_v43, 16  ;;  %v7373_v45 = vcombine.low %v5470_v13, %v5474_v12 }
 0x166   : > { %8397 = vmatpush3.bf16.msra.mxu0 %v8980_v60  ;;  %8408 = vmatprep.mubr.bf16.mxu0 %v7372_v29  ;;  %v2595_v60 = vor.u32 %v2594_v58, %v2591_v46  ;;  %v5481_v29 = vrot.slane %v10467_v36, 5  ;;  %v2573_v36 = vsel %vm9334_vm2, %v2568_v42, %v2572_v25  ;;  %v8995_v25 = vld [vmem:[%s10979_s3 + $0x2c8] sm:$0xff]   ;;  %v6884_v42 = vrot.slane %v2784_v22, 9 }
 0x167   : > { %8398 = vmatprep.subr.bf16.mxu0 %v8982_v55  ;;  %v2623_v6 = vor.u32 %v2622_v44, %v2619_v8  ;;  %v2628_v21 = vrot.slane %v2626_v52, 5  ;;  %v6873_v59 = vcombine.low %v2559_v49, %v2573_v36  ;;  %v8998_v52 = vld [vmem:[%s10979_s3 + $0x610] sm:$0xff]   ;;  %v2788_v36 = vld [vmem:[%s9320_s14 + $0x20] sm:$0xe]  ;;  %v2830_v22 = vrot.slane %v10579_v30, 5 }
 0x168   : > { %8089 = vmatpush3.bf16.msra.mxu1 %v8983_v56  ;;  %v2586_v56 = vrot.slane %v2584_v19, 5  ;;  %v2596_v3 = vrot.slane %v2595_v60, 4  ;;  %v5482_v61 = vsel %vm9508_vm5, %v7353_v17, %v5481_v29  ;;  %v5489_v60 = vrot.slane %v10474_v20, 5  ;;  %v8999_v20 = vld [vmem:[%s10979_s3 + $0x2d8] sm:$0xff]   ;;  %v9005_v49 = vld [vmem:[%s10979_s3 + $0x2f0] sm:$0xff]  }
 0x169   : > { %8090 = vmatprep.subr.bf16.mxu1 %v8985_v2  ;;  %v2624_v5 = vrot.slane %v2623_v6, 4  ;;  %v2787_v29 = vld [vmem:[%s9320_s14 + $0x18] sm:$0xe]  ;;  %v2818_v17 = vrot.slane %v10555_v4, 5  ;;  %v6888_v4 = vrot.slane %v2788_v36, 9 }
 0x16a   : > { %8399 = vmatpush3.bf16.msra.mxu0 %v8982_v55  ;;  %v5477_v55 = vrot.slane %v10464_v28, 5  ;;  %v8992_v28 = vld [vmem:[%s10979_s3 + $0x5f8] sm:$0xff]   ;;  %v2587_v46 = vsel %vm9334_vm2, %v2582_v9, %v2586_v56  ;;  %v2601_v58 = vsel %vm9334_vm2, %v2596_v3, %v2600_v1  ;;  %v9001_v3 = vld [vmem:[%s10979_s3 + $0x2e0] sm:$0xff]  }
 0x16b   : > { %8400 = vmatprep.subr.bf16.mxu0 %v8984_v0  ;;  %v6874_v40 = vcombine.low %v2587_v46, %v2601_v58  ;;  %v2629_v41 = vsel %vm9334_vm2, %v2624_v5, %v2628_v21  ;;  %v9000_v9 = vld [vmem:[%s10979_s3 + $0x618] sm:$0xff]   ;;  %v2826_v21 = vrot.slane %v10575_v26, 5  ;;  %v7420_v46 = vld [vmem:[%s9942_s9 + $0x10] sm:$0xf] }
 0x16c   : > { %8091 = vmatpush3.bf16.msra.mxu1 %v8985_v2  ;;  %v2609_v2 = vor.u32 %v2608_v18, %v2605_v54  ;;  %v5478_v23 = vsel %vm9508_vm5, %v7352_v10, %v5477_v55  ;;  %v9010_v1 = vld [vmem:[%s9942_s9 + $0x10] ss:$8 sps:$4 sm:$0xff]   ;;  %v5833_v30 = vshrl.u32 %v7420_v46, 16  ;;  %v5836_v13 = vshll.u32 %v7420_v46, 16 }
 0x16d   : > { %8092 = vmatprep.subr.bf16.mxu1 %v8988_v62  ;;  %v7374_v18 = vcombine.low %v5478_v23, %v5482_v61  ;;  %v2786_v55 = vld [vmem:[%s9320_s14 + $0x10] sm:$0xe]  ;;  %v9007_v6 = vld [vmem:[%s10979_s3 + $0x2f8] sm:$0xff]  }
 0x16e   : > { %8401 = vmatpush3.bf16.msra.mxu0 %v8984_v0  ;;  %v2785_v0 = vld [vmem:[%s9320_s14 + $0x8] sm:$0xe]  ;;  %v2610_v27 = vrot.slane %v2609_v2, 4  ;;  %v6886_v10 = vrot.slane %v2786_v55, 9  ;;  %v6887_v2 = vrot.slane %v2787_v29, 9 }
 0x16f   : > { %8402 = vmatprep.subr.bf16.mxu0 %v8986_v11  ;;  %v6885_v19 = vrot.slane %v2785_v0, 9  ;;  %v7422_v58 = vld [vmem:[%s9942_s9 + $0x18] sm:$0xf]  ;;  %v7424_v55 = vld [vmem:[%s9942_s9 + $0x20] sm:$0xf] }
 0x170   : > { %8093 = vmatpush3.bf16.msra.mxu1 %v8988_v62  ;;  %v2810_v62 = vrot.slane %v10486_v15, 5  ;;  %v7347_v15 = vld [vmem:[%s9942_s9 + $0x40] sm:$0xe]  ;;  %v2615_v14 = vsel %vm9334_vm2, %v2610_v27, %v2614_v7  ;;  %v2789_v7 = vld [vmem:[%s9320_s14 + $0x28] sm:$0xe]  ;;  %v5850_v27 = vshll.u32 %v7422_v58, 16 }
 0x171   : > { %8094 = vmatprep.subr.bf16.mxu1 %v8991_v33  ;;  %v7355_v50 = vrot.slane %v7347_v15, 9  ;;  %v2815_v16 = vsel %vm9508_vm5, %v6885_v19, %v2814_v34  ;;  %v6875_v8 = vcombine.low %v2615_v14, %v2629_v41  ;;  %v6889_v0 = vrot.slane %v2789_v7, 9  ;;  %v2791_v5 = vld [vmem:[%s9320_s14 + $0x38] sm:$0xe]  ;;  %v10738_v34 = vld [vmem:[%s9942_s9 + $0x14] sm:$0x1] }
 0x172   : > { %8403 = vmatpush3.bf16.msra.mxu0 %v8986_v11  ;;  %v7346_v11 = vld [vmem:[%s9942_s9 + $0x38] sm:$0xe]  ;;  %v2811_v54 = vsel %vm9508_vm5, %v6884_v42, %v2810_v62  ;;  %v9009_v62 = vld [vmem:[%s10979_s3 + $0x300] sm:$0xff]   ;;  %v2834_v19 = vrot.slane %v10590_v39, 5  ;;  %v10741_v15 = vld [vmem:[%s9942_s9 + $0x1c] sm:$0x1] }
 0x173   : > { %8404 = vmatprep.subr.bf16.mxu0 %v8989_v51  ;;  %v7354_v32 = vrot.slane %v7346_v11, 9  ;;  %v6908_v38 = vcombine.low %v2811_v54, %v2815_v16  ;;  %v5490_v44 = vsel %vm9508_vm5, %v7355_v50, %v5489_v60  ;;  %v2831_v12 = vsel %vm9508_vm5, %v6889_v0, %v2830_v22  ;;  %v9008_v11 = vld [vmem:[%s10979_s3 + $0x638] sm:$0xff]   ;;  %v9013_v39 = vld [vmem:[%s10979_s3 + $0x308] sm:$0xff]  }
 0x174   : > { %8095 = vmatpush3.bf16.msra.mxu1 %v8991_v33  ;;  %v8996_v33 = vld [vmem:[%s10979_s3 + $0x608] sm:$0xff]   ;;  %v5852_v61 = vrot.slane %v5850_v27, 5  ;;  %v2838_v60 = vrot.slane %v10600_v43, 5  ;;  %v5842_v50 = vshll.u32 %v10738_v34, 16  ;;  %v5856_v54 = vshll.u32 %v10741_v15, 16  ;;  %v9015_v43 = vld [vmem:[%s10979_s3 + $0x310] sm:$0xff]  }
 0x175   : > { %8104 = vmatprep.subr.bf16.mxu1 %v8993_v24  ;;  %v9012_v16 = vld [vmem:[%s9942_s9 + $0x20] ss:$8 sps:$4 sm:$0xff]   ;;  %v5861_v36 = vshrl.u32 %v7424_v55, 16  ;;  %v9018_v7 = vld [vmem:[%s10979_s3 + $0x658] sm:$0xff]  }
 0x176   : > { %8405 = vmatpush3.bf16.msra.mxu0 %v8989_v51  ;;  %v5486_v51 = vsel %vm9508_vm5, %v7354_v32, %v5485_v31  ;;  %v6891_v31 = vrot.slane %v2791_v5, 9  ;;  %v9011_v32 = vld [vmem:[%s10979_s3 + $0x640] sm:$0xff]  }
 0x177   : > { %8406 = vmatprep.subr.bf16.mxu0 %v8992_v28  ;;  %8097 = vmatmul.mubr.bf16.vlgmr.msra.gmra.mrb[0].mxu1 %v6873_v59  ;;  %v7375_v56 = vcombine.low %v5486_v51, %v5490_v44  ;;  %v2819_v59 = vsel %vm9508_vm5, %v6886_v10, %v2818_v17  ;;  %v5844_v44 = vrot.slane %v5842_v50, 5  ;;  %v9025_v10 = vld [vmem:[%s9942_s9 + $0x40] ss:$8 sps:$4 sm:$0xff]   ;;  %v7428_v17 = vld [vmem:[%s9942_s9 + $0x30] sm:$0xf] }
 0x178   : > { %8105 = vmatpush3.bf16.msra.mxu1 %v8993_v24  ;;  %8100 = vmatprep.mubr.bf16.mxu1 %v6874_v40  ;;  %v9004_v24 = vld [vmem:[%s10979_s3 + $0x628] sm:$0xff]   ;;  %v2790_v40 = vld [vmem:[%s9320_s14 + $0x30] sm:$0xe]  ;;  %v2839_v51 = vsel %vm9508_vm5, %v6891_v31, %v2838_v60 }
 0x179   : > { %8106 = vmatprep.subr.bf16.mxu1 %v8995_v25  ;;  %v6890_v41 = vrot.slane %v2790_v40, 9 }
 0x17a   : > { %8407 = vmatpush3.bf16.msra.mxu0 %v8992_v28  ;;  %v2822_v28 = vrot.slane %v10558_v53, 5  ;;  %v9006_v53 = vld [vmem:[%s10979_s3 + $0x630] sm:$0xff]  }
 0x17b   : > { %8416 = vmatprep.subr.bf16.mxu0 %v8994_v63 }
 0x17c   : > { %8107 = vmatpush3.bf16.msra.mxu1 %v8995_v25  ;;  %v2823_v26 = vsel %vm9508_vm5, %v6887_v2, %v2822_v28  ;;  %v5847_v25 = vshrl.u32 %v7422_v58, 16  ;;  %v7430_v2 = vld [vmem:[%s9942_s9 + $0x38] sm:$0xf]  ;;  %v9019_v28 = vld [vmem:[%s10979_s3 + $0x320] sm:$0xff]   ;;  %v5889_v58 = vshrl.u32 %v7428_v17, 16 }
 0x17d   : > { %8409 = vmatmul.mubr.bf16.vlgmr.msra.gmra.mrb[0].mxu0 %v7373_v45  ;;  %8108 = vmatprep.subr.bf16.mxu1 %v8997_v37  ;;  %v6909_v42 = vcombine.low %v2819_v59, %v2823_v26  ;;  %v5835_v45 = vrot.slane %v5833_v30, 4  ;;  %v5903_v0 = vshrl.u32 %v7430_v2, 16  ;;  %v9020_v59 = vld [vmem:[%s10979_s3 + $0x660] sm:$0xff]   ;;  %v9021_v26 = vld [vmem:[%s10979_s3 + $0x328] sm:$0xff]  }
 0x17e   : > { %8417 = vmatpush3.bf16.msra.mxu0 %v8994_v63  ;;  %8412 = vmatprep.mubr.bf16.mxu0 %v7374_v18  ;;  %v2827_v63 = vsel %vm9508_vm5, %v6888_v4, %v2826_v21  ;;  %v5849_v23 = vrot.slane %v5847_v25, 4  ;;  %v5864_v21 = vshll.u32 %v7424_v55, 16  ;;  %v5892_v4 = vshll.u32 %v7428_v17, 16  ;;  %v10793_v30 = vld [vmem:[%s9942_s9 + $0x24] sm:$0x1]  ;;  %v9028_v17 = vld [vmem:[%s10979_s3 + $0x678] sm:$0xff]  }
 0x17f   : > { %8418 = vmatprep.subr.bf16.mxu0 %v8996_v33  ;;  %8101 = vmatmul.mubr.bf16.gmra.mrb[4].mxu1 %v6875_v8  ;;  %v6910_v14 = vcombine.low %v2827_v63, %v2831_v12  ;;  %v9014_v8 = vld [vmem:[%s10979_s3 + $0x648] sm:$0xff]   ;;  %v5891_v12 = vrot.slane %v5889_v58, 4  ;;  %v5905_v5 = vrot.slane %v5903_v0, 4 }
 0x180   : > { %8109 = vmatpush3.bf16.msra.mxu1 %v8997_v37  ;;  %8120 = vmatprep.mubr.bf16.mxu1 %v6908_v38  ;;  %v5838_v37 = vrot.slane %v5836_v13, 5  ;;  %v5853_v18 = vor.u32 %v5852_v61, %v5849_v23  ;;  %v9023_v38 = vld [vmem:[%s9942_s9 + $0x30] ss:$8 sps:$4 sm:$0xff]   ;;  %v5863_v13 = vrot.slane %v5861_v36, 4  ;;  %v5866_v25 = vrot.slane %v5864_v21, 5  ;;  %v9022_v61 = vld [vmem:[%s10979_s3 + $0x668] sm:$0xff]  }
 0x181   : > { %8110 = vmatprep.subr.bf16.mxu1 %v8999_v20  ;;  %v10796_v63 = vld [vmem:[%s9942_s9 + $0x2c] sm:$0x1]  ;;  %v5894_v40 = vrot.slane %v5892_v4, 5  ;;  %v7434_v23 = vld [vmem:[%s9942_s9 + $0x48] sm:$0xf] }
 0x182   : > { %8419 = vmatpush3.bf16.msra.mxu0 %v8996_v33  ;;  %v5839_v33 = vor.u32 %v5838_v37, %v5835_v45  ;;  %v9024_v45 = vld [vmem:[%s10979_s3 + $0x330] sm:$0xff]   ;;  %v7432_v37 = vld [vmem:[%s9942_s9 + $0x40] sm:$0xf]  ;;  %v5884_v60 = vshll.u32 %v10796_v63, 16 }
 0x183   : > { %8420 = vmatprep.subr.bf16.mxu0 %v8998_v52  ;;  %v9030_v36 = vld [vmem:[%s9320_s14 + $0x18] ss:$8 sps:$4 sm:$0xff]  }
 0x184   : > { %8111 = vmatpush3.bf16.msra.mxu1 %v8999_v20  ;;  %v2835_v20 = vsel %vm9508_vm5, %v6890_v41, %v2834_v19  ;;  %v10802_v19 = vld [vmem:[%s9942_s9 + $0x3c] sm:$0x1]  ;;  %v5870_v41 = vshll.u32 %v10793_v30, 16 }
 0x185   : > { %8413 = vmatmul.mubr.bf16.gmra.mrb[4].mxu0 %v7375_v56  ;;  %8112 = vmatprep.subr.bf16.mxu1 %v9001_v3  ;;  %v5840_v56 = vrot.slane %v5839_v33, 4  ;;  %v5931_v33 = vshrl.u32 %v7434_v23, 16 }
 0x186   : > { %8421 = vmatpush3.bf16.msra.mxu0 %v8998_v52  ;;  %8432 = vmatprep.mubr.bf16.mxu0 %v9010_v1  ;;  %v5858_v52 = vrot.slane %v5856_v54, 5  ;;  %v9029_v1 = vld [vmem:[%s9320_s14 + $0x8] ss:$8 sps:$4 sm:$0xff]   ;;  %v5912_v54 = vshll.u32 %v10802_v19, 16 }
 0x187   : > { %8422 = vmatprep.subr.bf16.mxu0 %v9000_v9  ;;  %v5845_v29 = vsel %vm9334_vm2, %v5840_v56, %v5844_v44 }
 0x188   : > { %8113 = vmatpush3.bf16.msra.mxu1 %v9001_v3  ;;  %v5854_v3 = vrot.slane %v5853_v18, 4  ;;  %v5934_v18 = vshll.u32 %v7434_v23, 16 }
 0x189   : > { %8114 = vmatprep.subr.bf16.mxu1 %v9003_v47 }
 0x18a   : > { %8423 = vmatpush3.bf16.msra.mxu0 %v9000_v9  ;;  %v6911_v9 = vcombine.low %v2835_v20, %v2839_v51  ;;  %v5872_v51 = vrot.slane %v5870_v41, 5 }
 0x18b   : > { %8424 = vmatprep.subr.bf16.mxu0 %v9002_v57 }
 0x18c   : > { %8115 = vmatpush3.bf16.msra.mxu1 %v9003_v47  ;;  %v9016_v47 = vld [vmem:[%s10979_s3 + $0x650] sm:$0xff]  }
 0x18d   : > { %8116 = vmatprep.subr.bf16.mxu1 %v9005_v49 }
 0x18e   : > { %8425 = vmatpush3.bf16.msra.mxu0 %v9002_v57  ;;  %v9017_v57 = vld [vmem:[%s10979_s3 + $0x318] sm:$0xff]  }
 0x18f   : > { %8426 = vmatprep.subr.bf16.mxu0 %v9004_v24 }
 0x190   : > { %8117 = vmatpush3.bf16.msra.mxu1 %v9005_v49  ;;  %v7426_v49 = vld [vmem:[%s9942_s9 + $0x28] sm:$0xf] }
 0x191   : > { %8118 = vmatprep.subr.bf16.mxu1 %v9007_v6  ;;  %v5875_v22 = vshrl.u32 %v7426_v49, 16  ;;  %v5878_v46 = vshll.u32 %v7426_v49, 16  ;;  %v5936_v49 = vrot.slane %v5934_v18, 5  ;;  %v9038_v18 = vld [vmem:[%s10979_s3 + $0x6a8] sm:$0xff]  }
 0x192   : > { %8427 = vmatpush3.bf16.msra.mxu0 %v9004_v24  ;;  %v5859_v24 = vsel %vm9334_vm2, %v5854_v3, %v5858_v52  ;;  %v5886_v52 = vrot.slane %v5884_v60, 5 }
 0x193   : > { %8428 = vmatprep.subr.bf16.mxu0 %v9006_v53  ;;  %v5877_v27 = vrot.slane %v5875_v22, 4 }
 0x194   : > { %8119 = vmatpush3.bf16.msra.mxu1 %v9007_v6  ;;  %v7452_v6 = vcombine.low %v5845_v29, %v5859_v24  ;;  %v5933_v24 = vrot.slane %v5931_v33, 4 }
 0x195   : > { %8128 = vmatprep.subr.bf16.mxu1 %v9009_v62 }
 0x196   : > { %8429 = vmatpush3.bf16.msra.mxu0 %v9006_v53  ;;  %v5906_v53 = vshll.u32 %v7430_v2, 16  ;;  %v7468_v2 = vld [vmem:[%s9942_s9 + $0x30] sm:$0xe] }
 0x197   : > { %8430 = vmatprep.subr.bf16.mxu0 %v9008_v11  ;;  %8121 = vmatmul.mubr.bf16.vlgmr.msra.gmra.mrb[0].mxu1 %v6909_v42  ;;  %v10799_v42 = vld [vmem:[%s9942_s9 + $0x34] sm:$0x1] }
 0x198   : > { %8129 = vmatpush3.bf16.msra.mxu1 %v9009_v62  ;;  %8124 = vmatprep.mubr.bf16.mxu1 %v6910_v14  ;;  %v5880_v62 = vrot.slane %v5878_v46, 5  ;;  %v5867_v14 = vor.u32 %v5866_v25, %v5863_v13  ;;  %v9033_v46 = vld [vmem:[%s9320_s14 + $0x28] ss:$8 sps:$4 sm:$0xff]   ;;  %v6140_v13 = vrot.slane %v10799_v42, 5 }
 0x199   : > { %8130 = vmatprep.subr.bf16.mxu1 %v9013_v39 }
 0x19a   : > { %8431 = vmatpush3.bf16.msra.mxu0 %v9008_v11  ;;  %v5908_v11 = vrot.slane %v5906_v53, 5  ;;  %v5881_v31 = vor.u32 %v5880_v62, %v5877_v27  ;;  %v5868_v20 = vrot.slane %v5867_v14, 4  ;;  %v5937_v53 = vor.u32 %v5936_v49, %v5933_v24  ;;  %v9034_v14 = vld [vmem:[%s9320_s14 + $0x38] ss:$8 sps:$4 sm:$0xff]  }
 0x19b   : > { %8440 = vmatprep.subr.bf16.mxu0 %v9011_v32  ;;  %v6144_v27 = vrot.slane %v10802_v19, 5  ;;  %v6136_v49 = vrot.slane %v10796_v63, 5 }
 0x19c   : > { %8131 = vmatpush3.bf16.msra.mxu1 %v9013_v39  ;;  %v5895_v39 = vor.u32 %v5894_v40, %v5891_v12  ;;  %v5909_v50 = vor.u32 %v5908_v11, %v5905_v5  ;;  %v5882_v44 = vrot.slane %v5881_v31, 4  ;;  %v7464_v11 = vld [vmem:[%s9942_s9 + $0x10] sm:$0xe]  ;;  %v5938_v23 = vrot.slane %v5937_v53, 4 }
 0x19d   : > { %8433 = vmatmul.mubr.bf16.vlgmr.msra.gmra.mrb[0].mxu0 %v9012_v16  ;;  %8132 = vmatprep.subr.bf16.mxu1 %v9015_v43  ;;  %v5917_v16 = vshrl.u32 %v7432_v37, 16  ;;  %v7472_v41 = vrot.slane %v7464_v11, 9  ;;  %v6124_v31 = vrot.slane %v10738_v34, 5 }
 0x19e   : > { %8441 = vmatpush3.bf16.msra.mxu0 %v9011_v32  ;;  %8436 = vmatprep.mubr.bf16.mxu0 %v9023_v38  ;;  %v5898_v32 = vshll.u32 %v10799_v42, 16  ;;  %v9026_v38 = vld [vmem:[%s10979_s3 + $0x670] sm:$0xff]   ;;  %v5910_v3 = vrot.slane %v5909_v50, 4 }
 0x19f   : > { %8442 = vmatprep.subr.bf16.mxu0 %v9014_v8  ;;  %8125 = vmatmul.mubr.bf16.gmra.mrb[4].mxu1 %v6911_v9  ;;  %v5896_v9 = vrot.slane %v5895_v39, 4  ;;  %v5919_v55 = vrot.slane %v5917_v16, 4  ;;  %v6128_v39 = vrot.slane %v10741_v15, 5  ;;  %v9036_v16 = vld [vmem:[%s10979_s3 + $0x698] sm:$0xff]   ;;  %v6125_v34 = vsel %vm9508_vm5, %v7472_v41, %v6124_v31 }
 0x1a0   : > { %8133 = vmatpush3.bf16.msra.mxu1 %v9015_v43  ;;  %8144 = vmatprep.mubr.bf16.mxu1 %v9029_v1  ;;  %v5920_v43 = vshll.u32 %v7432_v37, 16  ;;  %v5900_v56 = vrot.slane %v5898_v32, 5  ;;  %v5914_v1 = vrot.slane %v5912_v54, 5 }
 0x1a1   : > { %8134 = vmatprep.subr.bf16.mxu1 %v9017_v57 }
 0x1a2   : > { %8443 = vmatpush3.bf16.msra.mxu0 %v9014_v8  ;;  %v9027_v8 = vld [vmem:[%s10979_s3 + $0x338] sm:$0xff]   ;;  %v5922_v29 = vrot.slane %v5920_v43, 5  ;;  %v5901_v58 = vsel %vm9334_vm2, %v5896_v9, %v5900_v56  ;;  %v5915_v4 = vsel %vm9334_vm2, %v5910_v3, %v5914_v1  ;;  %v7466_v3 = vld [vmem:[%s9942_s9 + $0x20] sm:$0xe]  ;;  %v7467_v1 = vld [vmem:[%s9942_s9 + $0x28] sm:$0xe] }
 0x1a3   : > { %8444 = vmatprep.subr.bf16.mxu0 %v9016_v47  ;;  %v7454_v12 = vcombine.low %v5901_v58, %v5915_v4  ;;  %v9040_v56 = vld [vmem:[%s10979_s3 + $0x6b8] sm:$0xff]   ;;  %v7475_v24 = vrot.slane %v7467_v1, 9 }
 0x1a4   : > { %8135 = vmatpush3.bf16.msra.mxu1 %v9017_v57  ;;  %v10823_v57 = vld [vmem:[%s9942_s9 + $0x44] sm:$0x1]  ;;  %v5923_v0 = vor.u32 %v5922_v29, %v5919_v55  ;;  %v6132_v29 = vrot.slane %v10793_v30, 5 }
 0x1a5   : > { %8437 = vmatmul.mubr.bf16.gmra.mrb[4].mxu0 %v9025_v10  ;;  %8136 = vmatprep.subr.bf16.mxu1 %v9019_v28  ;;  %v9031_v10 = vld [vmem:[%s10979_s3 + $0x680] sm:$0xff]   ;;  %v5926_v21 = vshll.u32 %v10823_v57, 16 }
 0x1a6   : > { %8445 = vmatpush3.bf16.msra.mxu0 %v9016_v47  ;;  %8456 = vmatprep.mubr.bf16.mxu0 %v7452_v6  ;;  %v10826_v47 = vld [vmem:[%s9942_s9 + $0x4c] sm:$0x1]  ;;  %v5887_v6 = vsel %vm9334_vm2, %v5882_v44, %v5886_v52  ;;  %v5924_v37 = vrot.slane %v5923_v0, 4 }
 0x1a7   : > { %8446 = vmatprep.subr.bf16.mxu0 %v9018_v7  ;;  %v5940_v22 = vshll.u32 %v10826_v47, 16  ;;  %v5928_v40 = vrot.slane %v5926_v21, 5  ;;  %v6152_v44 = vrot.slane %v10826_v47, 5  ;;  %v7474_v47 = vrot.slane %v7466_v3, 9 }
 0x1a8   : > { %8137 = vmatpush3.bf16.msra.mxu1 %v9019_v28  ;;  %v7469_v28 = vld [vmem:[%s9942_s9 + $0x38] sm:$0xe] }
 0x1a9   : > { %8138 = vmatprep.subr.bf16.mxu1 %v9021_v26  ;;  %v7477_v25 = vrot.slane %v7469_v28, 9  ;;  %v5942_v5 = vrot.slane %v5940_v22, 5  ;;  %v5929_v50 = vsel %vm9334_vm2, %v5924_v37, %v5928_v40  ;;  %v7509_v40 = vld [vmem:[%s10981_s5] ss:$0 sm:$0xff] }
 0x1aa   : > { %8447 = vmatpush3.bf16.msra.mxu0 %v9018_v7  ;;  %v5873_v7 = vsel %vm9334_vm2, %v5868_v20, %v5872_v51  ;;  %v7471_v20 = vld [vmem:[%s9942_s9 + $0x48] sm:$0xe]  ;;  %v6148_v51 = vrot.slane %v10823_v57, 5 }
 0x1ab   : > { %8448 = vmatprep.subr.bf16.mxu0 %v9020_v59  ;;  %v7453_v62 = vcombine.low %v5873_v7, %v5887_v6  ;;  %v6145_v19 = vsel %vm9508_vm5, %v7477_v25, %v6144_v27  ;;  %v5943_v54 = vsel %vm9334_vm2, %v5938_v23, %v5942_v5  ;;  %v7479_v9 = vrot.slane %v7471_v20, 9  ;;  %v7508_v25 = vld [vmem:[%s10980_s4] ss:$0 sm:$0xff] }
 0x1ac   : > { %8139 = vmatpush3.bf16.msra.mxu1 %v9021_v26  ;;  %v7476_v26 = vrot.slane %v7468_v2, 9  ;;  %v7455_v43 = vcombine.low %v5929_v50, %v5943_v54  ;;  %v6137_v2 = vsel %vm9508_vm5, %v7475_v24, %v6136_v49 }
 0x1ad   : > { %8140 = vmatprep.subr.bf16.mxu1 %v9024_v45  ;;  %v6153_v57 = vsel %vm9508_vm5, %v7479_v9, %v6152_v44 }
 0x1ae   : > { %8449 = vmatpush3.bf16.msra.mxu0 %v9020_v59  ;;  %v9032_v59 = vld [vmem:[%s10979_s3 + $0x688] sm:$0xff]   ;;  %v6141_v42 = vsel %vm9508_vm5, %v7476_v26, %v6140_v13 }
 0x1af   : > { %8450 = vmatprep.subr.bf16.mxu0 %v9022_v61  ;;  %v7498_v32 = vcombine.low %v6141_v42, %v6145_v19 }
 0x1b0   : > { %8141 = vmatpush3.bf16.msra.mxu1 %v9024_v45  ;;  %v7465_v45 = vld [vmem:[%s9942_s9 + $0x18] sm:$0xe] }
 0x1b1   : > { %8142 = vmatprep.subr.bf16.mxu1 %v9027_v8  ;;  %v7473_v60 = vrot.slane %v7465_v45, 9 }
 0x1b2   : > { %8451 = vmatpush3.bf16.msra.mxu0 %v9022_v61  ;;  %v9035_v61 = vld [vmem:[%s10979_s3 + $0x690] sm:$0xff]  }
 0x1b3   : > { %8452 = vmatprep.subr.bf16.mxu0 %v9026_v38  ;;  %v6129_v15 = vsel %vm9508_vm5, %v7473_v60, %v6128_v39 }
 0x1b4   : > { %8143 = vmatpush3.bf16.msra.mxu1 %v9027_v8  ;;  %v7496_v33 = vcombine.low %v6125_v34, %v6129_v15  ;;  %v9039_v8 = vld [vmem:[%s10979_s3 + $0x6b0] sm:$0xff]  }
 0x1b5   : > { %8488 = vmatprep.subr.bf16.mxu1 %v9031_v10 }
 0x1b6   : > { %8453 = vmatpush3.bf16.msra.mxu0 %v9026_v38  ;;  %v7470_v38 = vld [vmem:[%s9942_s9 + $0x40] sm:$0xe]  ;;  %s326_s9 = sand.u32 1, %s9111_s22  }
 0x1b7   : > { %8454 = vmatprep.subr.bf16.mxu0 %v9028_v17  ;;  %8145 = vmatmul.mubr.bf16.vlgmr.msra.gmra.mrb[0].mxu1 %v9030_v36  ;;  %v7478_v52 = vrot.slane %v7470_v38, 9  ;;  %s6500_s14 = sshll.u32 %s326_s9, 6  ;;  %s10924_s7 = scalar_lea.sflag [#allocation3], %s326_s9 }
 0x1b8   : > { %8496 = vmatpush3.bf16.msra.mxu1 %v9031_v10  ;;  %8148 = vmatprep.mubr.bf16.mxu1 %v9033_v46  ;;  %s328_s29 = scalar_lea.vmem [#allocation2], %s6500_s14  ;;  %s9047_s14 = scalar_lea.vmem %s9046_s18, 2048 }
 0x1b9   : > { %8489 = vmatprep.subr.bf16.mxu1 %v9032_v59  ;;  %v6149_v55 = vsel %vm9508_vm5, %v7478_v52, %v6148_v51  ;;  %s6368_s25 = sshll.u32 %s328_s29, 4  ;;  %s10920_s25 = int_to_ptr.vmem [resolvable:$true] %s6368_s25 }
 0x1ba   : > { %8455 = vmatpush3.bf16.msra.mxu0 %v9028_v17  ;;  %v6133_v17 = vsel %vm9508_vm5, %v7474_v47, %v6132_v29  ;;  %s9041_s19 = scalar_lea.vmem %s10920_s25, 1024  ;;  %p9048_p6 = scmp.lt.s32.totalorder %s10920_s25, %s9046_s18 }
 0x1bb   : > { %8464 = vmatprep.subr.bf16.mxu0 %v9031_v10  ;;  %v7497_v28 = vcombine.low %v6133_v17, %v6137_v2  ;;  %p9042_p2 = scmp.ne.s32.totalorder %s10920_s25, %s9041_s19  ;;  %p9049_p7 = scmp.lt.s32.totalorder %s9047_s14, %s9041_s19 }
 0x1bc   : > { %8497 = vmatpush3.bf16.msra.mxu1 %v9032_v59 }
 0x1bd   : > { %8457 = vmatmul.mubr.bf16.vlgmr.msra.gmra.mrb[0].mxu0 %v7453_v62  ;;  %8490 = vmatprep.subr.bf16.mxu1 %v9035_v61  ;;  %p9043_p4 = pnand %p9042_p2, %p9226_p3  ;;  %p9050_p9 = por %p9049_p7, %p9048_p6 }
 0x1be   : > { %8465 = vmatpush3.bf16.msra.mxu0 %v9031_v10  ;;  %8460 = vmatprep.mubr.bf16.mxu0 %v7454_v12  ;;  %v7499_v10 = vcombine.low %v6149_v55, %v6153_v57 }
 0x1bf   : > { %8466 = vmatprep.subr.bf16.mxu0 %v9032_v59  ;;  %8149 = vmatmul.mubr.bf16.gmra.mrb[4].mxu1 %v9034_v14  ;;  %p9044_p5 = pneg %p9043_p4 }
 0x1c0   : > { %8498 = vmatpush3.bf16.msra.mxu1 %v9035_v61  ;;  %8484 = vmatprep.mubr.bf16.mxu1 %v7498_v32 }
 0x1c1   : > { %8491 = vmatprep.subr.bf16.mxu1 %v9036_v16  ;;  %p9051_p10 = pnand %p9050_p9, %p9044_p5 }
 0x1c2   : > { %8467 = vmatpush3.bf16.msra.mxu0 %v9032_v59 }
 0x1c3   : > { %8468 = vmatprep.subr.bf16.mxu0 %v9035_v61 }
 0x1c4   : > { %8499 = vmatpush3.bf16.msra.mxu1 %v9036_v16 }
 0x1c5   : > { %8461 = vmatmul.mubr.bf16.gmra.mrb[4].mxu0 %v7455_v43  ;;  %8492 = vmatprep.subr.bf16.mxu1 %v9037_v35 }
 0x1c6   : > { %8469 = vmatpush3.bf16.msra.mxu0 %v9035_v61  ;;  %8480 = vmatprep.mubr.bf16.mxu0 %v7496_v33 }
 0x1c7   : > { %8470 = vmatprep.subr.bf16.mxu0 %v9036_v16 }
 0x1c8   : > { %8500 = vmatpush3.bf16.msra.mxu1 %v9037_v35 }
 0x1c9   : > { %8493 = vmatprep.subr.bf16.mxu1 %v9038_v18 }
 0x1ca   : > { %8471 = vmatpush3.bf16.msra.mxu0 %v9036_v16 }
 0x1cb   : > { %8472 = vmatprep.subr.bf16.mxu0 %v9037_v35 }
 0x1cc   : > { %8501 = vmatpush3.bf16.msra.mxu1 %v9038_v18 }
 0x1cd   : > { %8494 = vmatprep.subr.bf16.mxu1 %v9039_v8 }
 0x1ce   : > { %8473 = vmatpush3.bf16.msra.mxu0 %v9037_v35 }
 0x1cf   : > { %8474 = vmatprep.subr.bf16.mxu0 %v9038_v18 }
 0x1d0   : > { %8502 = vmatpush3.bf16.msra.mxu1 %v9039_v8 }
 0x1d1   : > { %8495 = vmatprep.subr.bf16.mxu1 %v9040_v56 }
 0x1d2   : > { %8475 = vmatpush3.bf16.msra.mxu0 %v9038_v18 }
 0x1d3   : > { %8476 = vmatprep.subr.bf16.mxu0 %v9039_v8 }
 0x1d4   : > { %8503 = vmatpush3.bf16.msra.mxu1 %v9040_v56 }
 0x1d6   : > { %8477 = vmatpush3.bf16.msra.mxu0 %v9039_v8 }
 0x1d7   : > { %8478 = vmatprep.subr.bf16.mxu0 %v9040_v56  ;;  %8485 = vmatmul.mubr.bf16.vlgmr.msra.gmra.mrb[8].mxu1 %v7499_v10 }
 0x1da   : > { %8479 = vmatpush3.bf16.msra.mxu0 %v9040_v56 }
 0x1dd   : > { %8481 = vmatmul.mubr.bf16.vlgmr.msra.gmra.mrb[0].mxu0 %v7497_v28 }
 0x28a   : > { %v8146_v36 = vpop.f32.mrb[0].mxu1 }
 0x28b   : > { %v3126_v30 = vpop.f32.mrb[1].mxu1 }
 0x28c   : > { %v8147_v7 = vpop.f32.mrb[2].mxu1 }
 0x28d   : > { %v3129_v63 = vpop.f32.mrb[3].mxu1 }
 0x292   : > { %v8150_v6 = vpop.f32.mrb[4].mxu1 }
 0x293   : > { %v3142_v21 = vpop.f32.mrb[5].mxu1 }
 0x294   : > { %v8151_v22 = vpop.f32.mrb[6].mxu1 }
 0x295   : > { %v3145_v46 = vpop.f32.mrb[7].mxu1 }
 0x298   : > { %v8462_v58 = vpop.f32.mrb[4].mxu0 }
 0x299   : > { %v8508_v4 = vadd.f32 %v8462_v58, %v8150_v6  ;;  %v6075_v0 = vpop.f32.mrb[5].mxu0 }
 0x29a   : > { %v8510_v48 = vadd.f32 %v6075_v0, %v3142_v21  ;;  %v8463_v53 = vpop.f32.mrb[6].mxu0 }
 0x29b   : > { %v8512_v59 = vadd.f32 %v8463_v53, %v8151_v22  ;;  %v6078_v26 = vpop.f32.mrb[7].mxu0 }
 0x29c   : > { %v8514_v13 = vadd.f32 %v6078_v26, %v3145_v46 }
 0x2aa   : > { %v8486_v27 = vpop.f32.mrb[8].mxu1 }
 0x2ab   : > { %v8509_v62 = vadd.f32 %v8508_v4, %v8486_v27  ;;  %v6285_v12 = vpop.f32.mrb[9].mxu1 }
 0x2ac   : > { %v8511_v5 = vadd.f32 %v8510_v48, %v6285_v12  ;;  %v8487_v11 = vpop.f32.mrb[10].mxu1 }
 0x2ad   : > { %v6320_v45 = vmul.f32 %v8509_v62, %v7508_v25  ;;  %v8513_v37 = vadd.f32 %v8512_v59, %v8487_v11  ;;  %v6288_v23 = vpop.f32.mrb[11].mxu1 }
 0x2ae   : > { %v6318_v42 = vmul.f32 %v8511_v5, %v7508_v25  ;;  %v8515_v19 = vadd.f32 %v8514_v13, %v6288_v23 }
 0x2af   : > { %v6334_v14 = vadd.f32 %v7509_v40, %v6320_v45  ;;  %v6321_v41 = vmul.f32 %v8513_v37, %v7508_v25 }
 0x2b0   : > { %v8482_v61 = vpop.f32.mrb[0].mxu0  ;;  %v6332_v39 = vadd.f32 %v7509_v40, %v6318_v42  ;;  %v6319_v32 = vmul.f32 %v8515_v19, %v7508_v25 }
 0x2b1   : > { %v8504_v31 = vadd.f32 %v8482_v61, %v8146_v36  ;;  %v6269_v60 = vpop.f32.mrb[1].mxu0  ;;  %v6342_v50 = vmax.f32 %v6334_v14, 0.0  ;;  %v6335_v34 = vadd.f32 %v7509_v40, %v6321_v41 }
 0x2b2   : > { %v8505_v54 = vadd.f32 %v6269_v60, %v3126_v30  ;;  %v8483_v16 = vpop.f32.mrb[2].mxu0  ;;  %v6340_v43 = vmax.f32 %v6332_v39, 0.0  ;;  %v6333_v18 = vadd.f32 %v7509_v40, %v6319_v32 }
 0x2b3   : > { %v6316_v15 = vmul.f32 %v8504_v31, %v7508_v25  ;;  %v8506_v35 = vadd.f32 %v8483_v16, %v8147_v7  ;;  %v6272_v33 = vpop.f32.mrb[3].mxu0  ;;  %6350 = vst [vmem:[%s328_s29 + $0x30] sm:$0xff] %v6342_v50  ;;  %v6343_v38 = vmax.f32 %v6335_v34, 0.0 }
 0x2b4   : > { %v6314_v8 = vmul.f32 %v8505_v54, %v7508_v25  ;;  %v8507_v20 = vadd.f32 %v6272_v33, %v3129_v63  ;;  %6348 = vst [vmem:[%s328_s29 + $0x20] sm:$0xff] %v6340_v43  ;;  %v6341_v52 = vmax.f32 %v6333_v18, 0.0 }
 0x2b5   : > { %v6330_v51 = vadd.f32 %v7509_v40, %v6316_v15  ;;  %v6317_v44 = vmul.f32 %v8506_v35, %v7508_v25  ;;  %6351 = vst [vmem:[%s328_s29 + $0x38] sm:$0xff] %v6343_v38 }
 0x2b6   : > { %v6328_v9 = vadd.f32 %v7509_v40, %v6314_v8  ;;  %v6315_v56 = vmul.f32 %v8507_v20, %v7508_v25  ;;  %6349 = vst [vmem:[%s328_s29 + $0x28] sm:$0xff] %v6341_v52 }
 0x2b7   : > { %v6338_v3 = vmax.f32 %v6330_v51, 0.0  ;;  %v6331_v1 = vadd.f32 %v7509_v40, %v6317_v44 }
 0x2b8   : > { %v6336_v55 = vmax.f32 %v6328_v9, 0.0  ;;  %v6329_v57 = vadd.f32 %v7509_v40, %v6315_v56 }
 0x2b9   : > { %6346 = vst [vmem:[%s328_s29 + $0x10] sm:$0xff] %v6338_v3  ;;  %v6339_v47 = vmax.f32 %v6331_v1, 0.0 }
 0x2ba   : > { %6344 = vst [vmem:[%s328_s29] sm:$0xff] %v6336_v55  ;;  %v6337_v29 = vmax.f32 %v6329_v57, 0.0 }
 0x2bb   : > { %6347 = vst [vmem:[%s328_s29 + $0x18] sm:$0xff] %v6339_v47 }
 0x2bc   : > { %6345 = vst [vmem:[%s328_s29 + $0x8] sm:$0xff] %v6337_v29 }
 0x2bd   : > { %9054 = shalt.err (!%p9051_p10)
}
 0x2be   : > { %s9055_s9 = scalar_lea.hbm %s10918_s17, 1024  ;;  %s9059_s30 = scalar_lea.hbm %s10982_s6, 16384 }
 0x2bf   : > { %p9056_p11 = scmp.ne.s32.totalorder %s10918_s17, %s9055_s9  ;;  %p9060_p0 = scmp.lt.u32.totalorder %s10918_s17, %s10982_s6 }
 0x2c0   : > { %p9061_p1 = scmp.lt.u32.totalorder %s9059_s30, %s9055_s9  ;;  %p9063_p4 = scmp.lt.u32.totalorder %s9055_s9, %s10918_s17 }
 0x2c1   : > { %p9057_p12 = pnand %p9056_p11, %p9226_p3 }
 0x2c2   : > { %p9062_p2 = por %p9061_p1, %p9060_p0 }
 0x2c3   : > { %p9058_p13 = pneg %p9057_p12 }
 0x2c4   : > { %p9064_p5 = por %p9063_p4, %p9062_p2 }
 0x2c6   : > { %p9065_p6 = pnand %p9064_p5, %p9058_p13 }
 0x2c8   : > { %9068 = shalt.err (!%p9065_p6)
}
 0x2c9   : > { %s9138_s12 = smov 128   ;;  %s9139_s13 = smov 8  }
 0x2ca   : > { %8716 = dma.vmem_to_hbm [thread:$0]  (%p9226_p3), %s10920_s25, 1024, %s10918_s17, %s10924_s7, %s9138_s12, %s9138_s12, %s9139_s13  }
 0x2cb PF: > { %p8722_p7 = scmp.ge.s32.totalorder %s9135_s28, 2  ;;  %s6383_s19 = sand.u32 1, %s9107_s21  }
 0x2cc   : > { %s6384_s16 = scalar_lea.sflag [#allocation3], %s6383_s19 }
 0x2cd   : > { %p8719_p9 = pnand %p8722_p7, %p9235_p8 }
 0x2cf   : > { %9102 = dma.done.wait (!%p8719_p9), %s6384_s16, 1024  }
 0x2d0   : > { %9104 = vsyncadd (!%p8719_p9), %s6384_s16, 4294966272  ;;  %s19_s28 = sadd.s32 1, %s9135_s28   ;;  %s10994_s10 = sld [smem:[#allocation5_spill]] }
 0x2d1   : > { %p16_p10 = scmp.ge.s32.totalorder %s19_s28, 18   ;;  %s10995_s17 = sld [smem:[#allocation6_spill]] }
 0x2d2   : > { %s10996_s21 = smov %s9111_s22  ;;  %s10997_s22 = smov %s9115_s23 }
 0x2d3   : > { %s10998_s23 = smov %s9244_s15  ;;  %s10999_s24 = smov %s9127_s26 }
 0x2d4   : > { %s11000_s25 = smov %s9131_s27  ;;  %18 = sbr.rel (!%p16_p10) target bundleno = 5 (0x5), region = 117 }
 0x2d6   : > { %s11001_s26 = smov %s10994_s10 }
 0x2d7   : > { %s11002_s27 = smov %s10995_s17 }
 0x2db   :  { %6389 = vsyncpa [#allocation3], 1 }
 0x2dc   :  { %6391 = vsyncpa [#allocation3 + $0x1], 1 }

</bundles_post_ra>
